<compile_context>
chip_gen: v7x
topology: tpu7x:2x2x1
jax: 0.10.0
libtpu: 0.0.40
codegen_flags: <defaults>
</compile_context>

<pallas_src>
import functools

import jax
import jax.numpy as jnp
from jax.experimental import pallas as pl
from jax.experimental.pallas import tpu as pltpu


def _block_kernel(x_ref, w1_ref, b1_ref, w2_ref, b2_ref, o_ref, *, W, R1, R2):
    cin = x_ref.shape[-1]
    cout = w1_ref.shape[-1]

    def conv3x3(src, w, c_in, rows):
        # 9 accumulating tap dots.  tap(kh,kw) = flat rows [kh*W+kw, +rows);
        # weight rows are blocked in the matching (kh, kw, ci) order.
        acc = None
        for kh in range(3):
            for kw in range(3):
                t = kh * 3 + kw
                off = kh * W + kw
                tap = src[off:off + rows, :]                       # sublane slice only
                d = jnp.dot(tap, w[t * c_in:(t + 1) * c_in, :],
                            preferred_element_type=jnp.float32)    # MXU, f32 accum
                acc = d if acc is None else acc + d
        return acc

    x = x_ref[0]                                                   # (HWp, Cin) bf16
    # ---- conv1 (full-width rows) + bias + ReLU, intermediate in bf16 ----
    h = conv3x3(x, w1_ref[...], cin, R1)                           # (R1, Cout) f32
    h = jnp.maximum(h + b1_ref[...], 0.0).astype(jnp.bfloat16)     # kept in values
    # ---- conv2 on the conv1 value (same flat-row trick, stride W) ----
    out = conv3x3(h, w2_ref[...], cout, R2)                        # (R2, Cout) f32
    out = jnp.maximum(out + b2_ref[...], 0.0)
    o_ref[0] = out.astype(o_ref.dtype)


def block_forward(x, w1, b1, w2, b2):
    """Forward of the PyTorch `Block`.

    x : (N, Cin, H, W)  NCHW          w1: (Cout, Cin, 3, 3) OIHW, b1: (Cout,)
    returns (N, Cout, H-4, W-4)       w2: (Cout, Cout, 3, 3) OIHW, b2: (Cout,)
    """
    N, Cin, H, W = x.shape
    Cout = w1.shape[0]
    H1, W1 = H - 2, W - 2
    H2, W2 = H - 4, W - 4

    rup8 = lambda v: (v + 7) // 8 * 8
    R1 = rup8(H1 * W + 2)            # full-width conv1 rows (+ slack for conv2 taps)
    R2 = H2 * W                      # full-width conv2 rows
    HWp = rup8(2 * W + 2 + R1)       # padded flat-spatial input length

    # Layout conversion / padding / casts are cheap wrapper-side XLA ops.
    x_flat = jnp.transpose(x, (0, 2, 3, 1)).reshape(N, H * W, Cin)
    x_flat = jnp.pad(x_flat, ((0, 0), (0, HWp - H * W), (0, 0))).astype(jnp.bfloat16)
    w1_2d = jnp.transpose(w1, (2, 3, 1, 0)).reshape(9 * Cin, Cout).astype(jnp.bfloat16)
    w2_2d = jnp.transpose(w2, (2, 3, 1, 0)).reshape(9 * Cout, Cout).astype(jnp.bfloat16)
    b1_2d = b1.reshape(1, Cout).astype(jnp.float32)
    b2_2d = b2.reshape(1, Cout).astype(jnp.float32)

    kernel = functools.partial(_block_kernel, W=W, R1=R1, R2=R2)

    out_full = pl.pallas_call(
        kernel,
        out_shape=jax.ShapeDtypeStruct((N, R2, Cout), x.dtype),
        grid_spec=pltpu.PrefetchScalarGridSpec(
            num_scalar_prefetch=0,
            grid=(N,),                       # >= 2 steps: pipelining + both v7x TCs
            in_specs=[
                pl.BlockSpec((1, HWp, Cin), lambda n: (n, 0, 0)),
                pl.BlockSpec((9 * Cin, Cout), lambda n: (0, 0)),
                pl.BlockSpec((1, Cout), lambda n: (0, 0)),
                pl.BlockSpec((9 * Cout, Cout), lambda n: (0, 0)),
                pl.BlockSpec((1, Cout), lambda n: (0, 0)),
            ],
            out_specs=pl.BlockSpec((1, R2, Cout), lambda n: (n, 0, 0)),
        ),
        compiler_params=pltpu.CompilerParams(
            dimension_semantics=("parallel",),
            vmem_limit_bytes=32 * 1024 * 1024,
        ),
    )(x_flat, w1_2d, b1_2d, w2_2d, b2_2d)

    # Drop the 2 garbage right-edge columns of each full-width row; back to NCHW.
    out = out_full.reshape(N, H2, W, Cout)[:, :, :W2, :]
    return jnp.transpose(out, (0, 3, 1, 2))


def _reference(x, w1, b1, w2, b2):
    # Mirrors the kernel's precision: bf16-rounded matmul operands / bf16
    # intermediate, f32 accumulation.
    dn = ("NCHW", "OIHW", "NCHW")
    f32 = jnp.float32
    xb = x.astype(jnp.bfloat16).astype(f32)
    w1b = w1.astype(jnp.bfloat16).astype(f32)
    w2b = w2.astype(jnp.bfloat16).astype(f32)
    y = jax.lax.conv_general_dilated(xb, w1b, (1, 1), "VALID", dimension_numbers=dn,
                                     precision=jax.lax.Precision.HIGHEST)
    y = jax.nn.relu(y + b1.reshape(1, -1, 1, 1))
    y = y.astype(jnp.bfloat16).astype(f32)
    y = jax.lax.conv_general_dilated(y, w2b, (1, 1), "VALID", dimension_numbers=dn,
                                     precision=jax.lax.Precision.HIGHEST)
    y = jax.nn.relu(y + b2.reshape(1, -1, 1, 1))
    return y


if __name__ == "__main__":
    N, H, W = 2, 16, 16
    in_ch, out_ch = 4, 8

    key = jax.random.PRNGKey(0)
    kx, k1, k2, k3, k4 = jax.random.split(key, 5)

    x = jax.random.normal(kx, (N, in_ch, H, W), dtype=jnp.float32)
    w1 = jax.random.normal(k1, (out_ch, in_ch, 3, 3), dtype=jnp.float32) * 0.1
    b1 = jax.random.normal(k2, (out_ch,), dtype=jnp.float32) * 0.1
    w2 = jax.random.normal(k3, (out_ch, out_ch, 3, 3), dtype=jnp.float32) * 0.1
    b2 = jax.random.normal(k4, (out_ch,), dtype=jnp.float32) * 0.1

    out = jax.block_until_ready(block_forward(x, w1, b1, w2, b2))
    ref = jax.block_until_ready(_reference(x, w1, b1, w2, b2))

    assert out.shape == (N, out_ch, H - 4, W - 4), out.shape
    assert jnp.allclose(out, ref, atol=2e-3, rtol=2e-3), \
        f"mismatch vs reference, max abs diff {jnp.max(jnp.abs(out - ref))}"
    print("KERNEL_OK")
</pallas_src>

<mosaic_0001>
module attributes {stable_mosaic.version = 11 : i64} {
  func.func @_block_kernel(%arg0: i32, %arg1: memref<1x272x4xbf16, #tpu.memory_space<vmem>>, %arg2: memref<36x8xbf16, #tpu.memory_space<vmem>>, %arg3: memref<1x8xf32, #tpu.memory_space<vmem>>, %arg4: memref<72x8xbf16, #tpu.memory_space<vmem>>, %arg5: memref<1x8xf32, #tpu.memory_space<vmem>>, %arg6: memref<1x192x8xf32, #tpu.memory_space<vmem>>) attributes {dimension_semantics = [#tpu.dimension_semantics<parallel>], iteration_bounds = array<i64: 2>, scalar_prefetch = 0 : i64, scratch_operands = 0 : i64, tpu.core_type = #tpu.core_type<tc>, window_params = [{transform_indices = @transform_0, window_bounds = array<i64: 1, 272, 4>}, {pipeline_mode = #tpu.pipeline_mode<synchronous>, transform_indices = @transform_1, window_bounds = array<i64: 36, 8>}, {pipeline_mode = #tpu.pipeline_mode<synchronous>, transform_indices = @transform_2, window_bounds = array<i64: 1, 8>}, {pipeline_mode = #tpu.pipeline_mode<synchronous>, transform_indices = @transform_3, window_bounds = array<i64: 72, 8>}, {pipeline_mode = #tpu.pipeline_mode<synchronous>, transform_indices = @transform_4, window_bounds = array<i64: 1, 8>}, {transform_indices = @transform_5, window_bounds = array<i64: 1, 192, 8>}]} {
    %c0 = arith.constant 0 : index
    %c0_0 = arith.constant 0 : index
    %c0_1 = arith.constant 0 : index
    %0 = vector.load %arg1[%c0, %c0_0, %c0_1] : memref<1x272x4xbf16, #tpu.memory_space<vmem>>, vector<1x272x4xbf16>
    %1 = vector.shape_cast %0 : vector<1x272x4xbf16> to vector<272x4xbf16>
    %c0_2 = arith.constant 0 : index
    %c0_3 = arith.constant 0 : index
    %2 = vector.load %arg2[%c0_2, %c0_3] : memref<36x8xbf16, #tpu.memory_space<vmem>>, vector<36x8xbf16>
    %3 = vector.extract_strided_slice %1 {offsets = [0, 0], sizes = [232, 4], strides = [1, 1]} : vector<272x4xbf16> to vector<232x4xbf16>
    %4 = vector.extract_strided_slice %2 {offsets = [0, 0], sizes = [4, 8], strides = [1, 1]} : vector<36x8xbf16> to vector<4x8xbf16>
    %cst = arith.constant dense<0.000000e+00> : vector<232x8xf32>
    %5 = tpu.matmul %3, %4, %cst {dimension_numbers = #tpu.dot_dimension_numbers<[1], [0], [0], [1], [0, 0, 1, 1], [], []>} : vector<232x4xbf16>, vector<4x8xbf16>, vector<232x8xf32> -> vector<232x8xf32>
    %6 = vector.extract_strided_slice %1 {offsets = [1, 0], sizes = [232, 4], strides = [1, 1]} : vector<272x4xbf16> to vector<232x4xbf16>
    %7 = vector.extract_strided_slice %2 {offsets = [4, 0], sizes = [4, 8], strides = [1, 1]} : vector<36x8xbf16> to vector<4x8xbf16>
    %cst_4 = arith.constant dense<0.000000e+00> : vector<232x8xf32>
    %8 = tpu.matmul %6, %7, %cst_4 {dimension_numbers = #tpu.dot_dimension_numbers<[1], [0], [0], [1], [0, 0, 1, 1], [], []>} : vector<232x4xbf16>, vector<4x8xbf16>, vector<232x8xf32> -> vector<232x8xf32>
    %9 = arith.addf %5, %8 : vector<232x8xf32>
    %10 = vector.extract_strided_slice %1 {offsets = [2, 0], sizes = [232, 4], strides = [1, 1]} : vector<272x4xbf16> to vector<232x4xbf16>
    %11 = vector.extract_strided_slice %2 {offsets = [8, 0], sizes = [4, 8], strides = [1, 1]} : vector<36x8xbf16> to vector<4x8xbf16>
    %cst_5 = arith.constant dense<0.000000e+00> : vector<232x8xf32>
    %12 = tpu.matmul %10, %11, %cst_5 {dimension_numbers = #tpu.dot_dimension_numbers<[1], [0], [0], [1], [0, 0, 1, 1], [], []>} : vector<232x4xbf16>, vector<4x8xbf16>, vector<232x8xf32> -> vector<232x8xf32>
    %13 = arith.addf %9, %12 : vector<232x8xf32>
    %14 = vector.extract_strided_slice %1 {offsets = [16, 0], sizes = [232, 4], strides = [1, 1]} : vector<272x4xbf16> to vector<232x4xbf16>
    %15 = vector.extract_strided_slice %2 {offsets = [12, 0], sizes = [4, 8], strides = [1, 1]} : vector<36x8xbf16> to vector<4x8xbf16>
    %cst_6 = arith.constant dense<0.000000e+00> : vector<232x8xf32>
    %16 = tpu.matmul %14, %15, %cst_6 {dimension_numbers = #tpu.dot_dimension_numbers<[1], [0], [0], [1], [0, 0, 1, 1], [], []>} : vector<232x4xbf16>, vector<4x8xbf16>, vector<232x8xf32> -> vector<232x8xf32>
    %17 = arith.addf %13, %16 : vector<232x8xf32>
    %18 = vector.extract_strided_slice %1 {offsets = [17, 0], sizes = [232, 4], strides = [1, 1]} : vector<272x4xbf16> to vector<232x4xbf16>
    %19 = vector.extract_strided_slice %2 {offsets = [16, 0], sizes = [4, 8], strides = [1, 1]} : vector<36x8xbf16> to vector<4x8xbf16>
    %cst_7 = arith.constant dense<0.000000e+00> : vector<232x8xf32>
    %20 = tpu.matmul %18, %19, %cst_7 {dimension_numbers = #tpu.dot_dimension_numbers<[1], [0], [0], [1], [0, 0, 1, 1], [], []>} : vector<232x4xbf16>, vector<4x8xbf16>, vector<232x8xf32> -> vector<232x8xf32>
    %21 = arith.addf %17, %20 : vector<232x8xf32>
    %22 = vector.extract_strided_slice %1 {offsets = [18, 0], sizes = [232, 4], strides = [1, 1]} : vector<272x4xbf16> to vector<232x4xbf16>
    %23 = vector.extract_strided_slice %2 {offsets = [20, 0], sizes = [4, 8], strides = [1, 1]} : vector<36x8xbf16> to vector<4x8xbf16>
    %cst_8 = arith.constant dense<0.000000e+00> : vector<232x8xf32>
    %24 = tpu.matmul %22, %23, %cst_8 {dimension_numbers = #tpu.dot_dimension_numbers<[1], [0], [0], [1], [0, 0, 1, 1], [], []>} : vector<232x4xbf16>, vector<4x8xbf16>, vector<232x8xf32> -> vector<232x8xf32>
    %25 = arith.addf %21, %24 : vector<232x8xf32>
    %26 = vector.extract_strided_slice %1 {offsets = [32, 0], sizes = [232, 4], strides = [1, 1]} : vector<272x4xbf16> to vector<232x4xbf16>
    %27 = vector.extract_strided_slice %2 {offsets = [24, 0], sizes = [4, 8], strides = [1, 1]} : vector<36x8xbf16> to vector<4x8xbf16>
    %cst_9 = arith.constant dense<0.000000e+00> : vector<232x8xf32>
    %28 = tpu.matmul %26, %27, %cst_9 {dimension_numbers = #tpu.dot_dimension_numbers<[1], [0], [0], [1], [0, 0, 1, 1], [], []>} : vector<232x4xbf16>, vector<4x8xbf16>, vector<232x8xf32> -> vector<232x8xf32>
    %29 = arith.addf %25, %28 : vector<232x8xf32>
    %30 = vector.extract_strided_slice %1 {offsets = [33, 0], sizes = [232, 4], strides = [1, 1]} : vector<272x4xbf16> to vector<232x4xbf16>
    %31 = vector.extract_strided_slice %2 {offsets = [28, 0], sizes = [4, 8], strides = [1, 1]} : vector<36x8xbf16> to vector<4x8xbf16>
    %cst_10 = arith.constant dense<0.000000e+00> : vector<232x8xf32>
    %32 = tpu.matmul %30, %31, %cst_10 {dimension_numbers = #tpu.dot_dimension_numbers<[1], [0], [0], [1], [0, 0, 1, 1], [], []>} : vector<232x4xbf16>, vector<4x8xbf16>, vector<232x8xf32> -> vector<232x8xf32>
    %33 = arith.addf %29, %32 : vector<232x8xf32>
    %34 = vector.extract_strided_slice %1 {offsets = [34, 0], sizes = [232, 4], strides = [1, 1]} : vector<272x4xbf16> to vector<232x4xbf16>
    %35 = vector.extract_strided_slice %2 {offsets = [32, 0], sizes = [4, 8], strides = [1, 1]} : vector<36x8xbf16> to vector<4x8xbf16>
    %cst_11 = arith.constant dense<0.000000e+00> : vector<232x8xf32>
    %36 = tpu.matmul %34, %35, %cst_11 {dimension_numbers = #tpu.dot_dimension_numbers<[1], [0], [0], [1], [0, 0, 1, 1], [], []>} : vector<232x4xbf16>, vector<4x8xbf16>, vector<232x8xf32> -> vector<232x8xf32>
    %37 = arith.addf %33, %36 : vector<232x8xf32>
    %c0_12 = arith.constant 0 : index
    %c0_13 = arith.constant 0 : index
    %38 = vector.load %arg3[%c0_12, %c0_13] : memref<1x8xf32, #tpu.memory_space<vmem>>, vector<1x8xf32>
    %39 = vector.broadcast %38 : vector<1x8xf32> to vector<232x8xf32>
    %40 = arith.addf %37, %39 : vector<232x8xf32>
    %cst_14 = arith.constant 0.000000e+00 : f32
    %41 = vector.broadcast %cst_14 : f32 to vector<232x8xf32>
    %42 = arith.maximumf %40, %41 : vector<232x8xf32>
    %43 = arith.truncf %42 : vector<232x8xf32> to vector<232x8xbf16>
    %c0_15 = arith.constant 0 : index
    %c0_16 = arith.constant 0 : index
    %44 = vector.load %arg4[%c0_15, %c0_16] : memref<72x8xbf16, #tpu.memory_space<vmem>>, vector<72x8xbf16>
    %45 = vector.extract_strided_slice %43 {offsets = [0, 0], sizes = [192, 8], strides = [1, 1]} : vector<232x8xbf16> to vector<192x8xbf16>
    %46 = vector.extract_strided_slice %44 {offsets = [0, 0], sizes = [8, 8], strides = [1, 1]} : vector<72x8xbf16> to vector<8x8xbf16>
    %cst_17 = arith.constant dense<0.000000e+00> : vector<192x8xf32>
    %47 = tpu.matmul %45, %46, %cst_17 {dimension_numbers = #tpu.dot_dimension_numbers<[1], [0], [0], [1], [0, 0, 1, 1], [], []>} : vector<192x8xbf16>, vector<8x8xbf16>, vector<192x8xf32> -> vector<192x8xf32>
    %48 = vector.extract_strided_slice %43 {offsets = [1, 0], sizes = [192, 8], strides = [1, 1]} : vector<232x8xbf16> to vector<192x8xbf16>
    %49 = vector.extract_strided_slice %44 {offsets = [8, 0], sizes = [8, 8], strides = [1, 1]} : vector<72x8xbf16> to vector<8x8xbf16>
    %cst_18 = arith.constant dense<0.000000e+00> : vector<192x8xf32>
    %50 = tpu.matmul %48, %49, %cst_18 {dimension_numbers = #tpu.dot_dimension_numbers<[1], [0], [0], [1], [0, 0, 1, 1], [], []>} : vector<192x8xbf16>, vector<8x8xbf16>, vector<192x8xf32> -> vector<192x8xf32>
    %51 = arith.addf %47, %50 : vector<192x8xf32>
    %52 = vector.extract_strided_slice %43 {offsets = [2, 0], sizes = [192, 8], strides = [1, 1]} : vector<232x8xbf16> to vector<192x8xbf16>
    %53 = vector.extract_strided_slice %44 {offsets = [16, 0], sizes = [8, 8], strides = [1, 1]} : vector<72x8xbf16> to vector<8x8xbf16>
    %cst_19 = arith.constant dense<0.000000e+00> : vector<192x8xf32>
    %54 = tpu.matmul %52, %53, %cst_19 {dimension_numbers = #tpu.dot_dimension_numbers<[1], [0], [0], [1], [0, 0, 1, 1], [], []>} : vector<192x8xbf16>, vector<8x8xbf16>, vector<192x8xf32> -> vector<192x8xf32>
    %55 = arith.addf %51, %54 : vector<192x8xf32>
    %56 = vector.extract_strided_slice %43 {offsets = [16, 0], sizes = [192, 8], strides = [1, 1]} : vector<232x8xbf16> to vector<192x8xbf16>
    %57 = vector.extract_strided_slice %44 {offsets = [24, 0], sizes = [8, 8], strides = [1, 1]} : vector<72x8xbf16> to vector<8x8xbf16>
    %cst_20 = arith.constant dense<0.000000e+00> : vector<192x8xf32>
    %58 = tpu.matmul %56, %57, %cst_20 {dimension_numbers = #tpu.dot_dimension_numbers<[1], [0], [0], [1], [0, 0, 1, 1], [], []>} : vector<192x8xbf16>, vector<8x8xbf16>, vector<192x8xf32> -> vector<192x8xf32>
    %59 = arith.addf %55, %58 : vector<192x8xf32>
    %60 = vector.extract_strided_slice %43 {offsets = [17, 0], sizes = [192, 8], strides = [1, 1]} : vector<232x8xbf16> to vector<192x8xbf16>
    %61 = vector.extract_strided_slice %44 {offsets = [32, 0], sizes = [8, 8], strides = [1, 1]} : vector<72x8xbf16> to vector<8x8xbf16>
    %cst_21 = arith.constant dense<0.000000e+00> : vector<192x8xf32>
    %62 = tpu.matmul %60, %61, %cst_21 {dimension_numbers = #tpu.dot_dimension_numbers<[1], [0], [0], [1], [0, 0, 1, 1], [], []>} : vector<192x8xbf16>, vector<8x8xbf16>, vector<192x8xf32> -> vector<192x8xf32>
    %63 = arith.addf %59, %62 : vector<192x8xf32>
    %64 = vector.extract_strided_slice %43 {offsets = [18, 0], sizes = [192, 8], strides = [1, 1]} : vector<232x8xbf16> to vector<192x8xbf16>
    %65 = vector.extract_strided_slice %44 {offsets = [40, 0], sizes = [8, 8], strides = [1, 1]} : vector<72x8xbf16> to vector<8x8xbf16>
    %cst_22 = arith.constant dense<0.000000e+00> : vector<192x8xf32>
    %66 = tpu.matmul %64, %65, %cst_22 {dimension_numbers = #tpu.dot_dimension_numbers<[1], [0], [0], [1], [0, 0, 1, 1], [], []>} : vector<192x8xbf16>, vector<8x8xbf16>, vector<192x8xf32> -> vector<192x8xf32>
    %67 = arith.addf %63, %66 : vector<192x8xf32>
    %68 = vector.extract_strided_slice %43 {offsets = [32, 0], sizes = [192, 8], strides = [1, 1]} : vector<232x8xbf16> to vector<192x8xbf16>
    %69 = vector.extract_strided_slice %44 {offsets = [48, 0], sizes = [8, 8], strides = [1, 1]} : vector<72x8xbf16> to vector<8x8xbf16>
    %cst_23 = arith.constant dense<0.000000e+00> : vector<192x8xf32>
    %70 = tpu.matmul %68, %69, %cst_23 {dimension_numbers = #tpu.dot_dimension_numbers<[1], [0], [0], [1], [0, 0, 1, 1], [], []>} : vector<192x8xbf16>, vector<8x8xbf16>, vector<192x8xf32> -> vector<192x8xf32>
    %71 = arith.addf %67, %70 : vector<192x8xf32>
    %72 = vector.extract_strided_slice %43 {offsets = [33, 0], sizes = [192, 8], strides = [1, 1]} : vector<232x8xbf16> to vector<192x8xbf16>
    %73 = vector.extract_strided_slice %44 {offsets = [56, 0], sizes = [8, 8], strides = [1, 1]} : vector<72x8xbf16> to vector<8x8xbf16>
    %cst_24 = arith.constant dense<0.000000e+00> : vector<192x8xf32>
    %74 = tpu.matmul %72, %73, %cst_24 {dimension_numbers = #tpu.dot_dimension_numbers<[1], [0], [0], [1], [0, 0, 1, 1], [], []>} : vector<192x8xbf16>, vector<8x8xbf16>, vector<192x8xf32> -> vector<192x8xf32>
    %75 = arith.addf %71, %74 : vector<192x8xf32>
    %76 = vector.extract_strided_slice %43 {offsets = [34, 0], sizes = [192, 8], strides = [1, 1]} : vector<232x8xbf16> to vector<192x8xbf16>
    %77 = vector.extract_strided_slice %44 {offsets = [64, 0], sizes = [8, 8], strides = [1, 1]} : vector<72x8xbf16> to vector<8x8xbf16>
    %cst_25 = arith.constant dense<0.000000e+00> : vector<192x8xf32>
    %78 = tpu.matmul %76, %77, %cst_25 {dimension_numbers = #tpu.dot_dimension_numbers<[1], [0], [0], [1], [0, 0, 1, 1], [], []>} : vector<192x8xbf16>, vector<8x8xbf16>, vector<192x8xf32> -> vector<192x8xf32>
    %79 = arith.addf %75, %78 : vector<192x8xf32>
    %c0_26 = arith.constant 0 : index
    %c0_27 = arith.constant 0 : index
    %80 = vector.load %arg5[%c0_26, %c0_27] : memref<1x8xf32, #tpu.memory_space<vmem>>, vector<1x8xf32>
    %81 = vector.broadcast %80 : vector<1x8xf32> to vector<192x8xf32>
    %82 = arith.addf %79, %81 : vector<192x8xf32>
    %cst_28 = arith.constant 0.000000e+00 : f32
    %83 = vector.broadcast %cst_28 : f32 to vector<192x8xf32>
    %84 = arith.maximumf %82, %83 : vector<192x8xf32>
    %c0_29 = arith.constant 0 : index
    %c0_30 = arith.constant 0 : index
    %c0_31 = arith.constant 0 : index
    %85 = vector.load %arg6[%c0_29, %c0_30, %c0_31] : memref<1x192x8xf32, #tpu.memory_space<vmem>>, vector<1x192x8xf32>
    %86 = vector.shape_cast %85 : vector<1x192x8xf32> to vector<192x8xf32>
    %87 = vector.shape_cast %84 : vector<192x8xf32> to vector<1x192x8xf32>
    tpu.vector_store %arg6[%c0_29, %c0_30, %c0_31], %87 {strides = array<i32>} : memref<1x192x8xf32, #tpu.memory_space<vmem>>, vector<1x192x8xf32>,
    return
  }
  func.func @transform_0(%arg0: i32) -> (i32, i32, i32) {
    %c0_i32 = arith.constant 0 : i32
    %c0_i32_0 = arith.constant 0 : i32
    %c0_i32_1 = arith.constant 0 : i32
    return %arg0, %c0_i32, %c0_i32_0 : i32, i32, i32
  }
  func.func @transform_1(%arg0: i32) -> (i32, i32) {
    %c0_i32 = arith.constant 0 : i32
    %c0_i32_0 = arith.constant 0 : i32
    %c0_i32_1 = arith.constant 0 : i32
    return %c0_i32, %c0_i32_0 : i32, i32
  }
  func.func @transform_2(%arg0: i32) -> (i32, i32) {
    %c0_i32 = arith.constant 0 : i32
    %c0_i32_0 = arith.constant 0 : i32
    %c0_i32_1 = arith.constant 0 : i32
    return %c0_i32, %c0_i32_0 : i32, i32
  }
  func.func @transform_3(%arg0: i32) -> (i32, i32) {
    %c0_i32 = arith.constant 0 : i32
    %c0_i32_0 = arith.constant 0 : i32
    %c0_i32_1 = arith.constant 0 : i32
    return %c0_i32, %c0_i32_0 : i32, i32
  }
  func.func @transform_4(%arg0: i32) -> (i32, i32) {
    %c0_i32 = arith.constant 0 : i32
    %c0_i32_0 = arith.constant 0 : i32
    %c0_i32_1 = arith.constant 0 : i32
    return %c0_i32, %c0_i32_0 : i32, i32
  }
  func.func @transform_5(%arg0: i32) -> (i32, i32, i32) {
    %c0_i32 = arith.constant 0 : i32
    %c0_i32_0 = arith.constant 0 : i32
    %c0_i32_1 = arith.constant 0 : i32
    return %arg0, %c0_i32, %c0_i32_0 : i32, i32, i32
  }
}

</mosaic_0001>

<bundles_post_ra>
// kernel: tpu_custom_call.1
= control target key start
LH: loop header
LB: loop body
LE: loop exit
PB: predicated region body
PF: predicated region fallthrough
CT: control target
= control target key end

     0   :  { %s5769_s18 = smov 0   ;;  %s7777_s0 = inlined_call_operand.vmem [shape: bf16[2,272,4], index: 0, kind: input, shape index: {}]   ;;  %s7778_s1 = inlined_call_operand.vmem [shape: bf16[36,8], index: 1, kind: input, shape index: {}]   ;;  %s7779_s2 = inlined_call_operand.vmem [shape: f32[1,8], index: 2, kind: input, shape index: {}]   ;;  %s7780_s3 = inlined_call_operand.vmem [shape: bf16[72,8], index: 3, kind: input, shape index: {}]   ;;  %s7781_s4 = inlined_call_operand.vmem [shape: f32[1,8], index: 4, kind: input, shape index: {}]   ;;  %s7782_s5 = inlined_call_operand.vmem [shape: f32[2,192,8], index: 5, kind: output, shape index: {}]  }
   0x1 LB: > { %s4147_s19 = sadd.s32 4294967295, %s5735_s18   ;;  %p4151_p0 = scmp.ge.s32.totalorder %s5735_s18, 1  ;;  %s5735_s18 = sphi %s5769_s18, %s15_s18  }
   0x2   : > { %p187_p1 = scmp.lt.s32.totalorder %s5735_s18, 3 }
   0x4   : > { %p188_p2 = pnand %p4151_p0, %p187_p1 }
   0x6   : > { %191 = sbr.rel (%p188_p2) target bundleno = 1586 (0x632), region = 40 }
   0xd   : > { %v260_v0 = vld [vmem:[%s7778_s1] sm:$0xf]  ;;  %p215_p3 = scmp.lt.s32.totalorder %s4147_s19, 1  ;;  %v7800_v1 = vmov 0.0   ;;  %vm5738_vm0 = vmmov 0   ;;  %vm510_vm1 = vcmask 1041408  }
   0xe   : > { %4686 = vmatprep.subr.bf16.mxu0 %v7800_v1  ;;  %v4169_v2 = vcombine.low %v260_v0, %v260_v0  ;;  %4688 = vmatprep.mubr.msk.bf16.mxu0 %vm5738_vm0, %v7800_v1  ;;  %vm340_vm2 = vsmask.f32 7424  ;;  %vm464_vm3 = vcmask 31744   ;;  %v699_v16 = vsel %vm510_vm1, %v260_v0, 0 }
   0xf   : > { %s7887_s19 = smov (!%p215_p3, %s4147_s19), 1  ;;  %5478 = vmatprep.subr.bf16.mxu1 %v7800_v1  ;;  %4890 = vmatprep.mubr.msk.bf16.mxu1 %vm5738_vm0, %v7800_v1  ;;  %vm853_vm4 = vcmask 1046528   ;;  %vm2520_vm5 = vcmask 1043456   ;;  %vm2483_vm6 = vcmask 64512  }
  0x10   : > { %v463_v3 = vrot.slane %v4169_v2, 2  ;;  %s5681_s22 = smul.u32 136, %s7887_s19 }
  0x11   : > { %s5682_s6 = smul.u32 192, %s7887_s19 }
  0x12   : > { %v512_v4 = vsel %vm510_vm1, %v463_v3, 0  ;;  %s5793_s25 = scalar_lea.vmem %s7777_s0, %s5681_s22 }
  0x13   : > { %4687 = vmatpush3.bf16.msra.mxu0 %v512_v4  ;;  %v5797_v5 = vld [vmem:[%s5793_s25] sm:$0xff]   ;;  %v5800_v6 = vld [vmem:[%s5793_s25 + $0x8] sm:$0xff]   ;;  %v5806_v10 = vld [vmem:[%s5793_s25 + $0x10] sm:$0xff]   ;;  %s7701_s11 = scalar_lea.vmem %s7782_s5, %s5682_s6 }
  0x14   : > { %4748 = vmatprep.subr.bf16.mxu0 %v7800_v1  ;;  %v342_v7 = vshrl.u32 %v5797_v5, 16  ;;  %v344_v8 = vshll.u32 %v5797_v5, 16  ;;  %v349_v9 = vshll.u32 %v5800_v6, 16  ;;  %v353_v14 = vshrl.u32 %v5800_v6, 16  ;;  %v5816_v20 = vld [vmem:[%s5793_s25 + $0x18] sm:$0xff]   ;;  %v5829_v26 = vld [vmem:[%s5793_s25 + $0x20] sm:$0xff]  }
  0x15   : > { %v357_v15 = vshll.u32 %v5806_v10, 16  ;;  %v361_v22 = vshrl.u32 %v5806_v10, 16  ;;  %v365_v23 = vshll.u32 %v5816_v20, 16  ;;  %v369_v28 = vshrl.u32 %v5816_v20, 16  ;;  %v5841_v32 = vld [vmem:[%s5793_s25 + $0x28] sm:$0xff]   ;;  %v5853_v38 = vld [vmem:[%s5793_s25 + $0x30] sm:$0xff]  }
  0x16   : > { %v346_v11 = vrot.slane %v344_v8, 1  ;;  %v351_v12 = vrot.slane %v349_v9, 1  ;;  %v373_v29 = vshll.u32 %v5829_v26, 16  ;;  %v377_v34 = vshrl.u32 %v5829_v26, 16  ;;  %v5865_v44 = vld [vmem:[%s5793_s25 + $0x38] sm:$0xff]   ;;  %v5877_v50 = vld [vmem:[%s5793_s25 + $0x40] sm:$0xff]  }
  0x17   : > { %v359_v19 = vrot.slane %v357_v15, 1  ;;  %v367_v25 = vrot.slane %v365_v23, 1  ;;  %v381_v35 = vshll.u32 %v5841_v32, 16  ;;  %v385_v40 = vshrl.u32 %v5841_v32, 16  ;;  %v5889_v56 = vld [vmem:[%s5793_s25 + $0x48] sm:$0xff]   ;;  %v5901_v62 = vld [vmem:[%s5793_s25 + $0x50] sm:$0xff]  }
  0x18   : > { %v347_v13 = vor.u32 %v346_v11, %v342_v7  ;;  %v355_v18 = vor.u32 %v353_v14, %v351_v12  ;;  %v375_v31 = vrot.slane %v373_v29, 1  ;;  %v389_v41 = vshll.u32 %v5853_v38, 16  ;;  %v5913_v7 = vld [vmem:[%s5793_s25 + $0x58] sm:$0xff]   ;;  %v5925_v14 = vld [vmem:[%s5793_s25 + $0x60] sm:$0xff]   ;;  %v255_v29 = vld [vmem:[%s5793_s25 + $0x74] sm:$0xf] }
  0x19   : > { %v363_v24 = vor.u32 %v361_v22, %v359_v19  ;;  %v371_v30 = vor.u32 %v369_v28, %v367_v25  ;;  %v383_v37 = vrot.slane %v381_v35, 1  ;;  %v393_v46 = vshrl.u32 %v5853_v38, 16  ;;  %v5937_v22 = vld [vmem:[%s5793_s25 + $0x68] sm:$0xff]   ;;  %v5945_v28 = vld [vmem:[%s5793_s25 + $0x70] sm:$0xf] }
  0x1a   : > { %v352_v17 = vsel %vm340_vm2, %v347_v13, %v351_v12  ;;  %v5820_v21 = vsel %vm340_vm2, %v355_v18, %v359_v19  ;;  %v379_v36 = vor.u32 %v377_v34, %v375_v31  ;;  %v391_v43 = vrot.slane %v389_v41, 1 }
  0x1b   : > { %4689 = vmatmul.mubr.msk.bf16.vlgmr.msra.gmra.mrb[0].mxu0 %vm464_vm3, %v352_v17  ;;  %v5832_v27 = vsel %vm340_vm2, %v363_v24, %v367_v25  ;;  %v5844_v33 = vsel %vm340_vm2, %v371_v30, %v375_v31  ;;  %v387_v42 = vor.u32 %v385_v40, %v383_v37  ;;  %v397_v47 = vshll.u32 %v5865_v44, 16 }
  0x1c   : > { %4749 = vmatpush3.bf16.msra.mxu0 %v699_v16  ;;  %4692 = vmatprep.mubr.msk.bf16.mxu0 %vm5738_vm0, %v7800_v1  ;;  %v5856_v39 = vsel %vm340_vm2, %v379_v36, %v383_v37  ;;  %v395_v48 = vor.u32 %v393_v46, %v391_v43  ;;  %v401_v52 = vshrl.u32 %v5865_v44, 16  ;;  %v405_v53 = vshll.u32 %v5877_v50, 16  ;;  %v261_v46 = vld [vmem:[%s7778_s1 + $0x4] sm:$0xf] }
  0x1d   : > { %4810 = vmatprep.subr.bf16.mxu0 %v7800_v1  ;;  %v5868_v45 = vsel %vm340_vm2, %v387_v42, %v391_v43  ;;  %v399_v49 = vrot.slane %v397_v47, 1  ;;  %v409_v58 = vshrl.u32 %v5877_v50, 16  ;;  %v413_v59 = vshll.u32 %v5889_v56, 16 }
  0x1e   : > { %v407_v55 = vrot.slane %v405_v53, 1  ;;  %v417_v0 = vshrl.u32 %v5889_v56, 16  ;;  %v421_v2 = vshll.u32 %v5901_v62, 16  ;;  %v425_v9 = vshrl.u32 %v5901_v62, 16 }
  0x1f   : > { %v5880_v51 = vsel %vm340_vm2, %v395_v48, %v399_v49  ;;  %v403_v54 = vor.u32 %v401_v52, %v399_v49  ;;  %v415_v61 = vrot.slane %v413_v59, 1  ;;  %v429_v11 = vshll.u32 %v5913_v7, 16 }
  0x20   : > { %v411_v60 = vor.u32 %v409_v58, %v407_v55  ;;  %v423_v4 = vrot.slane %v421_v2, 1  ;;  %v433_v16 = vshrl.u32 %v5913_v7, 16  ;;  %v437_v17 = vshll.u32 %v5925_v14, 16 }
  0x21   : > { %v5892_v57 = vsel %vm340_vm2, %v403_v54, %v407_v55  ;;  %v419_v3 = vor.u32 %v417_v0, %v415_v61  ;;  %v431_v13 = vrot.slane %v429_v11, 1  ;;  %v441_v24 = vshrl.u32 %v5925_v14, 16 }
  0x22   : > { %v5904_v63 = vsel %vm340_vm2, %v411_v60, %v415_v61  ;;  %v427_v12 = vor.u32 %v425_v9, %v423_v4  ;;  %v439_v19 = vrot.slane %v437_v17, 1  ;;  %v445_v25 = vshll.u32 %v5937_v22, 16 }
  0x23   : > { %4693 = vmatmul.mubr.msk.bf16.gmra.mrb[4].mxu0 %vm464_vm3, %v5820_v21  ;;  %v5916_v8 = vsel %vm340_vm2, %v419_v3, %v423_v4  ;;  %v435_v18 = vor.u32 %v433_v16, %v431_v13  ;;  %v5953_v34 = vcombine.low %v5945_v28, %v255_v29  ;;  %v449_v36 = vshrl.u32 %v5937_v22, 16  ;;  %v6089_v3 = vld [vmem:[%s5793_s25 + $0x78] sm:$0xf] }
  0x24   : > { %4696 = vmatprep.mubr.msk.bf16.mxu0 %vm5738_vm0, %v7800_v1  ;;  %v5928_v15 = vsel %vm340_vm2, %v427_v12, %v431_v13  ;;  %v443_v30 = vor.u32 %v441_v24, %v439_v19  ;;  %v447_v31 = vrot.slane %v445_v25, 1  ;;  %v4217_v48 = vcombine.low %v261_v46, %v261_v46 }
  0x25   : > { %v5940_v23 = vsel %vm340_vm2, %v435_v18, %v439_v19  ;;  %7803 = vst [vmem:[#allocation2_spill] sm:$0xff] %v5953_v34  ;;  %v453_v37 = vshll.u32 %v5953_v34, 16  ;;  %v457_v43 = vshrl.u32 %v5953_v34, 16  ;;  %v929_v53 = vsel %vm510_vm1, %v261_v46, 0 }
  0x26   : > { %v5956_v35 = vsel %vm340_vm2, %v443_v30, %v447_v31  ;;  %v451_v40 = vor.u32 %v449_v36, %v447_v31  ;;  %v1118_v49 = vrot.slane %v4217_v48, 2  ;;  %v4216_v4 = vcombine.low %v6089_v3, %v6089_v3 }
  0x27   : > { %v455_v41 = vrot.slane %v453_v37, 1  ;;  %v4185_v12 = vcombine.low %v5945_v28, %v5945_v28  ;;  %v854_v17 = vrot.slane %v5797_v5, 1  ;;  %v855_v18 = vrot.slane %v5800_v6, 1 }
  0x28   : > { %v5982_v52 = vsel %vm510_vm1, %v1118_v49, 0 }
  0x29   : > { %v5965_v42 = vsel %vm340_vm2, %v451_v40, %v455_v41  ;;  %v5975_v47 = vor.u32 %v457_v43, %v455_v41  ;;  %5479 = vmatpush3.bf16.msra.mxu1 %v5982_v52  ;;  %v856_v28 = vsel %vm853_vm4, %v854_v17, %v855_v18  ;;  %v859_v41 = vrot.slane %v5816_v20, 1 }
  0x2a   : > { %4996 = vmatprep.subr.bf16.mxu1 %v7800_v1 }
  0x2b   : > { %4697 = vmatmul.mubr.msk.bf16.gmra.mrb[8].mxu0 %vm464_vm3, %v5832_v27 }
  0x2c   : > { %4700 = vmatprep.mubr.msk.bf16.mxu0 %vm5738_vm0, %v7800_v1  ;;  %4891 = vmatmul.mubr.msk.bf16.vlgmr.msra.gmra.mrb[0].mxu1 %vm464_vm3, %v5841_v32 }
  0x2d   : > { %4894 = vmatprep.mubr.msk.bf16.mxu1 %vm5738_vm0, %v7800_v1 }
  0x33   : > { %4701 = vmatmul.mubr.msk.bf16.gmra.mrb[12].mxu0 %vm464_vm3, %v5844_v33 }
  0x34   : > { %4704 = vmatprep.mubr.msk.bf16.mxu0 %vm5738_vm0, %v7800_v1  ;;  %4895 = vmatmul.mubr.msk.bf16.gmra.mrb[4].mxu1 %vm464_vm3, %v5853_v38 }
  0x35   : > { %4898 = vmatprep.mubr.msk.bf16.mxu1 %vm5738_vm0, %v7800_v1 }
  0x3b   : > { %4705 = vmatmul.mubr.msk.bf16.gmra.mrb[16].mxu0 %vm464_vm3, %v5856_v39 }
  0x3c   : > { %4708 = vmatprep.mubr.msk.bf16.mxu0 %vm5738_vm0, %v7800_v1  ;;  %4899 = vmatmul.mubr.msk.bf16.gmra.mrb[8].mxu1 %vm464_vm3, %v5865_v44 }
  0x3d   : > { %4902 = vmatprep.mubr.msk.bf16.mxu1 %vm5738_vm0, %v7800_v1 }
  0x43   : > { %4709 = vmatmul.mubr.msk.bf16.gmra.mrb[20].mxu0 %vm464_vm3, %v5868_v45 }
  0x44   : > { %4712 = vmatprep.mubr.msk.bf16.mxu0 %vm5738_vm0, %v7800_v1  ;;  %4903 = vmatmul.mubr.msk.bf16.gmra.mrb[12].mxu1 %vm464_vm3, %v5877_v50 }
  0x45   : > { %4906 = vmatprep.mubr.msk.bf16.mxu1 %vm5738_vm0, %v7800_v1 }
  0x4b   : > { %4713 = vmatmul.mubr.msk.bf16.gmra.mrb[24].mxu0 %vm464_vm3, %v5880_v51 }
  0x4c   : > { %4716 = vmatprep.mubr.msk.bf16.mxu0 %vm5738_vm0, %v7800_v1  ;;  %4907 = vmatmul.mubr.msk.bf16.gmra.mrb[16].mxu1 %vm464_vm3, %v5889_v56 }
  0x4d   : > { %4910 = vmatprep.mubr.msk.bf16.mxu1 %vm5738_vm0, %v7800_v1 }
  0x53   : > { %4717 = vmatmul.mubr.msk.bf16.gmra.mrb[28].mxu0 %vm464_vm3, %v5892_v57 }
  0x54   : > { %4720 = vmatprep.mubr.msk.bf16.mxu0 %vm5738_vm0, %v7800_v1  ;;  %4911 = vmatmul.mubr.msk.bf16.gmra.mrb[20].mxu1 %vm464_vm3, %v5901_v62 }
  0x55   : > { %4914 = vmatprep.mubr.msk.bf16.mxu1 %vm5738_vm0, %v7800_v1 }
  0x5b   : > { %4721 = vmatmul.mubr.msk.bf16.gmra.mrb[32].mxu0 %vm464_vm3, %v5904_v63 }
  0x5c   : > { %4724 = vmatprep.mubr.msk.bf16.mxu0 %vm5738_vm0, %v7800_v1  ;;  %4915 = vmatmul.mubr.msk.bf16.gmra.mrb[24].mxu1 %vm464_vm3, %v5913_v7 }
  0x5d   : > { %4918 = vmatprep.mubr.msk.bf16.mxu1 %vm5738_vm0, %v7800_v1 }
  0x63   : > { %4725 = vmatmul.mubr.msk.bf16.gmra.mrb[36].mxu0 %vm464_vm3, %v5916_v8 }
  0x64   : > { %4728 = vmatprep.mubr.msk.bf16.mxu0 %vm5738_vm0, %v7800_v1  ;;  %4919 = vmatmul.mubr.msk.bf16.gmra.mrb[28].mxu1 %vm464_vm3, %v5925_v14 }
  0x65   : > { %4922 = vmatprep.mubr.msk.bf16.mxu1 %vm5738_vm0, %v7800_v1 }
  0x6b   : > { %4729 = vmatmul.mubr.msk.bf16.gmra.mrb[40].mxu0 %vm464_vm3, %v5928_v15 }
  0x6c   : > { %4732 = vmatprep.mubr.msk.bf16.mxu0 %vm5738_vm0, %v7800_v1  ;;  %4923 = vmatmul.mubr.msk.bf16.gmra.mrb[32].mxu1 %vm464_vm3, %v5937_v22 }
  0x6d   : > { %4926 = vmatprep.mubr.msk.bf16.mxu1 %vm5738_vm0, %v7800_v1 }
  0x73   : > { %4733 = vmatmul.mubr.msk.bf16.gmra.mrb[44].mxu0 %vm464_vm3, %v5940_v23 }
  0x74   : > { %4736 = vmatprep.mubr.msk.bf16.mxu0 %vm5738_vm0, %v7800_v1  ;;  %4927 = vmatmul.mubr.msk.bf16.gmra.mrb[36].mxu1 %vm464_vm3, %v5953_v34 }
  0x75   : > { %4930 = vmatprep.mubr.msk.bf16.mxu1 %vm5738_vm0, %v7800_v1 }
  0x7b   : > { %4737 = vmatmul.mubr.msk.bf16.gmra.mrb[48].mxu0 %vm464_vm3, %v5956_v35 }
  0x7c   : > { %4740 = vmatprep.mubr.msk.bf16.mxu0 %vm5738_vm0, %v7800_v1  ;;  %4931 = vmatmul.mubr.msk.bf16.gmra.mrb[40].mxu1 %vm464_vm3, %v4216_v4 }
  0x7d   : > { %4998 = vmatprep.mubr.msk.bf16.mxu1 %vm5738_vm0, %v7800_v1 }
  0x83   : > { %4741 = vmatmul.mubr.msk.bf16.gmra.mrb[52].mxu0 %vm464_vm3, %v5965_v42 }
  0x84   : > { %4744 = vmatprep.mubr.msk.bf16.mxu0 %vm5738_vm0, %v7800_v1 }
  0x8b   : > { %4745 = vmatmul.mubr.msk.bf16.gmra.mrb[56].mxu0 %vm464_vm3, %v5975_v47 }
  0x8c   : > { %4750 = vmatprep.mubr.msk.bf16.mxu0 %vm5738_vm0, %v7800_v1 }
  0x93   : > { %4751 = vmatmul.mubr.msk.bf16.vlgmr.msra.gmra.mrb[60].mxu0 %vm464_vm3, %v5797_v5  ;;  %v857_v5 = vrot.slane %v5806_v10, 1 }
  0x94   : > { %4811 = vmatpush3.bf16.msra.mxu0 %v929_v53  ;;  %4754 = vmatprep.mubr.msk.bf16.mxu0 %vm5738_vm0, %v7800_v1 }
  0x95   : > { %4872 = vmatprep.subr.bf16.mxu0 %v7800_v1  ;;  %v858_v37 = vsel %vm853_vm4, %v855_v18, %v857_v5  ;;  %v6136_v49 = vsel %vm853_vm4, %v857_v5, %v859_v41  ;;  %v863_v18 = vrot.slane %v5841_v32, 1 }
  0x96   : > { %7804 = vst [vmem:[#allocation3_spill] sm:$0xff] %v6136_v49 }
  0x9b   : > { %4755 = vmatmul.mubr.msk.bf16.gmra.mrb[64].mxu0 %vm464_vm3, %v5800_v6 }
  0x9c   : > { %4758 = vmatprep.mubr.msk.bf16.mxu0 %vm5738_vm0, %v7800_v1 }
  0xa3   : > { %4759 = vmatmul.mubr.msk.bf16.gmra.mrb[68].mxu0 %vm464_vm3, %v5806_v10 }
  0xa4   : > { %4762 = vmatprep.mubr.msk.bf16.mxu0 %vm5738_vm0, %v7800_v1 }
  0xab   : > { %4763 = vmatmul.mubr.msk.bf16.gmra.mrb[72].mxu0 %vm464_vm3, %v5816_v20 }
  0xac   : > { %4766 = vmatprep.mubr.msk.bf16.mxu0 %vm5738_vm0, %v7800_v1 }
  0xb3   : > { %4767 = vmatmul.mubr.msk.bf16.gmra.mrb[76].mxu0 %vm464_vm3, %v5829_v26 }
  0xb4   : > { %4770 = vmatprep.mubr.msk.bf16.mxu0 %vm5738_vm0, %v7800_v1 }
  0xbb   : > { %4771 = vmatmul.mubr.msk.bf16.gmra.mrb[80].mxu0 %vm464_vm3, %v5841_v32  ;;  %v865_v32 = vrot.slane %v5853_v38, 1 }
  0xbc   : > { %4774 = vmatprep.mubr.msk.bf16.mxu0 %vm5738_vm0, %v7800_v1 }
  0xc3   : > { %4775 = vmatmul.mubr.msk.bf16.gmra.mrb[84].mxu0 %vm464_vm3, %v5853_v38  ;;  %v867_v38 = vrot.slane %v5865_v44, 1 }
  0xc4   : > { %4778 = vmatprep.mubr.msk.bf16.mxu0 %vm5738_vm0, %v7800_v1 }
  0xcb   : > { %4779 = vmatmul.mubr.msk.bf16.gmra.mrb[88].mxu0 %vm464_vm3, %v5865_v44  ;;  %v869_v44 = vrot.slane %v5877_v50, 1 }
  0xcc   : > { %4782 = vmatprep.mubr.msk.bf16.mxu0 %vm5738_vm0, %v7800_v1 }
  0xd3   : > { %4783 = vmatmul.mubr.msk.bf16.gmra.mrb[92].mxu0 %vm464_vm3, %v5877_v50  ;;  %v871_v50 = vrot.slane %v5889_v56, 1 }
  0xd4   : > { %4786 = vmatprep.mubr.msk.bf16.mxu0 %vm5738_vm0, %v7800_v1 }
  0xdb   : > { %4787 = vmatmul.mubr.msk.bf16.gmra.mrb[96].mxu0 %vm464_vm3, %v5889_v56  ;;  %v873_v56 = vrot.slane %v5901_v62, 1 }
  0xdc   : > { %4790 = vmatprep.mubr.msk.bf16.mxu0 %vm5738_vm0, %v7800_v1 }
  0xe3   : > { %4791 = vmatmul.mubr.msk.bf16.gmra.mrb[100].mxu0 %vm464_vm3, %v5901_v62  ;;  %v875_v62 = vrot.slane %v5913_v7, 1 }
  0xe4   : > { %4794 = vmatprep.mubr.msk.bf16.mxu0 %vm5738_vm0, %v7800_v1 }
  0xeb   : > { %4795 = vmatmul.mubr.msk.bf16.gmra.mrb[104].mxu0 %vm464_vm3, %v5913_v7  ;;  %v877_v7 = vrot.slane %v5925_v14, 1 }
  0xec   : > { %4798 = vmatprep.mubr.msk.bf16.mxu0 %vm5738_vm0, %v7800_v1 }
  0xee   : > { %v6076_v54 = vpop.f32.mrb[0].mxu0 }
  0xef   : > { %v4690_v55 = vpop.f32.mrb[1].mxu0 }
  0xf0   : > { %v6078_v58 = vpop.f32.mrb[2].mxu0 }
  0xf1   : > { %v4691_v59 = vpop.f32.mrb[3].mxu0 }
  0xf2   : > { %v861_v59 = vrot.slane %v5829_v26, 1 }
  0xf3   : > { %4799 = vmatmul.mubr.msk.bf16.gmra.mrb[108].mxu0 %vm464_vm3, %v5925_v14  ;;  %v879_v14 = vrot.slane %v5937_v22, 1 }
  0xf4   : > { %4802 = vmatprep.mubr.msk.bf16.mxu0 %vm5738_vm0, %v7800_v1  ;;  %v6172_v5 = vsel %vm853_vm4, %v861_v59, %v863_v18 }
  0xf5   : > { %7806 = vst [vmem:[#allocation5_spill] sm:$0xff] %v6172_v5 }
  0xf6   : > { %v6084_v60 = vpop.f32.mrb[4].mxu0 }
  0xf7   : > { %v4694_v61 = vpop.f32.mrb[5].mxu0 }
  0xf8   : > { %v6086_v0 = vpop.f32.mrb[6].mxu0 }
  0xf9   : > { %v4695_v2 = vpop.f32.mrb[7].mxu0 }
  0xfb   : > { %4803 = vmatmul.mubr.msk.bf16.gmra.mrb[112].mxu0 %vm464_vm3, %v5937_v22  ;;  %v881_v22 = vrot.slane %v5953_v34, 1 }
  0xfc   : > { %4806 = vmatprep.mubr.msk.bf16.mxu0 %vm5738_vm0, %v7800_v1 }
  0xfe   : > { %v6098_v9 = vpop.f32.mrb[8].mxu0 }
  0xff   : > { %v4698_v11 = vpop.f32.mrb[9].mxu0 }
 0x100   : > { %v6104_v13 = vpop.f32.mrb[10].mxu0 }
 0x101   : > { %v4699_v16 = vpop.f32.mrb[11].mxu0 }
 0x103   : > { %4807 = vmatmul.mubr.msk.bf16.gmra.mrb[116].mxu0 %vm464_vm3, %v4185_v12  ;;  %v6155_v12 = vsel %vm853_vm4, %v859_v41, %v861_v59 }
 0x104   : > { %4812 = vmatprep.mubr.msk.bf16.mxu0 %vm5738_vm0, %v7800_v1  ;;  %7805 = vst [vmem:[#allocation4_spill] sm:$0xff] %v6155_v12 }
 0x106   : > { %v6111_v19 = vpop.f32.mrb[12].mxu0 }
 0x107   : > { %v4702_v24 = vpop.f32.mrb[13].mxu0 }
 0x108   : > { %v6113_v25 = vpop.f32.mrb[14].mxu0 }
 0x109   : > { %v4703_v29 = vpop.f32.mrb[15].mxu0 }
 0x10b   : > { %4813 = vmatmul.mubr.msk.bf16.vlgmr.msra.gmra.mrb[120].mxu0 %vm464_vm3, %v856_v28 }
 0x10c   : > { %4873 = vmatpush3.bf16.msra.mxu0 %v5982_v52  ;;  %4816 = vmatprep.mubr.msk.bf16.mxu0 %vm5738_vm0, %v7800_v1  ;;  %v6141_v52 = vld [vmem:[%s7778_s1 + $0x8] sm:$0xf] }
 0x10d   : > { %4934 = vmatprep.subr.bf16.mxu0 %v7800_v1  ;;  %v4249_v55 = vcombine.low %v6141_v52, %v6141_v52 }
 0x10e   : > { %v6122_v30 = vpop.f32.mrb[16].mxu0 }
 0x10f   : > { %v4706_v31 = vpop.f32.mrb[17].mxu0  ;;  %v1514_v4 = vrot.slane %v4249_v55, 2 }
 0x110   : > { %v6124_v36 = vpop.f32.mrb[18].mxu0 }
 0x111   : > { %v4707_v40 = vpop.f32.mrb[19].mxu0  ;;  %v1522_v17 = vsel %vm510_vm1, %v1514_v4, 0  ;;  %v6204_v4 = vsel %vm853_vm4, %v865_v32, %v867_v38 }
 0x112   : > { %4997 = vmatpush3.bf16.msra.mxu1 %v1522_v17  ;;  %7808 = vst [vmem:[#allocation7_spill] sm:$0xff] %v6204_v4 }
 0x113   : > { %4817 = vmatmul.mubr.msk.bf16.gmra.mrb[124].mxu0 %vm464_vm3, %v858_v37  ;;  %5120 = vmatprep.subr.bf16.mxu1 %v7800_v1 }
 0x114   : > { %4820 = vmatprep.mubr.msk.bf16.mxu0 %vm5738_vm0, %v7800_v1 }
 0x115   : > { %4999 = vmatmul.mubr.msk.bf16.vlgmr.msra.gmra.mrb[44].mxu1 %vm464_vm3, %v858_v37 }
 0x116   : > { %v6131_v43 = vpop.f32.mrb[20].mxu0  ;;  %5002 = vmatprep.mubr.msk.bf16.mxu1 %vm5738_vm0, %v7800_v1 }
 0x117   : > { %v4710_v46 = vpop.f32.mrb[21].mxu0 }
 0x118   : > { %v6133_v48 = vpop.f32.mrb[22].mxu0  ;;  %v6188_v46 = vsel %vm853_vm4, %v863_v18, %v865_v32 }
 0x119   : > { %v4711_v53 = vpop.f32.mrb[23].mxu0  ;;  %7807 = vst [vmem:[#allocation6_spill] sm:$0xff] %v6188_v46 }
 0x11b   : > { %4821 = vmatmul.mubr.msk.bf16.gmra.mrb[128].mxu0 %vm464_vm3, %v6136_v49 }
 0x11c   : > { %4824 = vmatprep.mubr.msk.bf16.mxu0 %vm5738_vm0, %v7800_v1 }
 0x11d   : > { %5003 = vmatmul.mubr.msk.bf16.gmra.mrb[48].mxu1 %vm464_vm3, %v6136_v49 }
 0x11e   : > { %v6150_v61 = vpop.f32.mrb[24].mxu0  ;;  %5006 = vmatprep.mubr.msk.bf16.mxu1 %vm5738_vm0, %v7800_v1 }
 0x11f   : > { %v4714_v2 = vpop.f32.mrb[25].mxu0 }
 0x120   : > { %v6152_v11 = vpop.f32.mrb[26].mxu0 }
 0x121   : > { %v4715_v16 = vpop.f32.mrb[27].mxu0 }
 0x123   : > { %4825 = vmatmul.mubr.msk.bf16.gmra.mrb[132].mxu0 %vm464_vm3, %v6155_v12 }
 0x124   : > { %4828 = vmatprep.mubr.msk.bf16.mxu0 %vm5738_vm0, %v7800_v1 }
 0x125   : > { %5007 = vmatmul.mubr.msk.bf16.gmra.mrb[52].mxu1 %vm464_vm3, %v6155_v12 }
 0x126   : > { %v6165_v24 = vpop.f32.mrb[28].mxu0  ;;  %5010 = vmatprep.mubr.msk.bf16.mxu1 %vm5738_vm0, %v7800_v1 }
 0x127   : > { %v4718_v28 = vpop.f32.mrb[29].mxu0 }
 0x128   : > { %v6169_v29 = vpop.f32.mrb[30].mxu0 }
 0x129   : > { %v4719_v31 = vpop.f32.mrb[31].mxu0 }
 0x12a   : > { %v6220_v31 = vsel %vm853_vm4, %v867_v38, %v869_v44 }
 0x12b   : > { %4829 = vmatmul.mubr.msk.bf16.gmra.mrb[136].mxu0 %vm464_vm3, %v6172_v5  ;;  %7809 = vst [vmem:[#allocation8_spill] sm:$0xff] %v6220_v31 }
 0x12c   : > { %4832 = vmatprep.mubr.msk.bf16.mxu0 %vm5738_vm0, %v7800_v1 }
 0x12d   : > { %5011 = vmatmul.mubr.msk.bf16.gmra.mrb[56].mxu1 %vm464_vm3, %v6172_v5 }
 0x12e   : > { %v6181_v37 = vpop.f32.mrb[32].mxu0  ;;  %5014 = vmatprep.mubr.msk.bf16.mxu1 %vm5738_vm0, %v7800_v1 }
 0x12f   : > { %v4722_v40 = vpop.f32.mrb[33].mxu0 }
 0x130   : > { %v6185_v41 = vpop.f32.mrb[34].mxu0 }
 0x131   : > { %v4723_v53 = vpop.f32.mrb[35].mxu0 }
 0x133   : > { %4833 = vmatmul.mubr.msk.bf16.gmra.mrb[140].mxu0 %vm464_vm3, %v6188_v46 }
 0x134   : > { %4836 = vmatprep.mubr.msk.bf16.mxu0 %vm5738_vm0, %v7800_v1 }
 0x135   : > { %5015 = vmatmul.mubr.msk.bf16.gmra.mrb[60].mxu1 %vm464_vm3, %v6188_v46 }
 0x136   : > { %v6197_v55 = vpop.f32.mrb[36].mxu0  ;;  %5018 = vmatprep.mubr.msk.bf16.mxu1 %vm5738_vm0, %v7800_v1 }
 0x137   : > { %v4726_v59 = vpop.f32.mrb[37].mxu0 }
 0x138   : > { %v6201_v2 = vpop.f32.mrb[38].mxu0  ;;  %v6236_v59 = vsel %vm853_vm4, %v869_v44, %v871_v50 }
 0x139   : > { %v4727_v16 = vpop.f32.mrb[39].mxu0  ;;  %7810 = vst [vmem:[#allocation9_spill] sm:$0xff] %v6236_v59 }
 0x13b   : > { %4837 = vmatmul.mubr.msk.bf16.gmra.mrb[144].mxu0 %vm464_vm3, %v6204_v4 }
 0x13c   : > { %4840 = vmatprep.mubr.msk.bf16.mxu0 %vm5738_vm0, %v7800_v1 }
 0x13d   : > { %5019 = vmatmul.mubr.msk.bf16.gmra.mrb[64].mxu1 %vm464_vm3, %v6204_v4 }
 0x13e   : > { %v6213_v17 = vpop.f32.mrb[40].mxu0  ;;  %5022 = vmatprep.mubr.msk.bf16.mxu1 %vm5738_vm0, %v7800_v1 }
 0x13f   : > { %v4730_v18 = vpop.f32.mrb[41].mxu0 }
 0x140   : > { %v6217_v28 = vpop.f32.mrb[42].mxu0 }
 0x141   : > { %v4731_v32 = vpop.f32.mrb[43].mxu0 }
 0x143   : > { %4841 = vmatmul.mubr.msk.bf16.gmra.mrb[148].mxu0 %vm464_vm3, %v6220_v31 }
 0x144   : > { %4844 = vmatprep.mubr.msk.bf16.mxu0 %vm5738_vm0, %v7800_v1 }
 0x145   : > { %5023 = vmatmul.mubr.msk.bf16.gmra.mrb[68].mxu1 %vm464_vm3, %v6220_v31 }
 0x146   : > { %v6229_v40 = vpop.f32.mrb[44].mxu0  ;;  %5026 = vmatprep.mubr.msk.bf16.mxu1 %vm5738_vm0, %v7800_v1 }
 0x147   : > { %v4734_v53 = vpop.f32.mrb[45].mxu0 }
 0x148   : > { %v6233_v38 = vpop.f32.mrb[46].mxu0  ;;  %v6252_v53 = vsel %vm853_vm4, %v871_v50, %v873_v56 }
 0x149   : > { %v4735_v16 = vpop.f32.mrb[47].mxu0  ;;  %7811 = vst [vmem:[#allocation10_spill] sm:$0xff] %v6252_v53 }
 0x14b   : > { %4845 = vmatmul.mubr.msk.bf16.gmra.mrb[152].mxu0 %vm464_vm3, %v6236_v59 }
 0x14c   : > { %4848 = vmatprep.mubr.msk.bf16.mxu0 %vm5738_vm0, %v7800_v1 }
 0x14d   : > { %5027 = vmatmul.mubr.msk.bf16.gmra.mrb[72].mxu1 %vm464_vm3, %v6236_v59 }
 0x14e   : > { %v6245_v18 = vpop.f32.mrb[48].mxu0  ;;  %5030 = vmatprep.mubr.msk.bf16.mxu1 %vm5738_vm0, %v7800_v1 }
 0x14f   : > { %v4738_v32 = vpop.f32.mrb[49].mxu0 }
 0x150   : > { %v6249_v44 = vpop.f32.mrb[50].mxu0 }
 0x151   : > { %v4739_v16 = vpop.f32.mrb[51].mxu0 }
 0x152   : > { %v6268_v16 = vsel %vm853_vm4, %v873_v56, %v875_v62 }
 0x153   : > { %4849 = vmatmul.mubr.msk.bf16.gmra.mrb[156].mxu0 %vm464_vm3, %v6252_v53  ;;  %7812 = vst [vmem:[#allocation11_spill] sm:$0xff] %v6268_v16 }
 0x154   : > { %4852 = vmatprep.mubr.msk.bf16.mxu0 %vm5738_vm0, %v7800_v1 }
 0x155   : > { %5031 = vmatmul.mubr.msk.bf16.gmra.mrb[76].mxu1 %vm464_vm3, %v6252_v53 }
 0x156   : > { %v6261_v4 = vpop.f32.mrb[52].mxu0  ;;  %5034 = vmatprep.mubr.msk.bf16.mxu1 %vm5738_vm0, %v7800_v1 }
 0x157   : > { %v4742_v32 = vpop.f32.mrb[53].mxu0 }
 0x158   : > { %v6265_v50 = vpop.f32.mrb[54].mxu0 }
 0x159   : > { %v4743_v46 = vpop.f32.mrb[55].mxu0 }
 0x15a   : > { %v6282_v46 = vsel %vm853_vm4, %v875_v62, %v877_v7 }
 0x15b   : > { %4853 = vmatmul.mubr.msk.bf16.gmra.mrb[160].mxu0 %vm464_vm3, %v6268_v16  ;;  %7813 = vst [vmem:[#allocation12_spill] sm:$0xff] %v6282_v46 }
 0x15c   : > { %4856 = vmatprep.mubr.msk.bf16.mxu0 %vm5738_vm0, %v7800_v1 }
 0x15d   : > { %5035 = vmatmul.mubr.msk.bf16.gmra.mrb[80].mxu1 %vm464_vm3, %v6268_v16 }
 0x15e   : > { %v6277_v31 = vpop.f32.mrb[56].mxu0  ;;  %5038 = vmatprep.mubr.msk.bf16.mxu1 %vm5738_vm0, %v7800_v1 }
 0x15f   : > { %v4746_v32 = vpop.f32.mrb[57].mxu0 }
 0x160   : > { %v663_v56 = vpop.f32.mrb[58].mxu0 }
 0x161   : > { %v4747_v5 = vpop.f32.mrb[59].mxu0  ;;  %v6297_v56 = vsel %vm853_vm4, %v877_v7, %v879_v14  ;;  %v6315_v7 = vsel %vm853_vm4, %v879_v14, %v881_v22 }
 0x162   : > { %7814 = vst [vmem:[#allocation13_spill] sm:$0xff] %v6297_v56  ;;  %7815 = vst [vmem:[#allocation14_spill] sm:$0xff] %v6315_v7 }
 0x163   : > { %4857 = vmatmul.mubr.msk.bf16.gmra.mrb[164].mxu0 %vm464_vm3, %v6282_v46 }
 0x164   : > { %4860 = vmatprep.mubr.msk.bf16.mxu0 %vm5738_vm0, %v7800_v1 }
 0x165   : > { %5039 = vmatmul.mubr.msk.bf16.gmra.mrb[84].mxu1 %vm464_vm3, %v6282_v46 }
 0x166   : > { %v735_v59 = vpop.f32.mrb[60].mxu0  ;;  %5042 = vmatprep.mubr.msk.bf16.mxu1 %vm5738_vm0, %v7800_v1 }
 0x167   : > { %v4752_v32 = vpop.f32.mrb[61].mxu0  ;;  %v6294_v62 = vadd.f32 %v735_v59, %v6076_v54 }
 0x168   : > { %v738_v5 = vpop.f32.mrb[62].mxu0 }
 0x169   : > { %v4753_v12 = vpop.f32.mrb[63].mxu0  ;;  %v6300_v49 = vadd.f32 %v738_v5, %v6078_v58 }
 0x16b   : > { %4861 = vmatmul.mubr.msk.bf16.gmra.mrb[168].mxu0 %vm464_vm3, %v6297_v56 }
 0x16c   : > { %4864 = vmatprep.mubr.msk.bf16.mxu0 %vm5738_vm0, %v7800_v1 }
 0x16d   : > { %5043 = vmatmul.mubr.msk.bf16.gmra.mrb[88].mxu1 %vm464_vm3, %v6297_v56 }
 0x16e   : > { %v743_v54 = vpop.f32.mrb[64].mxu0  ;;  %5046 = vmatprep.mubr.msk.bf16.mxu1 %vm5738_vm0, %v7800_v1 }
 0x16f   : > { %v4756_v59 = vpop.f32.mrb[65].mxu0  ;;  %v6312_v12 = vadd.f32 %v743_v54, %v6084_v60 }
 0x170   : > { %v746_v58 = vpop.f32.mrb[66].mxu0 }
 0x171   : > { %v4757_v32 = vpop.f32.mrb[67].mxu0  ;;  %v6318_v5 = vadd.f32 %v746_v58, %v6086_v0 }
 0x173   : > { %4865 = vmatmul.mubr.msk.bf16.gmra.mrb[172].mxu0 %vm464_vm3, %v6315_v7 }
 0x174   : > { %4868 = vmatprep.mubr.msk.bf16.mxu0 %vm5738_vm0, %v7800_v1 }
 0x175   : > { %5047 = vmatmul.mubr.msk.bf16.gmra.mrb[92].mxu1 %vm464_vm3, %v6315_v7 }
 0x176   : > { %v751_v59 = vpop.f32.mrb[68].mxu0  ;;  %5050 = vmatprep.mubr.msk.bf16.mxu1 %vm5738_vm0, %v7800_v1 }
 0x177   : > { %v4760_v60 = vpop.f32.mrb[69].mxu0  ;;  %v6329_v14 = vadd.f32 %v751_v59, %v6098_v9 }
 0x178   : > { %v754_v54 = vpop.f32.mrb[70].mxu0 }
 0x179   : > { %v4761_v0 = vpop.f32.mrb[71].mxu0  ;;  %v6332_v58 = vadd.f32 %v754_v54, %v6104_v13  ;;  %v6344_v13 = vpop.f32.mrb[0].mxu1 }
 0x17a   : > { %v1326_v0 = vsel %vm510_vm1, %v6141_v52, 0  ;;  %v4892_v56 = vpop.f32.mrb[1].mxu1 }
 0x17b   : > { %4869 = vmatmul.mubr.msk.bf16.gmra.mrb[176].mxu0 %vm464_vm3, %v881_v22  ;;  %v6351_v16 = vpop.f32.mrb[2].mxu1 }
 0x17c   : > { %4874 = vmatprep.mubr.msk.bf16.mxu0 %vm5738_vm0, %v7800_v1 }
 0x17e   : > { %v759_v32 = vpop.f32.mrb[72].mxu0 }
 0x17f   : > { %v4764_v9 = vpop.f32.mrb[73].mxu0  ;;  %v6342_v59 = vadd.f32 %v759_v32, %v6111_v19  ;;  %v257_v19 = vld [vmem:[%s5793_s25 + $0x7c] sm:$0xf] }
 0x180   : > { %v762_v60 = vpop.f32.mrb[74].mxu0  ;;  %v4893_v9 = vpop.f32.mrb[3].mxu1 }
 0x181   : > { %v4765_v54 = vpop.f32.mrb[75].mxu0  ;;  %v6349_v46 = vadd.f32 %v762_v60, %v6113_v25  ;;  %v6369_v60 = vpop.f32.mrb[4].mxu1 }
 0x182   : > { %v4896_v9 = vpop.f32.mrb[5].mxu1 }
 0x183   : > { %4875 = vmatmul.mubr.msk.bf16.vlgmr.msra.gmra.mrb[180].mxu0 %vm464_vm3, %v5800_v6  ;;  %v6367_v6 = vcombine.low %v6089_v3, %v257_v19  ;;  %v6374_v7 = vpop.f32.mrb[6].mxu1 }
 0x184   : > { %4935 = vmatpush3.bf16.msra.mxu0 %v1326_v0  ;;  %4878 = vmatprep.mubr.msk.bf16.mxu0 %vm5738_vm0, %v7800_v1 }
 0x185   : > { %5058 = vmatprep.subr.bf16.mxu0 %v7800_v1  ;;  %7816 = vst [vmem:[#allocation15_spill] sm:$0xff] %v6367_v6  ;;  %v6377_v53 = vrot.slane %v6367_v6, 1 }
 0x186   : > { %v767_v52 = vpop.f32.mrb[76].mxu0 }
 0x187   : > { %v4768_v25 = vpop.f32.mrb[77].mxu0  ;;  %v6364_v56 = vadd.f32 %v767_v52, %v6122_v30  ;;  %7817 = vst [vmem:[#allocation16_spill] sm:$0xff] %v6377_v53  ;;  %v4897_v30 = vpop.f32.mrb[7].mxu1  ;;  %v6385_v3 = vsel %vm853_vm4, %v881_v22, %v6377_v53 }
 0x188   : > { %v770_v32 = vpop.f32.mrb[78].mxu0  ;;  %7818 = vst [vmem:[#allocation17_spill] sm:$0xff] %v6385_v3  ;;  %5051 = vmatmul.mubr.msk.bf16.gmra.mrb[96].mxu1 %vm464_vm3, %v6385_v3  ;;  %v263_v25 = vld [vmem:[%s7778_s1 + $0xc] sm:$0xf] }
 0x189   : > { %v4769_v54 = vpop.f32.mrb[79].mxu0  ;;  %v6372_v0 = vadd.f32 %v770_v32, %v6124_v36  ;;  %5054 = vmatprep.mubr.msk.bf16.mxu1 %vm5738_vm0, %v7800_v1  ;;  %v6397_v32 = vpop.f32.mrb[8].mxu1 }
 0x18a   : > { %v4900_v9 = vpop.f32.mrb[9].mxu1 }
 0x18b   : > { %4879 = vmatmul.mubr.msk.bf16.gmra.mrb[184].mxu0 %vm464_vm3, %v5806_v10  ;;  %v6402_v30 = vpop.f32.mrb[10].mxu1 }
 0x18c   : > { %4882 = vmatprep.mubr.msk.bf16.mxu0 %vm5738_vm0, %v7800_v1  ;;  %7819 = vst [vmem:[#allocation18_spill] sm:$0xff] %v6402_v30 }
 0x18e   : > { %v775_v36 = vpop.f32.mrb[80].mxu0 }
 0x18f   : > { %v4772_v19 = vpop.f32.mrb[81].mxu0  ;;  %v6392_v52 = vadd.f32 %v775_v36, %v6131_v43  ;;  %v4901_v43 = vpop.f32.mrb[11].mxu1 }
 0x190   : > { %v778_v10 = vpop.f32.mrb[82].mxu0  ;;  %v4282_v19 = vcombine.low %v263_v25, %v263_v25  ;;  %5055 = vmatmul.mubr.msk.bf16.gmra.mrb[100].mxu1 %vm464_vm3, %v6377_v53  ;;  %v6415_v3 = vpop.f32.mrb[12].mxu1 }
 0x191   : > { %v4773_v22 = vpop.f32.mrb[83].mxu0  ;;  %v6400_v54 = vadd.f32 %v778_v10, %v6133_v48  ;;  %5122 = vmatprep.mubr.msk.bf16.mxu1 %vm5738_vm0, %v7800_v1  ;;  %v4904_v34 = vpop.f32.mrb[13].mxu1 }
 0x192   : > { %v1911_v22 = vrot.slane %v4282_v19, 2  ;;  %v6421_v53 = vpop.f32.mrb[14].mxu1 }
 0x193   : > { %4883 = vmatmul.mubr.msk.bf16.gmra.mrb[188].mxu0 %vm464_vm3, %v5816_v20 }
 0x194   : > { %4886 = vmatprep.mubr.msk.bf16.mxu0 %vm5738_vm0, %v7800_v1  ;;  %v1919_v30 = vsel %vm510_vm1, %v1911_v22, 0 }
 0x195   : > { %5121 = vmatpush3.bf16.msra.mxu1 %v1919_v30 }
 0x196   : > { %v783_v36 = vpop.f32.mrb[84].mxu0 }
 0x197   : > { %v4776_v48 = vpop.f32.mrb[85].mxu0  ;;  %v6413_v10 = vadd.f32 %v783_v36, %v6150_v61 }
 0x198   : > { %v786_v9 = vpop.f32.mrb[86].mxu0  ;;  %v4905_v48 = vpop.f32.mrb[15].mxu1  ;;  %5123 = vmatmul.mubr.msk.bf16.vlgmr.msra.gmra.mrb[104].mxu1 %vm464_vm3, %v5832_v27 }
 0x199   : > { %v4777_v20 = vpop.f32.mrb[87].mxu0  ;;  %v6418_v43 = vadd.f32 %v786_v9, %v6152_v11  ;;  %5126 = vmatprep.mubr.msk.bf16.mxu1 %vm5738_vm0, %v7800_v1  ;;  %v6434_v19 = vpop.f32.mrb[16].mxu1 }
 0x19a   : > { %v4908_v9 = vpop.f32.mrb[17].mxu1 }
 0x19b   : > { %4887 = vmatmul.mubr.msk.bf16.gmra.mrb[192].mxu0 %vm464_vm3, %v5829_v26  ;;  %v1714_v26 = vsel %vm510_vm1, %v263_v25, 0  ;;  %v6440_v20 = vpop.f32.mrb[18].mxu1 }
 0x19c   : > { %4936 = vmatprep.mubr.msk.bf16.mxu0 %vm5738_vm0, %v7800_v1  ;;  %v4909_v48 = vpop.f32.mrb[19].mxu1 }
 0x19e   : > { %v791_v61 = vpop.f32.mrb[88].mxu0 }
 0x19f   : > { %v4780_v34 = vpop.f32.mrb[89].mxu0  ;;  %v6432_v11 = vadd.f32 %v791_v61, %v6165_v24 }
 0x1a0   : > { %v794_v30 = vpop.f32.mrb[90].mxu0  ;;  %5127 = vmatmul.mubr.msk.bf16.gmra.mrb[108].mxu1 %vm464_vm3, %v5844_v33 }
 0x1a1   : > { %v4781_v36 = vpop.f32.mrb[91].mxu0  ;;  %v6438_v22 = vadd.f32 %v794_v30, %v6169_v29  ;;  %5130 = vmatprep.mubr.msk.bf16.mxu1 %vm5738_vm0, %v7800_v1 }
 0x1a3   : > { %4937 = vmatmul.mubr.msk.bf16.vlgmr.msra.gmra.mrb[196].mxu0 %vm464_vm3, %v5820_v21  ;;  %v6454_v21 = vpop.f32.mrb[20].mxu1 }
 0x1a4   : > { %5059 = vmatpush3.bf16.msra.mxu0 %v1714_v26  ;;  %4940 = vmatprep.mubr.msk.bf16.mxu0 %vm5738_vm0, %v7800_v1  ;;  %v4912_v36 = vpop.f32.mrb[21].mxu1 }
 0x1a5   : > { %5182 = vmatprep.subr.bf16.mxu0 %v7800_v1  ;;  %v6459_v26 = vpop.f32.mrb[22].mxu1 }
 0x1a6   : > { %v799_v24 = vpop.f32.mrb[92].mxu0  ;;  %v4913_v9 = vpop.f32.mrb[23].mxu1 }
 0x1a7   : > { %v4784_v29 = vpop.f32.mrb[93].mxu0  ;;  %v6452_v25 = vadd.f32 %v799_v24, %v6181_v37 }
 0x1a8   : > { %v802_v61 = vpop.f32.mrb[94].mxu0  ;;  %5131 = vmatmul.mubr.msk.bf16.gmra.mrb[112].mxu1 %vm464_vm3, %v5856_v39  ;;  %v6472_v29 = vpop.f32.mrb[24].mxu1 }
 0x1a9   : > { %v4785_v34 = vpop.f32.mrb[95].mxu0  ;;  %v6457_v30 = vadd.f32 %v802_v61, %v6185_v41  ;;  %5134 = vmatprep.mubr.msk.bf16.mxu1 %vm5738_vm0, %v7800_v1 }
 0x1aa   : > { %v4916_v34 = vpop.f32.mrb[25].mxu1 }
 0x1ab   : > { %4941 = vmatmul.mubr.msk.bf16.gmra.mrb[200].mxu0 %vm464_vm3, %v5832_v27  ;;  %v6477_v36 = vpop.f32.mrb[26].mxu1 }
 0x1ac   : > { %4944 = vmatprep.mubr.msk.bf16.mxu0 %vm5738_vm0, %v7800_v1  ;;  %7820 = vst [vmem:[#allocation19_spill] sm:$0xff] %v6477_v36  ;;  %v4917_v9 = vpop.f32.mrb[27].mxu1 }
 0x1ae   : > { %v807_v37 = vpop.f32.mrb[96].mxu0 }
 0x1af   : > { %v4788_v48 = vpop.f32.mrb[97].mxu0  ;;  %v6470_v41 = vadd.f32 %v807_v37, %v6197_v55 }
 0x1b0   : > { %v810_v24 = vpop.f32.mrb[98].mxu0  ;;  %5135 = vmatmul.mubr.msk.bf16.gmra.mrb[116].mxu1 %vm464_vm3, %v5868_v45 }
 0x1b1   : > { %v4789_v61 = vpop.f32.mrb[99].mxu0  ;;  %v6475_v27 = vadd.f32 %v810_v24, %v6201_v2  ;;  %5138 = vmatprep.mubr.msk.bf16.mxu1 %vm5738_vm0, %v7800_v1  ;;  %v6490_v24 = vpop.f32.mrb[28].mxu1 }
 0x1b2   : > { %v4920_v34 = vpop.f32.mrb[29].mxu1 }
 0x1b3   : > { %4945 = vmatmul.mubr.msk.bf16.gmra.mrb[204].mxu0 %vm464_vm3, %v5844_v33  ;;  %v6495_v9 = vpop.f32.mrb[30].mxu1 }
 0x1b4   : > { %4948 = vmatprep.mubr.msk.bf16.mxu0 %vm5738_vm0, %v7800_v1  ;;  %7821 = vst [vmem:[#allocation20_spill] sm:$0xff] %v6495_v9  ;;  %v4921_v36 = vpop.f32.mrb[31].mxu1 }
 0x1b6   : > { %v815_v55 = vpop.f32.mrb[100].mxu0 }
 0x1b7   : > { %v4792_v37 = vpop.f32.mrb[101].mxu0  ;;  %v6488_v2 = vadd.f32 %v815_v55, %v6213_v17 }
 0x1b8   : > { %v818_v48 = vpop.f32.mrb[102].mxu0  ;;  %5139 = vmatmul.mubr.msk.bf16.gmra.mrb[120].mxu1 %vm464_vm3, %v5880_v51 }
 0x1b9   : > { %v4793_v61 = vpop.f32.mrb[103].mxu0  ;;  %v6493_v33 = vadd.f32 %v818_v48, %v6217_v28  ;;  %5142 = vmatprep.mubr.msk.bf16.mxu1 %vm5738_vm0, %v7800_v1  ;;  %v6508_v48 = vpop.f32.mrb[32].mxu1 }
 0x1ba   : > { %v4924_v36 = vpop.f32.mrb[33].mxu1 }
 0x1bb   : > { %4949 = vmatmul.mubr.msk.bf16.gmra.mrb[208].mxu0 %vm464_vm3, %v5856_v39  ;;  %v6513_v34 = vpop.f32.mrb[34].mxu1 }
 0x1bc   : > { %4952 = vmatprep.mubr.msk.bf16.mxu0 %vm5738_vm0, %v7800_v1  ;;  %7822 = vst [vmem:[#allocation21_spill] sm:$0xff] %v6513_v34  ;;  %v4925_v9 = vpop.f32.mrb[35].mxu1 }
 0x1be   : > { %v823_v17 = vpop.f32.mrb[104].mxu0 }
 0x1bf   : > { %v4796_v55 = vpop.f32.mrb[105].mxu0  ;;  %v6506_v28 = vadd.f32 %v823_v17, %v6229_v40 }
 0x1c0   : > { %v826_v37 = vpop.f32.mrb[106].mxu0  ;;  %5143 = vmatmul.mubr.msk.bf16.gmra.mrb[124].mxu1 %vm464_vm3, %v5892_v57 }
 0x1c1   : > { %v4797_v61 = vpop.f32.mrb[107].mxu0  ;;  %v6511_v39 = vadd.f32 %v826_v37, %v6233_v38  ;;  %5146 = vmatprep.mubr.msk.bf16.mxu1 %vm5738_vm0, %v7800_v1  ;;  %v6526_v37 = vpop.f32.mrb[36].mxu1 }
 0x1c2   : > { %v4928_v9 = vpop.f32.mrb[37].mxu1 }
 0x1c3   : > { %4953 = vmatmul.mubr.msk.bf16.gmra.mrb[212].mxu0 %vm464_vm3, %v5868_v45  ;;  %v6531_v36 = vpop.f32.mrb[38].mxu1 }
 0x1c4   : > { %4956 = vmatprep.mubr.msk.bf16.mxu0 %vm5738_vm0, %v7800_v1  ;;  %7823 = vst [vmem:[#allocation22_spill] sm:$0xff] %v6531_v36  ;;  %v4929_v34 = vpop.f32.mrb[39].mxu1 }
 0x1c6   : > { %v831_v40 = vpop.f32.mrb[108].mxu0 }
 0x1c7   : > { %v4800_v17 = vpop.f32.mrb[109].mxu0  ;;  %v6524_v38 = vadd.f32 %v831_v40, %v6245_v18 }
 0x1c8   : > { %v834_v55 = vpop.f32.mrb[110].mxu0  ;;  %5147 = vmatmul.mubr.msk.bf16.gmra.mrb[128].mxu1 %vm464_vm3, %v5904_v63 }
 0x1c9   : > { %v4801_v61 = vpop.f32.mrb[111].mxu0  ;;  %v6529_v45 = vadd.f32 %v834_v55, %v6249_v44  ;;  %5150 = vmatprep.mubr.msk.bf16.mxu1 %vm5738_vm0, %v7800_v1  ;;  %v6544_v55 = vpop.f32.mrb[40].mxu1 }
 0x1ca   : > { %v4932_v34 = vpop.f32.mrb[41].mxu1 }
 0x1cb   : > { %4957 = vmatmul.mubr.msk.bf16.gmra.mrb[216].mxu0 %vm464_vm3, %v5880_v51  ;;  %v1276_v9 = vpop.f32.mrb[42].mxu1 }
 0x1cc   : > { %4960 = vmatprep.mubr.msk.bf16.mxu0 %vm5738_vm0, %v7800_v1  ;;  %v4933_v36 = vpop.f32.mrb[43].mxu1 }
 0x1ce   : > { %v839_v18 = vpop.f32.mrb[112].mxu0 }
 0x1cf   : > { %v4804_v40 = vpop.f32.mrb[113].mxu0  ;;  %v6542_v44 = vadd.f32 %v839_v18, %v6261_v4 }
 0x1d0   : > { %v842_v17 = vpop.f32.mrb[114].mxu0  ;;  %5151 = vmatmul.mubr.msk.bf16.gmra.mrb[132].mxu1 %vm464_vm3, %v5916_v8 }
 0x1d1   : > { %v4805_v61 = vpop.f32.mrb[115].mxu0  ;;  %v6547_v51 = vadd.f32 %v842_v17, %v6265_v50  ;;  %5154 = vmatprep.mubr.msk.bf16.mxu1 %vm5738_vm0, %v7800_v1 }
 0x1d3   : > { %4961 = vmatmul.mubr.msk.bf16.gmra.mrb[220].mxu0 %vm464_vm3, %v5892_v57 }
 0x1d4   : > { %4964 = vmatprep.mubr.msk.bf16.mxu0 %vm5738_vm0, %v7800_v1 }
 0x1d6   : > { %v847_v4 = vpop.f32.mrb[116].mxu0 }
 0x1d7   : > { %v4808_v18 = vpop.f32.mrb[117].mxu0  ;;  %v6558_v50 = vadd.f32 %v847_v4, %v6277_v31 }
 0x1d8   : > { %v850_v40 = vpop.f32.mrb[118].mxu0  ;;  %5155 = vmatmul.mubr.msk.bf16.gmra.mrb[136].mxu1 %vm464_vm3, %v5928_v15 }
 0x1d9   : > { %v4809_v17 = vpop.f32.mrb[119].mxu0  ;;  %5158 = vmatprep.mubr.msk.bf16.mxu1 %vm5738_vm0, %v7800_v1 }
 0x1db   : > { %4965 = vmatmul.mubr.msk.bf16.gmra.mrb[224].mxu0 %vm464_vm3, %v5904_v63 }
 0x1dc   : > { %4968 = vmatprep.mubr.msk.bf16.mxu0 %vm5738_vm0, %v7800_v1 }
 0x1de   : > { %v965_v57 = vpop.f32.mrb[120].mxu0 }
 0x1df   : > { %v6569_v36 = vadd.f32 %v965_v57, %v6294_v62  ;;  %v4814_v31 = vpop.f32.mrb[121].mxu0 }
 0x1e0   : > { %v968_v61 = vpop.f32.mrb[122].mxu0  ;;  %5159 = vmatmul.mubr.msk.bf16.gmra.mrb[140].mxu1 %vm464_vm3, %v5940_v23  ;;  %v1312_v31 = vshll.u32 %v6367_v6, 16 }
 0x1e1   : > { %v6572_v34 = vadd.f32 %v968_v61, %v6300_v49  ;;  %v4815_v9 = vpop.f32.mrb[123].mxu0  ;;  %5162 = vmatprep.mubr.msk.bf16.mxu1 %vm5738_vm0, %v7800_v1 }
 0x1e3   : > { %4969 = vmatmul.mubr.msk.bf16.gmra.mrb[228].mxu0 %vm464_vm3, %v5916_v8 }
 0x1e4   : > { %4972 = vmatprep.mubr.msk.bf16.mxu0 %vm5738_vm0, %v7800_v1 }
 0x1e6   : > { %v973_v63 = vpop.f32.mrb[124].mxu0 }
 0x1e7   : > { %v6583_v62 = vadd.f32 %v973_v63, %v6312_v12  ;;  %v4818_v4 = vpop.f32.mrb[125].mxu0  ;;  %v1314_v63 = vrot.slane %v1312_v31, 1 }
 0x1e8   : > { %v976_v49 = vpop.f32.mrb[126].mxu0  ;;  %5163 = vmatmul.mubr.msk.bf16.gmra.mrb[144].mxu1 %vm464_vm3, %v5956_v35  ;;  %v6614_v4 = vpop.f32.mrb[44].mxu1 }
 0x1e9   : > { %v6586_v18 = vadd.f32 %v976_v49, %v6318_v5  ;;  %v4819_v40 = vpop.f32.mrb[127].mxu0  ;;  %5166 = vmatprep.mubr.msk.bf16.mxu1 %vm5738_vm0, %v7800_v1  ;;  %7824 = vst [vmem:[#allocation23_spill] sm:$0xff] %v6614_v4 }
 0x1ea   : > { %v6620_v40 = vld [vmem:[%s5793_s25 + $0x80] sm:$0xf] }
 0x1eb   : > { %4973 = vmatmul.mubr.msk.bf16.gmra.mrb[232].mxu0 %vm464_vm3, %v5928_v15  ;;  %7825 = vst [vmem:[#allocation24_spill] sm:$0xff] %v6620_v40 }
 0x1ec   : > { %4976 = vmatprep.mubr.msk.bf16.mxu0 %vm5738_vm0, %v7800_v1 }
 0x1ee   : > { %v981_v8 = vpop.f32.mrb[128].mxu0 }
 0x1ef   : > { %v6597_v12 = vadd.f32 %v981_v8, %v6329_v14  ;;  %v4822_v17 = vpop.f32.mrb[129].mxu0  ;;  %v259_v8 = vld [vmem:[%s5793_s25 + $0x84] sm:$0xf] }
 0x1f0   : > { %v984_v5 = vpop.f32.mrb[130].mxu0  ;;  %5167 = vmatmul.mubr.msk.bf16.gmra.mrb[148].mxu1 %vm464_vm3, %v5965_v42  ;;  %v5000_v17 = vpop.f32.mrb[45].mxu1 }
 0x1f1   : > { %v6600_v57 = vadd.f32 %v984_v5, %v6332_v58  ;;  %v4823_v15 = vpop.f32.mrb[131].mxu0  ;;  %5170 = vmatprep.mubr.msk.bf16.mxu1 %vm5738_vm0, %v7800_v1  ;;  %v6623_v5 = vpop.f32.mrb[46].mxu1 }
 0x1f2   : > { %7826 = vst [vmem:[#allocation25_spill] sm:$0xff] %v6623_v5  ;;  %v1315_v15 = vsel %vm340_vm2, %v5975_v47, %v1314_v63 }
 0x1f3   : > { %4977 = vmatmul.mubr.msk.bf16.gmra.mrb[236].mxu0 %vm464_vm3, %v5940_v23 }
 0x1f4   : > { %4980 = vmatprep.mubr.msk.bf16.mxu0 %vm5738_vm0, %v7800_v1 }
 0x1f6   : > { %v989_v14 = vpop.f32.mrb[132].mxu0 }
 0x1f7   : > { %v6612_v58 = vadd.f32 %v989_v14, %v6342_v59  ;;  %v4826_v61 = vpop.f32.mrb[133].mxu0  ;;  %v5001_v59 = vpop.f32.mrb[47].mxu1  ;;  %v1316_v14 = vshrl.u32 %v6367_v6, 16 }
 0x1f8   : > { %v992_v9 = vpop.f32.mrb[134].mxu0  ;;  %5171 = vmatmul.mubr.msk.bf16.gmra.mrb[152].mxu1 %vm464_vm3, %v1315_v15 }
 0x1f9   : > { %v6617_v23 = vadd.f32 %v992_v9, %v6349_v46  ;;  %v4827_v49 = vpop.f32.mrb[135].mxu0  ;;  %v6632_v46 = vcombine.low %v6620_v40, %v259_v8  ;;  %5174 = vmatprep.mubr.msk.bf16.mxu1 %vm5738_vm0, %v7800_v1  ;;  %v1318_v5 = vor.u32 %v1316_v14, %v1314_v63 }
 0x1fa   : > { %v6639_v49 = vpop.f32.mrb[48].mxu1 }
 0x1fb   : > { %4981 = vmatmul.mubr.msk.bf16.gmra.mrb[240].mxu0 %vm464_vm3, %v5956_v35  ;;  %7827 = vst [vmem:[#allocation26_spill] sm:$0xff] %v6632_v46  ;;  %v1901_v17 = vshll.u32 %v6632_v46, 16  ;;  %v5004_v40 = vpop.f32.mrb[49].mxu1 }
 0x1fc   : > { %4984 = vmatprep.mubr.msk.bf16.mxu0 %vm5738_vm0, %v7800_v1  ;;  %v6646_v6 = vpop.f32.mrb[50].mxu1 }
 0x1fd   : > { %v1903_v4 = vrot.slane %v1901_v17, 1  ;;  %v1905_v17 = vshrl.u32 %v6632_v46, 16  ;;  %v5725_v46 = vld [vmem:[%s5793_s25 + $0x50] sm:$0xff]  }
 0x1fe   : > { %v997_v31 = vpop.f32.mrb[136].mxu0 }
 0x1ff   : > { %v1091_v35 = vadd.f32 %v997_v31, %v6364_v56  ;;  %v4830_v61 = vpop.f32.mrb[137].mxu0  ;;  %v5005_v56 = vpop.f32.mrb[51].mxu1  ;;  %v7828_v31 = vmov 0.0  }
 0x200   : > { %v1000_v9 = vpop.f32.mrb[138].mxu0  ;;  %v6660_v14 = vpop.f32.mrb[52].mxu1 }
 0x201   : > { %v1092_v47 = vadd.f32 %v1000_v9, %v6372_v0  ;;  %v6644_v8 = vadd.f32 %v6344_v13, %v1091_v35  ;;  %v4831_v59 = vpop.f32.mrb[139].mxu0  ;;  %v1904_v0 = vsel %vm340_vm2, %v1318_v5, %v1903_v4  ;;  %v5008_v9 = vpop.f32.mrb[53].mxu1 }
 0x202   : > { %5175 = vmatmul.mubr.msk.bf16.gmra.mrb[156].mxu1 %vm464_vm3, %v1904_v0 }
 0x203   : > { %v6649_v1 = vadd.f32 %v6351_v16, %v1092_v47  ;;  %4985 = vmatmul.mubr.msk.bf16.gmra.mrb[244].mxu0 %vm464_vm3, %v5965_v42  ;;  %5178 = vmatprep.mubr.msk.bf16.mxu1 %vm5738_vm0, %v7828_v31  ;;  %v6667_v47 = vpop.f32.mrb[54].mxu1 }
 0x204   : > { %4988 = vmatprep.mubr.msk.bf16.mxu0 %vm5738_vm0, %v7828_v31  ;;  %v5009_v56 = vpop.f32.mrb[55].mxu1 }
 0x206   : > { %v1005_v13 = vpop.f32.mrb[140].mxu0 }
 0x207   : > { %v1093_v63 = vadd.f32 %v1005_v13, %v6392_v52  ;;  %v4834_v40 = vpop.f32.mrb[141].mxu0  ;;  %v1907_v52 = vor.u32 %v1905_v17, %v1903_v4 }
 0x208   : > { %v1008_v16 = vpop.f32.mrb[142].mxu0 }
 0x209   : > { %v1094_v42 = vadd.f32 %v1008_v16, %v6400_v54  ;;  %v6664_v35 = vadd.f32 %v6369_v60, %v1093_v63  ;;  %v4835_v61 = vpop.f32.mrb[143].mxu0  ;;  %v6677_v63 = vpop.f32.mrb[56].mxu1 }
 0x20a   : > { %5179 = vmatmul.mubr.msk.bf16.gmra.mrb[160].mxu1 %vm464_vm3, %v1907_v52  ;;  %v5012_v4 = vpop.f32.mrb[57].mxu1 }
 0x20b   : > { %v6670_v59 = vadd.f32 %v6374_v7, %v1094_v42  ;;  %4989 = vmatmul.mubr.msk.bf16.gmra.mrb[248].mxu0 %vm464_vm3, %v1315_v15  ;;  %v6683_v16 = vpop.f32.mrb[58].mxu1  ;;  %v7829_v42 = vld [vmem:[#allocation18_spill] sm:$0xff]  ;;  %v5717_v4 = vld [vmem:[%s5793_s25 + $0x10] sm:$0xff]  }
 0x20c   : > { %4992 = vmatprep.mubr.msk.bf16.mxu0 %vm5738_vm0, %v7828_v31 }
 0x20e   : > { %v1013_v60 = vpop.f32.mrb[144].mxu0 }
 0x20f   : > { %v1095_v54 = vadd.f32 %v1013_v60, %v6413_v10  ;;  %v4838_v0 = vpop.f32.mrb[145].mxu0  ;;  %v5013_v10 = vpop.f32.mrb[59].mxu1 }
 0x210   : > { %v1016_v13 = vpop.f32.mrb[146].mxu0  ;;  %v6695_v56 = vpop.f32.mrb[60].mxu1 }
 0x211   : > { %v1096_v40 = vadd.f32 %v1016_v13, %v6418_v43  ;;  %v6681_v7 = vadd.f32 %v6397_v32, %v1095_v54  ;;  %v4839_v15 = vpop.f32.mrb[147].mxu0  ;;  %v264_v32 = vld [vmem:[%s7778_s1 + $0x10] sm:$0x3]  ;;  %v5016_v13 = vpop.f32.mrb[61].mxu1 }
 0x212   : > { %v2111_v0 = vsel %vm510_vm1, %v264_v32, 0 }
 0x213   : > { %v6686_v61 = vadd.f32 %v7829_v42, %v1096_v40  ;;  %4993 = vmatmul.mubr.msk.bf16.gmra.mrb[252].mxu0 %vm464_vm3, %v1318_v5  ;;  %v6702_v40 = vpop.f32.mrb[62].mxu1 }
 0x214   : > { %5060 = vmatprep.mubr.msk.bf16.mxu0 %vm5738_vm0, %v7828_v31 }
 0x216   : > { %v1021_v9 = vpop.f32.mrb[148].mxu0 }
 0x217   : > { %v1097_v43 = vadd.f32 %v1021_v9, %v6432_v11  ;;  %v4842_v17 = vpop.f32.mrb[149].mxu0  ;;  %v5017_v11 = vpop.f32.mrb[63].mxu1 }
 0x218   : > { %v1024_v52 = vpop.f32.mrb[150].mxu0  ;;  %v6712_v9 = vpop.f32.mrb[64].mxu1 }
 0x219   : > { %v1098_v60 = vadd.f32 %v1024_v52, %v6438_v22  ;;  %v6699_v5 = vadd.f32 %v6415_v3, %v1097_v43  ;;  %v4843_v54 = vpop.f32.mrb[151].mxu0  ;;  %v5020_v17 = vpop.f32.mrb[65].mxu1 }
 0x21a   : > { %v6718_v52 = vpop.f32.mrb[66].mxu1  ;;  %v5718_v54 = vld [vmem:[%s5793_s25 + $0x18] sm:$0xff]  }
 0x21b   : > { %v6705_v15 = vadd.f32 %v6421_v53, %v1098_v60  ;;  %5061 = vmatmul.mubr.msk.bf16.vlgmr.msra.gmra.mrb[0].mxu0 %vm464_vm3, %v5717_v4 }
 0x21c   : > { %5183 = vmatpush3.bf16.msra.mxu0 %v2111_v0  ;;  %5064 = vmatprep.mubr.msk.bf16.mxu0 %vm5738_vm0, %v7828_v31 }
 0x21e   : > { %v1029_v3 = vpop.f32.mrb[152].mxu0 }
 0x21f   : > { %v1099_v22 = vadd.f32 %v1029_v3, %v6452_v25  ;;  %v4846_v42 = vpop.f32.mrb[153].mxu0  ;;  %v5021_v25 = vpop.f32.mrb[67].mxu1 }
 0x220   : > { %v1032_v10 = vpop.f32.mrb[154].mxu0  ;;  %v6728_v4 = vpop.f32.mrb[68].mxu1 }
 0x221   : > { %v1100_v32 = vadd.f32 %v1032_v10, %v6457_v30  ;;  %v6716_v53 = vadd.f32 %v6434_v19, %v1099_v22  ;;  %v4847_v43 = vpop.f32.mrb[155].mxu0  ;;  %v5024_v22 = vpop.f32.mrb[69].mxu1 }
 0x222   : > { %v6734_v42 = vpop.f32.mrb[70].mxu1 }
 0x223   : > { %v6721_v60 = vadd.f32 %v6440_v20, %v1100_v32  ;;  %5065 = vmatmul.mubr.msk.bf16.gmra.mrb[4].mxu0 %vm464_vm3, %v5718_v54  ;;  %v5719_v32 = vld [vmem:[%s5793_s25 + $0x20] sm:$0xff]  }
 0x224   : > { %5068 = vmatprep.mubr.msk.bf16.mxu0 %vm5738_vm0, %v7828_v31 }
 0x226   : > { %v1037_v0 = vpop.f32.mrb[156].mxu0 }
 0x227   : > { %v1101_v30 = vadd.f32 %v1037_v0, %v6470_v41  ;;  %v4850_v19 = vpop.f32.mrb[157].mxu0  ;;  %v5025_v41 = vpop.f32.mrb[71].mxu1 }
 0x228   : > { %v1040_v13 = vpop.f32.mrb[158].mxu0  ;;  %v6744_v54 = vpop.f32.mrb[72].mxu1 }
 0x229   : > { %v1102_v11 = vadd.f32 %v1040_v13, %v6475_v27  ;;  %v6732_v20 = vadd.f32 %v6454_v21, %v1101_v30  ;;  %v4851_v3 = vpop.f32.mrb[159].mxu0  ;;  %v5028_v30 = vpop.f32.mrb[73].mxu1  ;;  %v7830_v13 = vld [vmem:[#allocation19_spill] sm:$0xff] }
 0x22a   : > { %v6750_v19 = vpop.f32.mrb[74].mxu1  ;;  %v5720_v3 = vld [vmem:[%s5793_s25 + $0x28] sm:$0xff]  }
 0x22b   : > { %v6737_v10 = vadd.f32 %v6459_v26, %v1102_v11  ;;  %5069 = vmatmul.mubr.msk.bf16.gmra.mrb[8].mxu0 %vm464_vm3, %v5719_v32 }
 0x22c   : > { %5072 = vmatprep.mubr.msk.bf16.mxu0 %vm5738_vm0, %v7828_v31 }
 0x22e   : > { %v1045_v43 = vpop.f32.mrb[160].mxu0 }
 0x22f   : > { %v1103_v27 = vadd.f32 %v1045_v43, %v6488_v2  ;;  %v4854_v21 = vpop.f32.mrb[161].mxu0  ;;  %v5029_v2 = vpop.f32.mrb[75].mxu1 }
 0x230   : > { %v1048_v17 = vpop.f32.mrb[162].mxu0  ;;  %v6760_v41 = vpop.f32.mrb[76].mxu1 }
 0x231   : > { %v1104_v25 = vadd.f32 %v1048_v17, %v6493_v33  ;;  %v6748_v26 = vadd.f32 %v6472_v29, %v1103_v27  ;;  %v4855_v0 = vpop.f32.mrb[163].mxu0  ;;  %v5032_v17 = vpop.f32.mrb[77].mxu1 }
 0x232   : > { %v7831_v0 = vld [vmem:[#allocation20_spill] sm:$0xff]  ;;  %v7832_v17 = vld [vmem:[#allocation21_spill] sm:$0xff] }
 0x233   : > { %v6753_v11 = vadd.f32 %v7830_v13, %v1104_v25  ;;  %5073 = vmatmul.mubr.msk.bf16.gmra.mrb[12].mxu0 %vm464_vm3, %v5720_v3  ;;  %v6766_v25 = vpop.f32.mrb[78].mxu1  ;;  %v5721_v13 = vld [vmem:[%s5793_s25 + $0x30] sm:$0xff]  }
 0x234   : > { %5076 = vmatprep.mubr.msk.bf16.mxu0 %vm5738_vm0, %v7828_v31 }
 0x236   : > { %v1053_v22 = vpop.f32.mrb[164].mxu0 }
 0x237   : > { %v1105_v33 = vadd.f32 %v1053_v22, %v6506_v28  ;;  %v4858_v29 = vpop.f32.mrb[165].mxu0  ;;  %v5033_v28 = vpop.f32.mrb[79].mxu1 }
 0x238   : > { %v1056_v32 = vpop.f32.mrb[166].mxu0  ;;  %v6776_v22 = vpop.f32.mrb[80].mxu1 }
 0x239   : > { %v1106_v43 = vadd.f32 %v1056_v32, %v6511_v39  ;;  %v6764_v27 = vadd.f32 %v6490_v24, %v1105_v33  ;;  %v4859_v21 = vpop.f32.mrb[167].mxu0 }
 0x23b   : > { %v6769_v30 = vadd.f32 %v7831_v0, %v1106_v43  ;;  %5077 = vmatmul.mubr.msk.bf16.gmra.mrb[16].mxu0 %vm464_vm3, %v5721_v13  ;;  %v5036_v43 = vpop.f32.mrb[81].mxu1  ;;  %v5722_v13 = vld [vmem:[%s5793_s25 + $0x38] sm:$0xff]  }
 0x23c   : > { %5080 = vmatprep.mubr.msk.bf16.mxu0 %vm5738_vm0, %v7828_v31  ;;  %v6782_v21 = vpop.f32.mrb[82].mxu1 }
 0x23e   : > { %v1061_v3 = vpop.f32.mrb[168].mxu0 }
 0x23f   : > { %v1107_v39 = vadd.f32 %v1061_v3, %v6524_v38  ;;  %v4862_v24 = vpop.f32.mrb[169].mxu0  ;;  %v5037_v38 = vpop.f32.mrb[83].mxu1 }
 0x240   : > { %v1064_v2 = vpop.f32.mrb[170].mxu0  ;;  %v5723_v38 = vld [vmem:[%s5793_s25 + $0x40] sm:$0xff]  }
 0x241   : > { %v1108_v33 = vadd.f32 %v1064_v2, %v6529_v45  ;;  %v6780_v29 = vadd.f32 %v6508_v48, %v1107_v39  ;;  %v4863_v32 = vpop.f32.mrb[171].mxu0  ;;  %v6792_v39 = vpop.f32.mrb[84].mxu1 }
 0x242   : > { %v5040_v32 = vpop.f32.mrb[85].mxu1 }
 0x243   : > { %v6785_v0 = vadd.f32 %v7832_v17, %v1108_v33  ;;  %5081 = vmatmul.mubr.msk.bf16.gmra.mrb[20].mxu0 %vm464_vm3, %v5722_v13  ;;  %v6798_v43 = vpop.f32.mrb[86].mxu1  ;;  %v7834_v17 = vld [vmem:[#allocation22_spill] sm:$0xff] }
 0x244   : > { %5084 = vmatprep.mubr.msk.bf16.mxu0 %vm5738_vm0, %v7828_v31 }
 0x246   : > { %v1069_v28 = vpop.f32.mrb[172].mxu0 }
 0x247   : > { %v1109_v45 = vadd.f32 %v1069_v28, %v6542_v44  ;;  %v4866_v48 = vpop.f32.mrb[173].mxu0  ;;  %v5041_v44 = vpop.f32.mrb[87].mxu1 }
 0x248   : > { %v1072_v3 = vpop.f32.mrb[174].mxu0  ;;  %v6808_v48 = vpop.f32.mrb[88].mxu1 }
 0x249   : > { %v1110_v24 = vadd.f32 %v1072_v3, %v6547_v51  ;;  %v6796_v2 = vadd.f32 %v6526_v37, %v1109_v45  ;;  %v4867_v33 = vpop.f32.mrb[175].mxu0 }
 0x24b   : > { %7833 = vst [vmem:[#allocation18_spill] sm:$0xff] %v6796_v2  ;;  %v6801_v13 = vadd.f32 %v7834_v17, %v1110_v24  ;;  %5085 = vmatmul.mubr.msk.bf16.gmra.mrb[24].mxu0 %vm464_vm3, %v5723_v38  ;;  %v5044_v24 = vpop.f32.mrb[89].mxu1  ;;  %v5724_v17 = vld [vmem:[%s5793_s25 + $0x48] sm:$0xff]  }
 0x24c   : > { %5088 = vmatprep.mubr.msk.bf16.mxu0 %vm5738_vm0, %v7828_v31  ;;  %v6813_v32 = vpop.f32.mrb[90].mxu1 }
 0x24d   : > { %7835 = vst [vmem:[#allocation19_spill] sm:$0xff] %v6801_v13  ;;  %v5045_v38 = vpop.f32.mrb[91].mxu1  ;;  %v5726_v13 = vld [vmem:[%s5793_s25 + $0x58] sm:$0xff]  }
 0x24e   : > { %v1077_v28 = vpop.f32.mrb[176].mxu0 }
 0x24f   : > { %v1111_v51 = vadd.f32 %v1077_v28, %v6558_v50  ;;  %v4870_v37 = vpop.f32.mrb[177].mxu0 }
 0x250   : > { %v1080_v45 = vpop.f32.mrb[178].mxu0 }
 0x251   : > { %v6811_v3 = vadd.f32 %v6544_v55, %v1111_v51  ;;  %v4871_v33 = vpop.f32.mrb[179].mxu0  ;;  %v6820_v45 = vpop.f32.mrb[92].mxu1 }
 0x252   : > { %7837 = vst [vmem:[#allocation21_spill] sm:$0xff] %v6820_v45  ;;  %v5048_v33 = vpop.f32.mrb[93].mxu1 }
 0x253   : > { %7836 = vst [vmem:[#allocation20_spill] sm:$0xff] %v6811_v3  ;;  %5089 = vmatmul.mubr.msk.bf16.gmra.mrb[28].mxu0 %vm464_vm3, %v5724_v17  ;;  %v6823_v24 = vpop.f32.mrb[94].mxu1 }
 0x254   : > { %5092 = vmatprep.mubr.msk.bf16.mxu0 %vm5738_vm0, %v7828_v31  ;;  %7838 = vst [vmem:[#allocation22_spill] sm:$0xff] %v6823_v24  ;;  %v5049_v17 = vpop.f32.mrb[95].mxu1  ;;  %v7844_v24 = vld [vmem:[#allocation23_spill] sm:$0xff] }
 0x256   : > { %v1161_v50 = vpop.f32.mrb[180].mxu0 }
 0x257   : > { %v1279_v44 = vadd.f32 %v1161_v50, %v6569_v36  ;;  %v4876_v28 = vpop.f32.mrb[181].mxu0 }
 0x258   : > { %v1164_v37 = vpop.f32.mrb[182].mxu0 }
 0x259   : > { %v1280_v55 = vadd.f32 %v1164_v37, %v6572_v34  ;;  %v4877_v51 = vpop.f32.mrb[183].mxu0 }
 0x25b   : > { %5093 = vmatmul.mubr.msk.bf16.gmra.mrb[32].mxu0 %vm464_vm3, %v5725_v46  ;;  %v6830_v3 = vpop.f32.mrb[96].mxu1 }
 0x25c   : > { %5096 = vmatprep.mubr.msk.bf16.mxu0 %vm5738_vm0, %v7828_v31  ;;  %7839 = vst [vmem:[#allocation27_spill] sm:$0xff] %v6830_v3  ;;  %v5052_v51 = vpop.f32.mrb[97].mxu1 }
 0x25d   : > { %v6833_v33 = vpop.f32.mrb[98].mxu1 }
 0x25e   : > { %v1169_v38 = vpop.f32.mrb[184].mxu0  ;;  %7840 = vst [vmem:[#allocation28_spill] sm:$0xff] %v6833_v33  ;;  %v5053_v46 = vpop.f32.mrb[99].mxu1  ;;  %v5727_v33 = vld [vmem:[%s5793_s25 + $0x60] sm:$0xff]  }
 0x25f   : > { %v1281_v36 = vadd.f32 %v1169_v38, %v6583_v62  ;;  %v4880_v50 = vpop.f32.mrb[185].mxu0 }
 0x260   : > { %v1172_v28 = vpop.f32.mrb[186].mxu0 }
 0x261   : > { %v1282_v34 = vadd.f32 %v1172_v28, %v6586_v18  ;;  %v4881_v37 = vpop.f32.mrb[187].mxu0 }
 0x263   : > { %5097 = vmatmul.mubr.msk.bf16.gmra.mrb[36].mxu0 %vm464_vm3, %v5726_v13  ;;  %v6840_v3 = vpop.f32.mrb[100].mxu1 }
 0x264   : > { %5100 = vmatprep.mubr.msk.bf16.mxu0 %vm5738_vm0, %v7828_v31  ;;  %7841 = vst [vmem:[#allocation29_spill] sm:$0xff] %v6840_v3  ;;  %v5056_v37 = vpop.f32.mrb[101].mxu1 }
 0x265   : > { %v1673_v51 = vpop.f32.mrb[102].mxu1 }
 0x266   : > { %v1177_v17 = vpop.f32.mrb[188].mxu0  ;;  %v5057_v13 = vpop.f32.mrb[103].mxu1  ;;  %v5728_v51 = vld [vmem:[%s5793_s25 + $0x68] sm:$0xff]  }
 0x267   : > { %v1283_v62 = vadd.f32 %v1177_v17, %v6597_v12  ;;  %v4884_v38 = vpop.f32.mrb[189].mxu0 }
 0x268   : > { %v1180_v50 = vpop.f32.mrb[190].mxu0 }
 0x269   : > { %v1284_v18 = vadd.f32 %v1180_v50, %v6600_v57  ;;  %v4885_v28 = vpop.f32.mrb[191].mxu0 }
 0x26b   : > { %5101 = vmatmul.mubr.msk.bf16.gmra.mrb[40].mxu0 %vm464_vm3, %v5727_v33  ;;  %v6848_v2 = vpop.f32.mrb[104].mxu1 }
 0x26c   : > { %5104 = vmatprep.mubr.msk.bf16.mxu0 %vm5738_vm0, %v7828_v31  ;;  %7842 = vst [vmem:[#allocation30_spill] sm:$0xff] %v6848_v2  ;;  %v5124_v28 = vpop.f32.mrb[105].mxu1 }
 0x26d   : > { %v6851_v37 = vpop.f32.mrb[106].mxu1 }
 0x26e   : > { %v1185_v46 = vpop.f32.mrb[192].mxu0  ;;  %7843 = vst [vmem:[#allocation31_spill] sm:$0xff] %v6851_v37  ;;  %v5125_v33 = vpop.f32.mrb[107].mxu1  ;;  %v7845_v37 = vld [vmem:[#allocation25_spill] sm:$0xff] }
 0x26f   : > { %v1285_v12 = vadd.f32 %v1185_v46, %v6612_v58  ;;  %v4888_v17 = vpop.f32.mrb[193].mxu0  ;;  %v7846_v33 = vld [vmem:[#allocation2_spill] sm:$0xff] }
 0x270   : > { %v1188_v38 = vpop.f32.mrb[194].mxu0 }
 0x271   : > { %v1286_v57 = vadd.f32 %v1188_v38, %v6617_v23  ;;  %v4889_v50 = vpop.f32.mrb[195].mxu0 }
 0x273   : > { %5105 = vmatmul.mubr.msk.bf16.gmra.mrb[44].mxu0 %vm464_vm3, %v5728_v51  ;;  %v6857_v17 = vpop.f32.mrb[108].mxu1 }
 0x274   : > { %5108 = vmatprep.mubr.msk.bf16.mxu0 %vm5738_vm0, %v7828_v31  ;;  %v5128_v50 = vpop.f32.mrb[109].mxu1 }
 0x275   : > { %v6862_v28 = vpop.f32.mrb[110].mxu1 }
 0x276   : > { %v1362_v13 = vpop.f32.mrb[196].mxu0  ;;  %v5129_v45 = vpop.f32.mrb[111].mxu1 }
 0x277   : > { %v1480_v3 = vadd.f32 %v1362_v13, %v1279_v44  ;;  %v4938_v58 = vpop.f32.mrb[197].mxu0  ;;  %v7848_v45 = vld [vmem:[#allocation15_spill] sm:$0xff] }
 0x278   : > { %v1365_v46 = vpop.f32.mrb[198].mxu0 }
 0x279   : > { %v1481_v2 = vadd.f32 %v1365_v46, %v1280_v55  ;;  %v6860_v23 = vadd.f32 %v7844_v24, %v1480_v3  ;;  %v4939_v38 = vpop.f32.mrb[199].mxu0 }
 0x27b   : > { %v6865_v51 = vadd.f32 %v7845_v37, %v1481_v2  ;;  %5109 = vmatmul.mubr.msk.bf16.gmra.mrb[48].mxu0 %vm464_vm3, %v7846_v33  ;;  %v6871_v3 = vpop.f32.mrb[112].mxu1 }
 0x27c   : > { %5112 = vmatprep.mubr.msk.bf16.mxu0 %vm5738_vm0, %v7828_v31  ;;  %v5132_v2 = vpop.f32.mrb[113].mxu1 }
 0x27d   : > { %v6876_v37 = vpop.f32.mrb[114].mxu1 }
 0x27e   : > { %v1370_v44 = vpop.f32.mrb[200].mxu0  ;;  %7847 = vst [vmem:[#allocation23_spill] sm:$0xff] %v6876_v37  ;;  %v5133_v33 = vpop.f32.mrb[115].mxu1 }
 0x27f   : > { %v1482_v13 = vadd.f32 %v1370_v44, %v1281_v36  ;;  %v4942_v55 = vpop.f32.mrb[201].mxu0  ;;  %v7849_v44 = vld [vmem:[#allocation24_spill] sm:$0xff] }
 0x280   : > { %v1373_v58 = vpop.f32.mrb[202].mxu0 }
 0x281   : > { %v1483_v24 = vadd.f32 %v1373_v58, %v1282_v34  ;;  %v6874_v46 = vadd.f32 %v6639_v49, %v1482_v13  ;;  %v4943_v38 = vpop.f32.mrb[203].mxu0  ;;  %v4265_v34 = vcombine.low %v7849_v44, %v7849_v44 }
 0x283   : > { %v6879_v50 = vadd.f32 %v6646_v6, %v1483_v24  ;;  %5113 = vmatmul.mubr.msk.bf16.gmra.mrb[52].mxu0 %vm464_vm3, %v7848_v45  ;;  %v6887_v58 = vpop.f32.mrb[116].mxu1 }
 0x284   : > { %5116 = vmatprep.mubr.msk.bf16.mxu0 %vm5738_vm0, %v7828_v31  ;;  %v5136_v2 = vpop.f32.mrb[117].mxu1 }
 0x285   : > { %v6892_v45 = vpop.f32.mrb[118].mxu1 }
 0x286   : > { %v1378_v36 = vpop.f32.mrb[204].mxu0  ;;  %v5137_v37 = vpop.f32.mrb[119].mxu1 }
 0x287   : > { %v1484_v49 = vadd.f32 %v1378_v36, %v1283_v62  ;;  %v4946_v13 = vpop.f32.mrb[205].mxu0  ;;  %v7850_v37 = vld [vmem:[#allocation3_spill] sm:$0xff] }
 0x288   : > { %v1381_v55 = vpop.f32.mrb[206].mxu0 }
 0x289   : > { %v1485_v38 = vadd.f32 %v1381_v55, %v1284_v18  ;;  %v6890_v6 = vadd.f32 %v6660_v14, %v1484_v49  ;;  %v4947_v24 = vpop.f32.mrb[207].mxu0 }
 0x28b   : > { %v6895_v33 = vadd.f32 %v6667_v47, %v1485_v38  ;;  %5117 = vmatmul.mubr.msk.bf16.gmra.mrb[56].mxu0 %vm464_vm3, %v4265_v34  ;;  %v6900_v13 = vpop.f32.mrb[120].mxu1 }
 0x28c   : > { %5184 = vmatprep.mubr.msk.bf16.mxu0 %vm5738_vm0, %v7828_v31  ;;  %v5140_v24 = vpop.f32.mrb[121].mxu1 }
 0x28d   : > { %v6905_v47 = vpop.f32.mrb[122].mxu1  ;;  %v7851_v24 = vld [vmem:[#allocation4_spill] sm:$0xff] }
 0x28e   : > { %v1386_v62 = vpop.f32.mrb[208].mxu0  ;;  %v5141_v38 = vpop.f32.mrb[123].mxu1 }
 0x28f   : > { %v1486_v36 = vadd.f32 %v1386_v62, %v1285_v12  ;;  %v4950_v44 = vpop.f32.mrb[209].mxu0 }
 0x290   : > { %v1389_v18 = vpop.f32.mrb[210].mxu0 }
 0x291   : > { %v1487_v14 = vadd.f32 %v1389_v18, %v1286_v57  ;;  %v6903_v49 = vadd.f32 %v6677_v63, %v1486_v36  ;;  %v4951_v55 = vpop.f32.mrb[211].mxu0 }
 0x293   : > { %v6908_v34 = vadd.f32 %v6683_v16, %v1487_v14  ;;  %5185 = vmatmul.mubr.msk.bf16.vlgmr.msra.gmra.mrb[60].mxu0 %vm464_vm3, %v7850_v37  ;;  %v6915_v62 = vpop.f32.mrb[124].mxu1 }
 0x294   : > { %5188 = vmatprep.mubr.msk.bf16.mxu0 %vm5738_vm0, %v7828_v31  ;;  %v5144_v18 = vpop.f32.mrb[125].mxu1 }
 0x295   : > { %v6921_v14 = vpop.f32.mrb[126].mxu1  ;;  %v7852_v18 = vld [vmem:[#allocation5_spill] sm:$0xff] }
 0x296   : > { %v1394_v12 = vpop.f32.mrb[212].mxu0 }
 0x297   : > { %v1488_v57 = vadd.f32 %v1394_v12, %v6644_v8  ;;  %v4954_v2 = vpop.f32.mrb[213].mxu0  ;;  %v5145_v8 = vpop.f32.mrb[127].mxu1 }
 0x298   : > { %v1397_v63 = vpop.f32.mrb[214].mxu0 }
 0x299   : > { %v1489_v36 = vadd.f32 %v1397_v63, %v6649_v1  ;;  %v6919_v44 = vadd.f32 %v6695_v56, %v1488_v57  ;;  %v4955_v16 = vpop.f32.mrb[215].mxu0 }
 0x29b   : > { %v6924_v55 = vadd.f32 %v6702_v40, %v1489_v36  ;;  %5189 = vmatmul.mubr.msk.bf16.gmra.mrb[64].mxu0 %vm464_vm3, %v7851_v24  ;;  %v6931_v12 = vpop.f32.mrb[128].mxu1 }
 0x29c   : > { %5192 = vmatprep.mubr.msk.bf16.mxu0 %vm5738_vm0, %v7828_v31  ;;  %v5148_v63 = vpop.f32.mrb[129].mxu1 }
 0x29d   : > { %v6937_v36 = vpop.f32.mrb[130].mxu1  ;;  %v7853_v63 = vld [vmem:[#allocation6_spill] sm:$0xff] }
 0x29e   : > { %v1402_v37 = vpop.f32.mrb[216].mxu0 }
 0x29f   : > { %v1490_v1 = vadd.f32 %v1402_v37, %v6664_v35  ;;  %v4958_v38 = vpop.f32.mrb[217].mxu0  ;;  %v5149_v35 = vpop.f32.mrb[131].mxu1 }
 0x2a0   : > { %v1405_v56 = vpop.f32.mrb[218].mxu0 }
 0x2a1   : > { %v1491_v57 = vadd.f32 %v1405_v56, %v6670_v59  ;;  %v6935_v2 = vadd.f32 %v6712_v9, %v1490_v1  ;;  %v4959_v40 = vpop.f32.mrb[219].mxu0 }
 0x2a3   : > { %v6940_v16 = vadd.f32 %v6718_v52, %v1491_v57  ;;  %5193 = vmatmul.mubr.msk.bf16.gmra.mrb[68].mxu0 %vm464_vm3, %v7852_v18  ;;  %v6947_v37 = vpop.f32.mrb[132].mxu1 }
 0x2a4   : > { %5196 = vmatprep.mubr.msk.bf16.mxu0 %vm5738_vm0, %v7828_v31  ;;  %v5152_v56 = vpop.f32.mrb[133].mxu1 }
 0x2a5   : > { %v6953_v57 = vpop.f32.mrb[134].mxu1  ;;  %v7854_v56 = vld [vmem:[#allocation7_spill] sm:$0xff] }
 0x2a6   : > { %v1410_v24 = vpop.f32.mrb[220].mxu0 }
 0x2a7   : > { %v1492_v59 = vadd.f32 %v1410_v24, %v6681_v7  ;;  %v4962_v8 = vpop.f32.mrb[221].mxu0  ;;  %v5153_v7 = vpop.f32.mrb[135].mxu1 }
 0x2a8   : > { %v1413_v9 = vpop.f32.mrb[222].mxu0 }
 0x2a9   : > { %v1493_v1 = vadd.f32 %v1413_v9, %v6686_v61  ;;  %v6951_v38 = vadd.f32 %v6728_v4, %v1492_v59  ;;  %v4963_v52 = vpop.f32.mrb[223].mxu0 }
 0x2ab   : > { %v6956_v40 = vadd.f32 %v6734_v42, %v1493_v1  ;;  %5197 = vmatmul.mubr.msk.bf16.gmra.mrb[72].mxu0 %vm464_vm3, %v7853_v63  ;;  %v6963_v24 = vpop.f32.mrb[136].mxu1 }
 0x2ac   : > { %5200 = vmatprep.mubr.msk.bf16.mxu0 %vm5738_vm0, %v7828_v31  ;;  %v5156_v9 = vpop.f32.mrb[137].mxu1 }
 0x2ad   : > { %v6969_v1 = vpop.f32.mrb[138].mxu1 }
 0x2ae   : > { %v1418_v18 = vpop.f32.mrb[224].mxu0  ;;  %v5157_v63 = vpop.f32.mrb[139].mxu1 }
 0x2af   : > { %v1494_v61 = vadd.f32 %v1418_v18, %v6699_v5  ;;  %v4966_v35 = vpop.f32.mrb[225].mxu0  ;;  %v2375_v5 = vld [vmem:[%s7780_s3 + $0x4] sm:$0xf] }
 0x2b0   : > { %v1421_v4 = vpop.f32.mrb[226].mxu0  ;;  %5672 = vmatprep.subr.msk.bf16.mxu1 %vm2520_vm5, %v2375_v5 }
 0x2b1   : > { %v1495_v59 = vadd.f32 %v1421_v4, %v6705_v15  ;;  %v6967_v8 = vadd.f32 %v6744_v54, %v1494_v61  ;;  %v4967_v42 = vpop.f32.mrb[227].mxu0 }
 0x2b3   : > { %v6972_v52 = vadd.f32 %v6750_v19, %v1495_v59  ;;  %5201 = vmatmul.mubr.msk.bf16.gmra.mrb[76].mxu0 %vm464_vm3, %v7854_v56  ;;  %v2522_v19 = vsel %vm2520_vm5, %v2375_v5, 0  ;;  %v6984_v61 = vpop.f32.mrb[140].mxu1 }
 0x2b4   : > { %5204 = vmatprep.mubr.msk.bf16.mxu0 %vm5738_vm0, %v7828_v31  ;;  %5245 = vmatpush3.bf16.msra.mxu1 %v2522_v19  ;;  %v5160_v42 = vpop.f32.mrb[141].mxu1 }
 0x2b5   : > { %v6990_v9 = vpop.f32.mrb[142].mxu1  ;;  %v7856_v42 = vld [vmem:[#allocation9_spill] sm:$0xff] }
 0x2b6   : > { %v1426_v15 = vpop.f32.mrb[228].mxu0  ;;  %v5161_v5 = vpop.f32.mrb[143].mxu1 }
 0x2b7   : > { %v1496_v54 = vadd.f32 %v1426_v15, %v6716_v53  ;;  %v4970_v7 = vpop.f32.mrb[229].mxu0  ;;  %v7855_v53 = vld [vmem:[#allocation8_spill] sm:$0xff] }
 0x2b8   : > { %v1429_v18 = vpop.f32.mrb[230].mxu0 }
 0x2b9   : > { %v1497_v35 = vadd.f32 %v1429_v18, %v6721_v60  ;;  %v6988_v4 = vadd.f32 %v6760_v41, %v1496_v54  ;;  %v4971_v59 = vpop.f32.mrb[231].mxu0 }
 0x2bb   : > { %v6993_v56 = vadd.f32 %v6766_v25, %v1497_v35  ;;  %5205 = vmatmul.mubr.msk.bf16.gmra.mrb[80].mxu0 %vm464_vm3, %v7855_v53  ;;  %v7000_v54 = vpop.f32.mrb[144].mxu1 }
 0x2bc   : > { %5208 = vmatprep.mubr.msk.bf16.mxu0 %vm5738_vm0, %v7828_v31  ;;  %v5164_v18 = vpop.f32.mrb[145].mxu1 }
 0x2bd   : > { %v7006_v35 = vpop.f32.mrb[146].mxu1  ;;  %v7857_v18 = vld [vmem:[#allocation10_spill] sm:$0xff] }
 0x2be   : > { %v1434_v63 = vpop.f32.mrb[232].mxu0 }
 0x2bf   : > { %v1498_v60 = vadd.f32 %v1434_v63, %v6732_v20  ;;  %v4974_v15 = vpop.f32.mrb[233].mxu0  ;;  %v5165_v20 = vpop.f32.mrb[147].mxu1 }
 0x2c0   : > { %v1437_v41 = vpop.f32.mrb[234].mxu0 }
 0x2c1   : > { %v1499_v7 = vadd.f32 %v1437_v41, %v6737_v10  ;;  %v7004_v19 = vadd.f32 %v6776_v22, %v1498_v60  ;;  %v4975_v25 = vpop.f32.mrb[235].mxu0 }
 0x2c3   : > { %v7009_v59 = vadd.f32 %v6782_v21, %v1499_v7  ;;  %5209 = vmatmul.mubr.msk.bf16.gmra.mrb[84].mxu0 %vm464_vm3, %v7856_v42  ;;  %v7016_v63 = vpop.f32.mrb[148].mxu1 }
 0x2c4   : > { %5212 = vmatprep.mubr.msk.bf16.mxu0 %vm5738_vm0, %v7828_v31  ;;  %v5168_v41 = vpop.f32.mrb[149].mxu1 }
 0x2c5   : > { %v7022_v7 = vpop.f32.mrb[150].mxu1  ;;  %v7860_v41 = vld [vmem:[#allocation11_spill] sm:$0xff] }
 0x2c6   : > { %v1442_v53 = vpop.f32.mrb[236].mxu0 }
 0x2c7   : > { %v1500_v10 = vadd.f32 %v1442_v53, %v6748_v26  ;;  %v4978_v5 = vpop.f32.mrb[237].mxu0  ;;  %v5169_v26 = vpop.f32.mrb[151].mxu1 }
 0x2c8   : > { %v1445_v22 = vpop.f32.mrb[238].mxu0 }
 0x2c9   : > { %v1501_v60 = vadd.f32 %v1445_v22, %v6753_v11  ;;  %v7020_v15 = vadd.f32 %v6792_v39, %v1500_v10  ;;  %v4979_v21 = vpop.f32.mrb[239].mxu0 }
 0x2cb   : > { %v7025_v25 = vadd.f32 %v6798_v43, %v1501_v60  ;;  %5213 = vmatmul.mubr.msk.bf16.gmra.mrb[88].mxu0 %vm464_vm3, %v7857_v18  ;;  %v7032_v53 = vpop.f32.mrb[152].mxu1 }
 0x2cc   : > { %5216 = vmatprep.mubr.msk.bf16.mxu0 %vm5738_vm0, %v7828_v31  ;;  %7858 = vst [vmem:[#allocation25_spill] sm:$0xff] %v7032_v53  ;;  %v5172_v22 = vpop.f32.mrb[153].mxu1  ;;  %v7871_v53 = vld [vmem:[#allocation13_spill] sm:$0xff] }
 0x2cd   : > { %v7038_v60 = vpop.f32.mrb[154].mxu1  ;;  %v7864_v22 = vld [vmem:[#allocation22_spill] sm:$0xff] }
 0x2ce   : > { %v1450_v42 = vpop.f32.mrb[240].mxu0  ;;  %7859 = vst [vmem:[#allocation2_spill] sm:$0xff] %v7038_v60 }
 0x2cf   : > { %v1502_v11 = vadd.f32 %v1450_v42, %v6764_v27  ;;  %v4982_v20 = vpop.f32.mrb[241].mxu0  ;;  %v5173_v27 = vpop.f32.mrb[155].mxu1 }
 0x2d0   : > { %v1453_v39 = vpop.f32.mrb[242].mxu0  ;;  %v7862_v20 = vld [vmem:[#allocation21_spill] sm:$0xff]  ;;  %v7866_v27 = vld [vmem:[#allocation12_spill] sm:$0xff] }
 0x2d1   : > { %v1503_v10 = vadd.f32 %v1453_v39, %v6769_v30  ;;  %v7036_v5 = vadd.f32 %v6808_v48, %v1502_v11  ;;  %v4983_v43 = vpop.f32.mrb[243].mxu0 }
 0x2d3   : > { %v7041_v21 = vadd.f32 %v6813_v32, %v1503_v10  ;;  %5217 = vmatmul.mubr.msk.bf16.gmra.mrb[92].mxu0 %vm464_vm3, %v7860_v41 }
 0x2d4   : > { %5220 = vmatprep.mubr.msk.bf16.mxu0 %vm5738_vm0, %v7828_v31 }
 0x2d5   : > { %v7048_v42 = vpop.f32.mrb[156].mxu1 }
 0x2d6   : > { %v1458_v18 = vpop.f32.mrb[244].mxu0  ;;  %7861 = vst [vmem:[#allocation15_spill] sm:$0xff] %v7048_v42  ;;  %v5176_v10 = vpop.f32.mrb[157].mxu1 }
 0x2d7   : > { %v1504_v30 = vadd.f32 %v1458_v18, %v6780_v29  ;;  %v4986_v26 = vpop.f32.mrb[245].mxu0  ;;  %v7054_v43 = vpop.f32.mrb[158].mxu1 }
 0x2d8   : > { %v1461_v48 = vpop.f32.mrb[246].mxu0  ;;  %7863 = vst [vmem:[#allocation24_spill] sm:$0xff] %v7054_v43  ;;  %v5177_v29 = vpop.f32.mrb[159].mxu1  ;;  %v7867_v26 = vld [vmem:[#allocation18_spill] sm:$0xff]  ;;  %v7869_v43 = vld [vmem:[#allocation27_spill] sm:$0xff] }
 0x2d9   : > { %v1505_v11 = vadd.f32 %v1461_v48, %v6785_v0  ;;  %v7052_v39 = vadd.f32 %v7862_v20, %v1504_v30  ;;  %v4987_v32 = vpop.f32.mrb[247].mxu0 }
 0x2da   : > { %v7868_v32 = vld [vmem:[#allocation19_spill] sm:$0xff] }
 0x2db   : > { %v7057_v41 = vadd.f32 %v7864_v22, %v1505_v11  ;;  %5221 = vmatmul.mubr.msk.bf16.gmra.mrb[96].mxu0 %vm464_vm3, %v7866_v27  ;;  %v7870_v27 = vld [vmem:[#allocation28_spill] sm:$0xff] }
 0x2dc   : > { %5224 = vmatprep.mubr.msk.bf16.mxu0 %vm5738_vm0, %v7828_v31 }
 0x2dd   : > { %7865 = vst [vmem:[#allocation3_spill] sm:$0xff] %v7057_v41  ;;  %v7064_v20 = vpop.f32.mrb[160].mxu1 }
 0x2de   : > { %v1466_v18 = vpop.f32.mrb[248].mxu0  ;;  %v5180_v22 = vpop.f32.mrb[161].mxu1 }
 0x2df   : > { %v1506_v0 = vadd.f32 %v1466_v18, %v7867_v26  ;;  %v4990_v48 = vpop.f32.mrb[249].mxu0  ;;  %v2070_v60 = vpop.f32.mrb[162].mxu1  ;;  %v7872_v26 = vld [vmem:[#allocation20_spill] sm:$0xff] }
 0x2e0   : > { %v1469_v30 = vpop.f32.mrb[250].mxu0  ;;  %v5181_v41 = vpop.f32.mrb[163].mxu1  ;;  %v7874_v60 = vld [vmem:[#allocation14_spill] sm:$0xff] }
 0x2e1   : > { %v1507_v10 = vadd.f32 %v1469_v30, %v7868_v32  ;;  %v7068_v42 = vadd.f32 %v7869_v43, %v1506_v0  ;;  %v4991_v11 = vpop.f32.mrb[251].mxu0  ;;  %v7873_v43 = vld [vmem:[#allocation29_spill] sm:$0xff] }
 0x2e3   : > { %v7071_v29 = vadd.f32 %v7870_v27, %v1507_v10  ;;  %5225 = vmatmul.mubr.msk.bf16.gmra.mrb[100].mxu0 %vm464_vm3, %v7871_v53 }
 0x2e4   : > { %5228 = vmatprep.mubr.msk.bf16.mxu0 %vm5738_vm0, %v7828_v31 }
 0x2e6   : > { %v1474_v18 = vpop.f32.mrb[252].mxu0 }
 0x2e7   : > { %v1508_v48 = vadd.f32 %v1474_v18, %v7872_v26  ;;  %v4994_v30 = vpop.f32.mrb[253].mxu0  ;;  %v7875_v18 = vld [vmem:[#allocation30_spill] sm:$0xff] }
 0x2e8   : > { %v1477_v32 = vpop.f32.mrb[254].mxu0 }
 0x2e9   : > { %v7079_v0 = vadd.f32 %v7873_v43, %v1508_v48  ;;  %v4995_v11 = vpop.f32.mrb[255].mxu0  ;;  %v7876_v48 = vld [vmem:[#allocation31_spill] sm:$0xff]  ;;  %v7877_v43 = vld [vmem:[#allocation17_spill] sm:$0xff] }
 0x2ea   : > { %v7878_v11 = vld [vmem:[#allocation26_spill] sm:$0xff] }
 0x2eb   : > { %5229 = vmatmul.mubr.msk.bf16.gmra.mrb[104].mxu0 %vm464_vm3, %v7874_v60  ;;  %v2102_v60 = vrot.slane %v7878_v11, 1 }
 0x2ec   : > { %5232 = vmatprep.mubr.msk.bf16.mxu0 %vm5738_vm0, %v7828_v31 }
 0x2ee   : > { %v1750_v53 = vpop.f32.mrb[0].mxu0 }
 0x2ef   : > { %v1868_v41 = vadd.f32 %v1750_v53, %v6860_v23  ;;  %v5062_v10 = vpop.f32.mrb[1].mxu0 }
 0x2f0   : > { %v1753_v22 = vpop.f32.mrb[2].mxu0 }
 0x2f1   : > { %v1869_v27 = vadd.f32 %v1753_v22, %v6865_v51  ;;  %v7088_v26 = vadd.f32 %v7875_v18, %v1868_v41  ;;  %v5063_v30 = vpop.f32.mrb[3].mxu0  ;;  %v7879_v51 = vld [vmem:[#allocation16_spill] sm:$0xff] }
 0x2f2   : > { %v2103_v41 = vsel %vm853_vm4, %v7879_v51, %v2102_v60 }
 0x2f3   : > { %v7091_v32 = vadd.f32 %v7876_v48, %v1869_v27  ;;  %5233 = vmatmul.mubr.msk.bf16.gmra.mrb[108].mxu0 %vm464_vm3, %v7877_v43 }
 0x2f4   : > { %5236 = vmatprep.mubr.msk.bf16.mxu0 %vm5738_vm0, %v7828_v31 }
 0x2f6   : > { %v1758_v23 = vpop.f32.mrb[4].mxu0 }
 0x2f7   : > { %v1870_v53 = vadd.f32 %v1758_v23, %v6874_v46  ;;  %v5066_v10 = vpop.f32.mrb[5].mxu0 }
 0x2f8   : > { %v1761_v22 = vpop.f32.mrb[6].mxu0 }
 0x2f9   : > { %v1871_v18 = vadd.f32 %v1761_v22, %v6879_v50  ;;  %v7103_v27 = vadd.f32 %v6857_v17, %v1870_v53  ;;  %v5067_v30 = vpop.f32.mrb[7].mxu0  ;;  %v7880_v53 = vld [vmem:[#allocation23_spill] sm:$0xff] }
 0x2fb   : > { %v7106_v48 = vadd.f32 %v6862_v28, %v1871_v18  ;;  %5237 = vmatmul.mubr.msk.bf16.gmra.mrb[112].mxu0 %vm464_vm3, %v2103_v41 }
 0x2fc   : > { %5240 = vmatprep.mubr.msk.bf16.mxu0 %vm5738_vm0, %v7828_v31 }
 0x2fe   : > { %v1766_v46 = vpop.f32.mrb[8].mxu0 }
 0x2ff   : > { %v1872_v43 = vadd.f32 %v1766_v46, %v6890_v6  ;;  %v5070_v11 = vpop.f32.mrb[9].mxu0 }
 0x300   : > { %v1769_v23 = vpop.f32.mrb[10].mxu0 }
 0x301   : > { %v1873_v10 = vadd.f32 %v1769_v23, %v6895_v33  ;;  %v7114_v50 = vadd.f32 %v6871_v3, %v1872_v43  ;;  %v5071_v17 = vpop.f32.mrb[11].mxu0 }
 0x303   : > { %v7117_v51 = vadd.f32 %v7880_v53, %v1873_v10  ;;  %5241 = vmatmul.mubr.msk.bf16.gmra.mrb[116].mxu0 %vm464_vm3, %v2102_v60 }
 0x306   : > { %v1774_v28 = vpop.f32.mrb[12].mxu0 }
 0x307   : > { %v1874_v41 = vadd.f32 %v1774_v28, %v6903_v49  ;;  %v5074_v31 = vpop.f32.mrb[13].mxu0 }
 0x308   : > { %v1777_v22 = vpop.f32.mrb[14].mxu0 }
 0x309   : > { %v1875_v6 = vadd.f32 %v1777_v22, %v6908_v34  ;;  %v7123_v18 = vadd.f32 %v6887_v58, %v1874_v41  ;;  %v5075_v33 = vpop.f32.mrb[15].mxu0 }
 0x30b   : > { %v7126_v3 = vadd.f32 %v6892_v45, %v1875_v6 }
 0x30e   : > { %v1782_v30 = vpop.f32.mrb[16].mxu0 }
 0x30f   : > { %v1876_v46 = vadd.f32 %v1782_v30, %v6919_v44  ;;  %v5078_v43 = vpop.f32.mrb[17].mxu0 }
 0x310   : > { %v1785_v11 = vpop.f32.mrb[18].mxu0 }
 0x311   : > { %v1877_v60 = vadd.f32 %v1785_v11, %v6924_v55  ;;  %v7131_v49 = vadd.f32 %v6900_v13, %v1876_v46  ;;  %v5079_v23 = vpop.f32.mrb[19].mxu0 }
 0x313   : > { %v7134_v34 = vadd.f32 %v6905_v47, %v1877_v60 }
 0x316   : > { %v1790_v58 = vpop.f32.mrb[20].mxu0 }
 0x317   : > { %v1878_v10 = vadd.f32 %v1790_v58, %v6935_v2  ;;  %v5082_v17 = vpop.f32.mrb[21].mxu0 }
 0x318   : > { %v1793_v45 = vpop.f32.mrb[22].mxu0 }
 0x319   : > { %v1879_v53 = vadd.f32 %v1793_v45, %v6940_v16  ;;  %v7139_v44 = vadd.f32 %v6915_v62, %v1878_v10  ;;  %v5083_v28 = vpop.f32.mrb[23].mxu0 }
 0x31b   : > { %v7142_v55 = vadd.f32 %v6921_v14, %v1879_v53 }
 0x31e   : > { %v1798_v13 = vpop.f32.mrb[24].mxu0 }
 0x31f   : > { %v1880_v41 = vadd.f32 %v1798_v13, %v6951_v38  ;;  %v5086_v31 = vpop.f32.mrb[25].mxu0 }
 0x320   : > { %v1801_v47 = vpop.f32.mrb[26].mxu0 }
 0x321   : > { %v1881_v22 = vadd.f32 %v1801_v47, %v6956_v40  ;;  %v7147_v2 = vadd.f32 %v6931_v12, %v1880_v41  ;;  %v5087_v6 = vpop.f32.mrb[27].mxu0 }
 0x323   : > { %v7150_v16 = vadd.f32 %v6937_v36, %v1881_v22  ;;  %v7164_v36 = vld [vmem:[%s7780_s3] sm:$0xf] }
 0x324   : > { %5673 = vmatprep.subr.msk.bf16.mxu1 %vm2520_vm5, %v7164_v36 }
 0x326   : > { %v1806_v62 = vpop.f32.mrb[28].mxu0 }
 0x327   : > { %v1882_v33 = vadd.f32 %v1806_v62, %v6967_v8  ;;  %v5090_v30 = vpop.f32.mrb[29].mxu0 }
 0x328   : > { %v1809_v14 = vpop.f32.mrb[30].mxu0 }
 0x329   : > { %v1883_v46 = vadd.f32 %v1809_v14, %v6972_v52  ;;  %v7155_v38 = vadd.f32 %v6947_v37, %v1882_v33  ;;  %v5091_v43 = vpop.f32.mrb[31].mxu0 }
 0x32b   : > { %v7158_v40 = vadd.f32 %v6953_v57, %v1883_v46  ;;  %v7881_v46 = vld [vmem:[#allocation3_spill] sm:$0xff] }
 0x32e   : > { %v1814_v12 = vpop.f32.mrb[32].mxu0 }
 0x32f   : > { %v1884_v11 = vadd.f32 %v1814_v12, %v6988_v4  ;;  %v5094_v60 = vpop.f32.mrb[33].mxu0  ;;  %v7882_v12 = vld [vmem:[#allocation25_spill] sm:$0xff] }
 0x330   : > { %v1817_v8 = vpop.f32.mrb[34].mxu0  ;;  %v7883_v60 = vld [vmem:[#allocation2_spill] sm:$0xff] }
 0x331   : > { %v1885_v37 = vadd.f32 %v1817_v8, %v6993_v56  ;;  %v7170_v52 = vadd.f32 %v6963_v24, %v1884_v11  ;;  %v5095_v57 = vpop.f32.mrb[35].mxu0 }
 0x333   : > { %v7173_v23 = vadd.f32 %v6969_v1, %v1885_v37 }
 0x336   : > { %v1822_v4 = vpop.f32.mrb[36].mxu0 }
 0x337   : > { %v1886_v58 = vadd.f32 %v1822_v4, %v7004_v19  ;;  %v5098_v10 = vpop.f32.mrb[37].mxu0  ;;  %v7884_v4 = vld [vmem:[#allocation15_spill] sm:$0xff] }
 0x338   : > { %v1825_v17 = vpop.f32.mrb[38].mxu0  ;;  %v7885_v10 = vld [vmem:[#allocation24_spill] sm:$0xff] }
 0x339   : > { %v1887_v45 = vadd.f32 %v1825_v17, %v7009_v59  ;;  %v7178_v53 = vadd.f32 %v6984_v61, %v1886_v58  ;;  %v5099_v28 = vpop.f32.mrb[39].mxu0 }
 0x33b   : > { %v7181_v56 = vadd.f32 %v6990_v9, %v1887_v45 }
 0x33e   : > { %v1830_v24 = vpop.f32.mrb[40].mxu0 }
 0x33f   : > { %v1888_v13 = vadd.f32 %v1830_v24, %v7020_v15  ;;  %v5102_v41 = vpop.f32.mrb[41].mxu0 }
 0x340   : > { %v1833_v1 = vpop.f32.mrb[42].mxu0 }
 0x341   : > { %v1889_v31 = vadd.f32 %v1833_v1, %v7025_v25  ;;  %v7186_v19 = vadd.f32 %v7000_v54, %v1888_v13  ;;  %v5103_v47 = vpop.f32.mrb[43].mxu0 }
 0x343   : > { %v7189_v59 = vadd.f32 %v7006_v35, %v1889_v31 }
 0x346   : > { %v1838_v61 = vpop.f32.mrb[44].mxu0 }
 0x347   : > { %v1890_v22 = vadd.f32 %v1838_v61, %v7036_v5  ;;  %v5106_v6 = vpop.f32.mrb[45].mxu0 }
 0x348   : > { %v1841_v9 = vpop.f32.mrb[46].mxu0 }
 0x349   : > { %v1891_v62 = vadd.f32 %v1841_v9, %v7041_v21  ;;  %v7194_v15 = vadd.f32 %v7016_v63, %v1890_v22  ;;  %v5107_v33 = vpop.f32.mrb[47].mxu0 }
 0x34b   : > { %v7197_v25 = vadd.f32 %v7022_v7, %v1891_v62 }
 0x34e   : > { %v1846_v54 = vpop.f32.mrb[48].mxu0 }
 0x34f   : > { %v1892_v30 = vadd.f32 %v1846_v54, %v7052_v39  ;;  %v5110_v14 = vpop.f32.mrb[49].mxu0 }
 0x350   : > { %v1849_v35 = vpop.f32.mrb[50].mxu0 }
 0x351   : > { %v1893_v43 = vadd.f32 %v1849_v35, %v7881_v46  ;;  %v7202_v5 = vadd.f32 %v7882_v12, %v1892_v30  ;;  %v5111_v11 = vpop.f32.mrb[51].mxu0 }
 0x353   : > { %v7205_v21 = vadd.f32 %v7883_v60, %v1893_v43 }
 0x356   : > { %v1854_v63 = vpop.f32.mrb[52].mxu0 }
 0x357   : > { %v1894_v8 = vadd.f32 %v1854_v63, %v7068_v42  ;;  %v5114_v37 = vpop.f32.mrb[53].mxu0 }
 0x358   : > { %v1857_v7 = vpop.f32.mrb[54].mxu0 }
 0x359   : > { %v1895_v57 = vadd.f32 %v1857_v7, %v7071_v29  ;;  %v7210_v39 = vadd.f32 %v7884_v4, %v1894_v8  ;;  %v5115_v58 = vpop.f32.mrb[55].mxu0  ;;  %v7222_v29 = vld [vmem:[%s7779_s2] ss:$0 sm:$0xff] }
 0x35b   : > { %v7213_v17 = vadd.f32 %v7885_v10, %v1895_v57 }
 0x35e   : > { %v1862_v45 = vpop.f32.mrb[56].mxu0 }
 0x35f   : > { %v1896_v28 = vadd.f32 %v1862_v45, %v7079_v0  ;;  %v5118_v24 = vpop.f32.mrb[57].mxu0 }
 0x360   : > { %v1865_v13 = vpop.f32.mrb[58].mxu0 }
 0x361   : > { %v7217_v41 = vadd.f32 %v7064_v20, %v1896_v28  ;;  %v5119_v42 = vpop.f32.mrb[59].mxu0 }
 0x366   : > { %v2147_v1 = vpop.f32.mrb[60].mxu0 }
 0x367   : > { %v2265_v31 = vadd.f32 %v2147_v1, %v7088_v26  ;;  %v5186_v47 = vpop.f32.mrb[61].mxu0 }
 0x368   : > { %v2150_v61 = vpop.f32.mrb[62].mxu0 }
 0x369   : > { %v2301_v22 = vadd.f32 %v7222_v29, %v2265_v31  ;;  %v2266_v0 = vadd.f32 %v2150_v61, %v7091_v32  ;;  %v5187_v6 = vpop.f32.mrb[63].mxu0 }
 0x36b   : > { %v2302_v9 = vadd.f32 %v7222_v29, %v2266_v0  ;;  %v2330_v20 = vmax.f32 %v2301_v22, 0.0 }
 0x36d   : > { %v2331_v62 = vmax.f32 %v2302_v9, 0.0 }
 0x36e   : > { %v2155_v33 = vpop.f32.mrb[64].mxu0 }
 0x36f   : > { %v7228_v54 = vpack.c.bf16 %v2331_v62, %v2330_v20  ;;  %v2267_v30 = vadd.f32 %v2155_v33, %v7103_v27  ;;  %v5190_v14 = vpop.f32.mrb[65].mxu0 }
 0x370   : > { %v2158_v35 = vpop.f32.mrb[66].mxu0 }
 0x371   : > { %v2303_v26 = vadd.f32 %v7222_v29, %v2267_v30  ;;  %v2268_v46 = vadd.f32 %v2158_v35, %v7106_v48  ;;  %v5191_v43 = vpop.f32.mrb[67].mxu0  ;;  %v2386_v32 = vshll.u32 %v7228_v54, 16  ;;  %v2384_v10 = vshrl.u32 %v7228_v54, 16 }
 0x372   : > { %v2678_v35 = vsel %vm2520_vm5, %v7164_v36, 0  ;;  %v7261_v43 = vld [vmem:[%s7780_s3 + $0x8] sm:$0xf] }
 0x373   : > { %v2304_v12 = vadd.f32 %v7222_v29, %v2268_v46  ;;  %v2332_v11 = vmax.f32 %v2303_v26, 0.0  ;;  %v2388_v27 = vrot.slane %v2386_v32, 1 }
 0x375   : > { %v2333_v60 = vmax.f32 %v2304_v12, 0.0  ;;  %v2389_v24 = vor.u32 %v2388_v27, %v2384_v10 }
 0x376   : > { %v2163_v63 = vpop.f32.mrb[68].mxu0 }
 0x377   : > { %v7235_v8 = vpack.c.bf16 %v2333_v60, %v2332_v11  ;;  %v2269_v37 = vadd.f32 %v2163_v63, %v7114_v50  ;;  %v5194_v7 = vpop.f32.mrb[69].mxu0 }
 0x378   : > { %v2166_v57 = vpop.f32.mrb[70].mxu0 }
 0x379   : > { %v2305_v4 = vadd.f32 %v7222_v29, %v2269_v37  ;;  %v2270_v58 = vadd.f32 %v2166_v57, %v7117_v51  ;;  %v5195_v48 = vpop.f32.mrb[71].mxu0  ;;  %v2391_v45 = vshll.u32 %v7235_v8, 16  ;;  %v2395_v6 = vshrl.u32 %v7235_v8, 16 }
 0x37b   : > { %v2306_v28 = vadd.f32 %v7222_v29, %v2270_v58  ;;  %v2393_v13 = vrot.slane %v2391_v45, 1  ;;  %v2334_v42 = vmax.f32 %v2305_v4, 0.0 }
 0x37d   : > { %v2335_v1 = vmax.f32 %v2306_v28, 0.0  ;;  %v2394_v50 = vsel %vm340_vm2, %v2389_v24, %v2393_v13  ;;  %v2397_v33 = vor.u32 %v2395_v6, %v2393_v13 }
 0x37e   : > { %v2171_v31 = vpop.f32.mrb[72].mxu0  ;;  %5246 = vmatprep.mubr.msk.bf16.mxu1 %vm2483_vm6, %v2394_v50 }
 0x37f   : > { %v7245_v47 = vpack.c.bf16 %v2335_v1, %v2334_v42  ;;  %v2271_v51 = vadd.f32 %v2171_v31, %v7123_v18  ;;  %v5198_v61 = vpop.f32.mrb[73].mxu0 }
 0x380   : > { %v2174_v22 = vpop.f32.mrb[74].mxu0 }
 0x381   : > { %v2307_v0 = vadd.f32 %v7222_v29, %v2271_v51  ;;  %v2272_v9 = vadd.f32 %v2174_v22, %v7126_v3  ;;  %v5199_v20 = vpop.f32.mrb[75].mxu0  ;;  %v2399_v62 = vshll.u32 %v7245_v47, 16  ;;  %v2403_v7 = vshrl.u32 %v7245_v47, 16 }
 0x383   : > { %v2308_v30 = vadd.f32 %v7222_v29, %v2272_v9  ;;  %v2401_v14 = vrot.slane %v2399_v62, 1  ;;  %v2336_v26 = vmax.f32 %v2307_v0, 0.0 }
 0x385   : > { %v2337_v18 = vmax.f32 %v2308_v30, 0.0  ;;  %v7256_v46 = vsel %vm340_vm2, %v2397_v33, %v2401_v14  ;;  %v2405_v4 = vor.u32 %v2403_v7, %v2401_v14 }
 0x386   : > { %v2179_v3 = vpop.f32.mrb[76].mxu0  ;;  %5247 = vmatmul.mubr.msk.bf16.vlgmr.msra.gmra.mrb[164].mxu1 %vm2483_vm6, %v7256_v46 }
 0x387   : > { %v7265_v12 = vpack.c.bf16 %v2337_v18, %v2336_v26  ;;  %v2273_v32 = vadd.f32 %v2179_v3, %v7131_v49  ;;  %v5202_v11 = vpop.f32.mrb[77].mxu0  ;;  %5271 = vmatpush3.bf16.msra.mxu1 %v2678_v35 }
 0x388   : > { %v2182_v36 = vpop.f32.mrb[78].mxu0  ;;  %5674 = vmatprep.subr.msk.bf16.mxu1 %vm2520_vm5, %v7261_v43 }
 0x389   : > { %v2309_v60 = vadd.f32 %v7222_v29, %v2273_v32  ;;  %v2274_v63 = vadd.f32 %v2182_v36, %v7134_v34  ;;  %v5203_v37 = vpop.f32.mrb[79].mxu0  ;;  %v2407_v27 = vshll.u32 %v7265_v12, 16  ;;  %v2411_v31 = vshrl.u32 %v7265_v12, 16 }
 0x38b   : > { %v2310_v57 = vadd.f32 %v7222_v29, %v2274_v63  ;;  %v2409_v58 = vrot.slane %v2407_v27, 1  ;;  %v2338_v49 = vmax.f32 %v2309_v60, 0.0 }
 0x38d   : > { %v2339_v48 = vmax.f32 %v2310_v57, 0.0  ;;  %v7276_v10 = vsel %vm340_vm2, %v2405_v4, %v2409_v58  ;;  %v2413_v22 = vor.u32 %v2411_v31, %v2409_v58 }
 0x38e   : > { %v2187_v45 = vpop.f32.mrb[80].mxu0  ;;  %5250 = vmatprep.mubr.msk.bf16.mxu1 %vm2483_vm6, %v7276_v10 }
 0x38f   : > { %v7280_v28 = vpack.c.bf16 %v2339_v48, %v2338_v49  ;;  %v2275_v34 = vadd.f32 %v2187_v45, %v7139_v44  ;;  %v5206_v24 = vpop.f32.mrb[81].mxu0 }
 0x390   : > { %v2190_v13 = vpop.f32.mrb[82].mxu0 }
 0x391   : > { %v2311_v42 = vadd.f32 %v7222_v29, %v2275_v34  ;;  %v2276_v1 = vadd.f32 %v2190_v13, %v7142_v55  ;;  %v5207_v50 = vpop.f32.mrb[83].mxu0  ;;  %v2415_v51 = vshll.u32 %v7280_v28, 16  ;;  %v2419_v18 = vshrl.u32 %v7280_v28, 16 }
 0x393   : > { %v2312_v61 = vadd.f32 %v7222_v29, %v2276_v1  ;;  %v2417_v0 = vrot.slane %v2415_v51, 1  ;;  %v2340_v6 = vmax.f32 %v2311_v42, 0.0 }
 0x395   : > { %v2341_v9 = vmax.f32 %v2312_v61, 0.0  ;;  %v7289_v20 = vsel %vm340_vm2, %v2413_v22, %v2417_v0  ;;  %v2421_v11 = vor.u32 %v2419_v18, %v2417_v0 }
 0x396   : > { %v2195_v44 = vpop.f32.mrb[84].mxu0  ;;  %5251 = vmatmul.mubr.msk.bf16.gmra.mrb[168].mxu1 %vm2483_vm6, %v7289_v20 }
 0x397   : > { %v7293_v62 = vpack.c.bf16 %v2341_v9, %v2340_v6  ;;  %v2277_v55 = vadd.f32 %v2195_v44, %v7147_v2  ;;  %v5210_v33 = vpop.f32.mrb[85].mxu0 }
 0x398   : > { %v2198_v30 = vpop.f32.mrb[86].mxu0 }
 0x399   : > { %v2313_v14 = vadd.f32 %v7222_v29, %v2277_v55  ;;  %v2278_v35 = vadd.f32 %v2198_v30, %v7150_v16  ;;  %v5211_v26 = vpop.f32.mrb[87].mxu0  ;;  %v2423_v3 = vshll.u32 %v7293_v62, 16  ;;  %v2427_v48 = vshrl.u32 %v7293_v62, 16 }
 0x39b   : > { %v2314_v32 = vadd.f32 %v7222_v29, %v2278_v35  ;;  %v2425_v36 = vrot.slane %v2423_v3, 1  ;;  %v2342_v60 = vmax.f32 %v2313_v14, 0.0 }
 0x39d   : > { %v2343_v63 = vmax.f32 %v2314_v32, 0.0  ;;  %v7302_v37 = vsel %vm340_vm2, %v2421_v11, %v2425_v36  ;;  %v2429_v24 = vor.u32 %v2427_v48, %v2425_v36 }
 0x39e   : > { %v2203_v2 = vpop.f32.mrb[88].mxu0  ;;  %5254 = vmatprep.mubr.msk.bf16.mxu1 %vm2483_vm6, %v7302_v37 }
 0x39f   : > { %v7306_v7 = vpack.c.bf16 %v2343_v63, %v2342_v60  ;;  %v2279_v16 = vadd.f32 %v2203_v2, %v7155_v38  ;;  %v5214_v27 = vpop.f32.mrb[89].mxu0 }
 0x3a0   : > { %v2206_v57 = vpop.f32.mrb[90].mxu0 }
 0x3a1   : > { %v2315_v4 = vadd.f32 %v7222_v29, %v2279_v16  ;;  %v2280_v58 = vadd.f32 %v2206_v57, %v7158_v40  ;;  %v5215_v49 = vpop.f32.mrb[91].mxu0  ;;  %v2431_v45 = vshll.u32 %v7306_v7, 16  ;;  %v2435_v9 = vshrl.u32 %v7306_v7, 16 }
 0x3a3   : > { %v2316_v34 = vadd.f32 %v7222_v29, %v2280_v58  ;;  %v2433_v13 = vrot.slane %v2431_v45, 1  ;;  %v2344_v42 = vmax.f32 %v2315_v4, 0.0 }
 0x3a5   : > { %v2345_v1 = vmax.f32 %v2316_v34, 0.0  ;;  %v7315_v50 = vsel %vm340_vm2, %v2429_v24, %v2433_v13  ;;  %v2437_v33 = vor.u32 %v2435_v9, %v2433_v13 }
 0x3a6   : > { %v2211_v38 = vpop.f32.mrb[92].mxu0  ;;  %5255 = vmatmul.mubr.msk.bf16.gmra.mrb[172].mxu1 %vm2483_vm6, %v7315_v50 }
 0x3a7   : > { %v7319_v31 = vpack.c.bf16 %v2345_v1, %v2344_v42  ;;  %v2281_v40 = vadd.f32 %v2211_v38, %v7170_v52  ;;  %v5218_v51 = vpop.f32.mrb[93].mxu0 }
 0x3a8   : > { %v2214_v61 = vpop.f32.mrb[94].mxu0 }
 0x3a9   : > { %v2317_v22 = vadd.f32 %v7222_v29, %v2281_v40  ;;  %v2282_v0 = vadd.f32 %v2214_v61, %v7173_v23  ;;  %v5219_v6 = vpop.f32.mrb[95].mxu0  ;;  %v2439_v44 = vshll.u32 %v7319_v31, 16  ;;  %v2443_v63 = vshrl.u32 %v7319_v31, 16 }
 0x3ab   : > { %v2318_v55 = vadd.f32 %v7222_v29, %v2282_v0  ;;  %v2441_v30 = vrot.slane %v2439_v44, 1  ;;  %v2346_v14 = vmax.f32 %v2317_v22, 0.0 }
 0x3ad   : > { %v2347_v35 = vmax.f32 %v2318_v55, 0.0  ;;  %v7328_v26 = vsel %vm340_vm2, %v2437_v33, %v2441_v30  ;;  %v2445_v27 = vor.u32 %v2443_v63, %v2441_v30 }
 0x3ae   : > { %v2219_v52 = vpop.f32.mrb[96].mxu0  ;;  %5258 = vmatprep.mubr.msk.bf16.mxu1 %vm2483_vm6, %v7328_v26 }
 0x3af   : > { %v7332_v18 = vpack.c.bf16 %v2347_v35, %v2346_v14  ;;  %v2283_v23 = vadd.f32 %v2219_v52, %v7178_v53  ;;  %v5222_v3 = vpop.f32.mrb[97].mxu0 }
 0x3b0   : > { %v2222_v32 = vpop.f32.mrb[98].mxu0 }
 0x3b1   : > { %v2319_v11 = vadd.f32 %v7222_v29, %v2283_v23  ;;  %v2284_v36 = vadd.f32 %v2222_v32, %v7181_v56  ;;  %v5223_v60 = vpop.f32.mrb[99].mxu0  ;;  %v2447_v2 = vshll.u32 %v7332_v18, 16  ;;  %v2451_v1 = vshrl.u32 %v7332_v18, 16 }
 0x3b3   : > { %v2320_v16 = vadd.f32 %v7222_v29, %v2284_v36  ;;  %v2449_v57 = vrot.slane %v2447_v2, 1  ;;  %v2348_v4 = vmax.f32 %v2319_v11, 0.0 }
 0x3b5   : > { %v2349_v58 = vmax.f32 %v2320_v16, 0.0  ;;  %v7341_v49 = vsel %vm340_vm2, %v2445_v27, %v2449_v57  ;;  %v2453_v51 = vor.u32 %v2451_v1, %v2449_v57 }
 0x3b6   : > { %v2227_v53 = vpop.f32.mrb[100].mxu0  ;;  %5259 = vmatmul.mubr.msk.bf16.gmra.mrb[176].mxu1 %vm2483_vm6, %v7341_v49 }
 0x3b7   : > { %v7345_v48 = vpack.c.bf16 %v2349_v58, %v2348_v4  ;;  %v2285_v56 = vadd.f32 %v2227_v53, %v7186_v19  ;;  %v5226_v45 = vpop.f32.mrb[101].mxu0 }
 0x3b8   : > { %v2230_v34 = vpop.f32.mrb[102].mxu0 }
 0x3b9   : > { %v2321_v24 = vadd.f32 %v7222_v29, %v2285_v56  ;;  %v2286_v13 = vadd.f32 %v2230_v34, %v7189_v59  ;;  %v5227_v42 = vpop.f32.mrb[103].mxu0  ;;  %v2455_v38 = vshll.u32 %v7345_v48, 16  ;;  %v2459_v35 = vshrl.u32 %v7345_v48, 16 }
 0x3bb   : > { %v2322_v40 = vadd.f32 %v7222_v29, %v2286_v13  ;;  %v2457_v61 = vrot.slane %v2455_v38, 1  ;;  %v2350_v22 = vmax.f32 %v2321_v24, 0.0 }
 0x3bd   : > { %v2351_v0 = vmax.f32 %v2322_v40, 0.0  ;;  %v7354_v6 = vsel %vm340_vm2, %v2453_v51, %v2457_v61  ;;  %v2461_v3 = vor.u32 %v2459_v35, %v2457_v61 }
 0x3be   : > { %v2235_v19 = vpop.f32.mrb[104].mxu0  ;;  %5262 = vmatprep.mubr.msk.bf16.mxu1 %vm2483_vm6, %v7354_v6 }
 0x3bf   : > { %v7358_v9 = vpack.c.bf16 %v2351_v0, %v2350_v22  ;;  %v2287_v59 = vadd.f32 %v2235_v19, %v7194_v15  ;;  %v5230_v44 = vpop.f32.mrb[105].mxu0 }
 0x3c0   : > { %v2238_v55 = vpop.f32.mrb[106].mxu0 }
 0x3c1   : > { %v2323_v33 = vadd.f32 %v7222_v29, %v2287_v59  ;;  %v2288_v30 = vadd.f32 %v2238_v55, %v7197_v25  ;;  %v5231_v14 = vpop.f32.mrb[107].mxu0  ;;  %v2463_v52 = vshll.u32 %v7358_v9, 16  ;;  %v2467_v58 = vshrl.u32 %v7358_v9, 16 }
 0x3c3   : > { %v2324_v23 = vadd.f32 %v7222_v29, %v2288_v30  ;;  %v2465_v32 = vrot.slane %v2463_v52, 1  ;;  %v2352_v11 = vmax.f32 %v2323_v33, 0.0 }
 0x3c5   : > { %v2353_v36 = vmax.f32 %v2324_v23, 0.0  ;;  %v7367_v60 = vsel %vm340_vm2, %v2461_v3, %v2465_v32  ;;  %v2469_v45 = vor.u32 %v2467_v58, %v2465_v32 }
 0x3c6   : > { %v2243_v15 = vpop.f32.mrb[108].mxu0  ;;  %5263 = vmatmul.mubr.msk.bf16.gmra.mrb[180].mxu1 %vm2483_vm6, %v7367_v60 }
 0x3c7   : > { %v7371_v63 = vpack.c.bf16 %v2353_v36, %v2352_v11  ;;  %v2289_v25 = vadd.f32 %v2243_v15, %v7202_v5  ;;  %v5234_v2 = vpop.f32.mrb[109].mxu0  ;;  %v2884_v15 = vsel %vm2520_vm5, %v7261_v43, 0 }
 0x3c8   : > { %v2246_v16 = vpop.f32.mrb[110].mxu0  ;;  %v2377_v2 = vld [vmem:[%s7780_s3 + $0xc] sm:$0xf] }
 0x3c9   : > { %v2325_v27 = vadd.f32 %v7222_v29, %v2289_v25  ;;  %v2290_v57 = vadd.f32 %v2246_v16, %v7205_v21  ;;  %v5235_v4 = vpop.f32.mrb[111].mxu0  ;;  %v2471_v53 = vshll.u32 %v7371_v63, 16  ;;  %v2475_v0 = vshrl.u32 %v7371_v63, 16 }
 0x3cb   : > { %v2326_v56 = vadd.f32 %v7222_v29, %v2290_v57  ;;  %v2473_v34 = vrot.slane %v2471_v53, 1  ;;  %v2354_v24 = vmax.f32 %v2325_v27, 0.0 }
 0x3cd   : > { %v2355_v13 = vmax.f32 %v2326_v56, 0.0  ;;  %v7380_v42 = vsel %vm340_vm2, %v2469_v45, %v2473_v34  ;;  %v2477_v44 = vor.u32 %v2475_v0, %v2473_v34  ;;  %v2823_v56 = vrot.slane %v7235_v8, 1 }
 0x3ce   : > { %v2251_v5 = vpop.f32.mrb[112].mxu0  ;;  %5266 = vmatprep.mubr.msk.bf16.mxu1 %vm2483_vm6, %v7380_v42  ;;  %v2822_v45 = vrot.slane %v7228_v54, 1  ;;  %v2833_v0 = vrot.slane %v7306_v7, 1 }
 0x3cf   : > { %v7384_v1 = vpack.c.bf16 %v2355_v13, %v2354_v24  ;;  %v2291_v21 = vadd.f32 %v2251_v5, %v7210_v39  ;;  %v5238_v38 = vpop.f32.mrb[113].mxu0  ;;  %v2825_v24 = vrot.slane %v7245_v47, 1  ;;  %v2827_v13 = vrot.slane %v7265_v12, 1 }
 0x3d0   : > { %v2254_v40 = vpop.f32.mrb[114].mxu0  ;;  %v2824_v34 = vsel %vm853_vm4, %v2822_v45, %v2823_v56  ;;  %v3042_v5 = vsel %vm2520_vm5, %v2377_v2, 0 }
 0x3d1   : > { %v2327_v51 = vadd.f32 %v7222_v29, %v2291_v21  ;;  %v2292_v61 = vadd.f32 %v2254_v40, %v7213_v17  ;;  %v5239_v22 = vpop.f32.mrb[115].mxu0  ;;  %v2479_v19 = vshll.u32 %v7384_v1, 16  ;;  %v7456_v21 = vsel %vm853_vm4, %v2823_v56, %v2825_v24 }
 0x3d2   : > { %v7464_v38 = vsel %vm853_vm4, %v2825_v24, %v2827_v13  ;;  %v2829_v40 = vrot.slane %v7280_v28, 1 }
 0x3d3   : > { %v2328_v59 = vadd.f32 %v7222_v29, %v2292_v61  ;;  %v7392_v55 = vrot.slane %v2479_v19, 1  ;;  %v2356_v33 = vmax.f32 %v2327_v51, 0.0  ;;  %v2831_v51 = vrot.slane %v7293_v62, 1 }
 0x3d4   : > { %v7472_v61 = vsel %vm853_vm4, %v2827_v13, %v2829_v40  ;;  %v2835_v19 = vrot.slane %v7319_v31, 1 }
 0x3d5   : > { %v2357_v30 = vmax.f32 %v2328_v59, 0.0  ;;  %v7396_v39 = vsel %vm340_vm2, %v2477_v44, %v7392_v55  ;;  %v7477_v22 = vsel %vm853_vm4, %v2829_v40, %v2831_v51  ;;  %v7484_v59 = vsel %vm853_vm4, %v2831_v51, %v2833_v0 }
 0x3d6   : > { %v2259_v14 = vpop.f32.mrb[116].mxu0  ;;  %5267 = vmatmul.mubr.msk.bf16.gmra.mrb[184].mxu1 %vm2483_vm6, %v7396_v39  ;;  %v7489_v44 = vsel %vm853_vm4, %v2833_v0, %v2835_v19 }
 0x3d7   : > { %v7400_v17 = vpack.c.bf16 %v2357_v30, %v2356_v33  ;;  %v2293_v35 = vadd.f32 %v2259_v14, %v7217_v41  ;;  %5272 = vmatprep.mubr.msk.bf16.mxu1 %vm2483_vm6, %v7228_v54  ;;  %v5242_v52 = vpop.f32.mrb[117].mxu0  ;;  %v2378_v54 = vld [vmem:[%s7780_s3 + $0x10] sm:$0xf]  ;;  %v2837_v33 = vrot.slane %v7332_v18, 1  ;;  %v2839_v30 = vrot.slane %v7345_v48, 1 }
 0x3d8   : > { %v2262_v23 = vpop.f32.mrb[118].mxu0  ;;  %v2841_v52 = vrot.slane %v7358_v9, 1 }
 0x3d9   : > { %v2329_v3 = vadd.f32 %v7222_v29, %v2293_v35  ;;  %v3201_v32 = vshll.u32 %v7400_v17, 16  ;;  %v5243_v11 = vpop.f32.mrb[119].mxu0  ;;  %v3365_v29 = vrot.slane %v7400_v17, 1  ;;  %v3684_v43 = vshrl.u32 %v7400_v17, 16 }
 0x3da   : > { %v7496_v14 = vsel %vm853_vm4, %v2835_v19, %v2837_v33  ;;  %v7501_v35 = vsel %vm853_vm4, %v2837_v33, %v2839_v30  ;;  %v2843_v23 = vrot.slane %v7371_v63, 1  ;;  %v2845_v11 = vrot.slane %v7384_v1, 1 }
 0x3db   : > { %v2358_v36 = vmax.f32 %v2329_v3, 0.0  ;;  %v7412_v41 = vrot.slane %v3201_v32, 1  ;;  %v7508_v3 = vsel %vm853_vm4, %v2839_v30, %v2841_v52 }
 0x3dc   : > { %v7513_v32 = vsel %vm853_vm4, %v2841_v52, %v2843_v23 }
 0x3dd   : > { %v2373_v25 = vpack.c.bf16 %v2358_v36, %v2358_v36  ;;  %v3686_v4 = vor.u32 %v3684_v43, %v7412_v41  ;;  %v7519_v36 = vsel %vm853_vm4, %v2843_v23, %v2845_v11 }
 0x3de   : > { %5273 = vmatmul.mubr.msk.bf16.vlgmr.msra.gmra.mrb[164].mxu1 %vm2483_vm6, %v7235_v8 }
 0x3df   : > { %v3688_v16 = vshll.u32 %v2373_v25, 16  ;;  %v3852_v27 = vrot.slane %v2373_v25, 1  ;;  %5297 = vmatpush3.bf16.msra.mxu1 %v2884_v15  ;;  %5276 = vmatprep.mubr.msk.bf16.mxu1 %vm2483_vm6, %v7245_v47  ;;  %v3209_v15 = vsel %vm2520_vm5, %v2378_v54, 0  ;;  %v2379_v25 = vld [vmem:[%s7780_s3 + $0x14] sm:$0xf] }
 0x3e0   : > { %5675 = vmatprep.subr.msk.bf16.mxu1 %vm2520_vm5, %v2377_v2  ;;  %v2380_v2 = vld [vmem:[%s7780_s3 + $0x18] sm:$0xf] }
 0x3e1   : > { %v3690_v57 = vrot.slane %v3688_v16, 1  ;;  %v7425_v58 = vsel %vm853_vm4, %v3365_v29, %v3852_v27  ;;  %v3529_v43 = vsel %vm2520_vm5, %v2380_v2, 0 }
 0x3e3   : > { %v7428_v53 = vsel %vm340_vm2, %v3686_v4, %v3690_v57  ;;  %v2381_v57 = vld [vmem:[%s7780_s3 + $0x1c] sm:$0xf]  ;;  %v2382_v4 = vld [vmem:[%s7780_s3 + $0x20] sm:$0xf] }
 0x3e6   : > { %5277 = vmatmul.mubr.msk.bf16.gmra.mrb[168].mxu1 %vm2483_vm6, %v7265_v12 }
 0x3e7   : > { %5280 = vmatprep.mubr.msk.bf16.mxu1 %vm2483_vm6, %v7280_v28 }
 0x3ee   : > { %5281 = vmatmul.mubr.msk.bf16.gmra.mrb[172].mxu1 %vm2483_vm6, %v7293_v62 }
 0x3ef   : > { %5284 = vmatprep.mubr.msk.bf16.mxu1 %vm2483_vm6, %v7306_v7 }
 0x3f6   : > { %5285 = vmatmul.mubr.msk.bf16.gmra.mrb[176].mxu1 %vm2483_vm6, %v7319_v31 }
 0x3f7   : > { %5288 = vmatprep.mubr.msk.bf16.mxu1 %vm2483_vm6, %v7332_v18 }
 0x3fe   : > { %5289 = vmatmul.mubr.msk.bf16.gmra.mrb[180].mxu1 %vm2483_vm6, %v7345_v48 }
 0x3ff   : > { %5292 = vmatprep.mubr.msk.bf16.mxu1 %vm2483_vm6, %v7358_v9 }
 0x406   : > { %5293 = vmatmul.mubr.msk.bf16.gmra.mrb[184].mxu1 %vm2483_vm6, %v7371_v63 }
 0x407   : > { %5298 = vmatprep.mubr.msk.bf16.mxu1 %vm2483_vm6, %v2824_v34 }
 0x40e   : > { %5299 = vmatmul.mubr.msk.bf16.vlgmr.msra.gmra.mrb[164].mxu1 %vm2483_vm6, %v7456_v21 }
 0x40f   : > { %5323 = vmatpush3.bf16.msra.mxu1 %v3042_v5  ;;  %5302 = vmatprep.mubr.msk.bf16.mxu1 %vm2483_vm6, %v7464_v38 }
 0x410   : > { %5676 = vmatprep.subr.msk.bf16.mxu1 %vm2520_vm5, %v2378_v54 }
 0x416   : > { %5303 = vmatmul.mubr.msk.bf16.gmra.mrb[168].mxu1 %vm2483_vm6, %v7472_v61 }
 0x417   : > { %5306 = vmatprep.mubr.msk.bf16.mxu1 %vm2483_vm6, %v7477_v22 }
 0x41e   : > { %5307 = vmatmul.mubr.msk.bf16.gmra.mrb[172].mxu1 %vm2483_vm6, %v7484_v59 }
 0x41f   : > { %5310 = vmatprep.mubr.msk.bf16.mxu1 %vm2483_vm6, %v7489_v44 }
 0x426   : > { %5311 = vmatmul.mubr.msk.bf16.gmra.mrb[176].mxu1 %vm2483_vm6, %v7496_v14 }
 0x427   : > { %5314 = vmatprep.mubr.msk.bf16.mxu1 %vm2483_vm6, %v7501_v35 }
 0x42e   : > { %5315 = vmatmul.mubr.msk.bf16.gmra.mrb[180].mxu1 %vm2483_vm6, %v7508_v3 }
 0x42f   : > { %5318 = vmatprep.mubr.msk.bf16.mxu1 %vm2483_vm6, %v7513_v32 }
 0x436   : > { %5319 = vmatmul.mubr.msk.bf16.gmra.mrb[184].mxu1 %vm2483_vm6, %v7519_v36 }
 0x437   : > { %5324 = vmatprep.mubr.msk.bf16.mxu1 %vm2483_vm6, %v7235_v8  ;;  %v3371_v8 = vsel %vm2520_vm5, %v2379_v25, 0 }
 0x43e   : > { %5325 = vmatmul.mubr.msk.bf16.vlgmr.msra.gmra.mrb[164].mxu1 %vm2483_vm6, %v7245_v47 }
 0x43f   : > { %5349 = vmatpush3.bf16.msra.mxu1 %v3209_v15  ;;  %5328 = vmatprep.mubr.msk.bf16.mxu1 %vm2483_vm6, %v7265_v12 }
 0x440   : > { %5677 = vmatprep.subr.msk.bf16.mxu1 %vm2520_vm5, %v2379_v25 }
 0x446   : > { %5329 = vmatmul.mubr.msk.bf16.gmra.mrb[168].mxu1 %vm2483_vm6, %v7280_v28 }
 0x447   : > { %5332 = vmatprep.mubr.msk.bf16.mxu1 %vm2483_vm6, %v7293_v62 }
 0x44e   : > { %5333 = vmatmul.mubr.msk.bf16.gmra.mrb[172].mxu1 %vm2483_vm6, %v7306_v7 }
 0x44f   : > { %5336 = vmatprep.mubr.msk.bf16.mxu1 %vm2483_vm6, %v7319_v31 }
 0x456   : > { %5337 = vmatmul.mubr.msk.bf16.gmra.mrb[176].mxu1 %vm2483_vm6, %v7332_v18 }
 0x457   : > { %5340 = vmatprep.mubr.msk.bf16.mxu1 %vm2483_vm6, %v7345_v48 }
 0x45e   : > { %5341 = vmatmul.mubr.msk.bf16.gmra.mrb[180].mxu1 %vm2483_vm6, %v7358_v9 }
 0x45f   : > { %5344 = vmatprep.mubr.msk.bf16.mxu1 %vm2483_vm6, %v7371_v63 }
 0x466   : > { %5345 = vmatmul.mubr.msk.bf16.gmra.mrb[184].mxu1 %vm2483_vm6, %v7384_v1 }
 0x467   : > { %5350 = vmatprep.mubr.msk.bf16.mxu1 %vm2483_vm6, %v7256_v46  ;;  %v3197_v46 = vshrl.u32 %v7384_v1, 16 }
 0x469   : > { %v3199_v16 = vor.u32 %v3197_v46, %v7392_v55  ;;  %v3366_v55 = vsel %vm853_vm4, %v2845_v11, %v3365_v29 }
 0x46b   : > { %v3204_v27 = vsel %vm340_vm2, %v3199_v16, %v7412_v41  ;;  %v3696_v41 = vsel %vm2520_vm5, %v2381_v57, 0 }
 0x46e   : > { %5351 = vmatmul.mubr.msk.bf16.vlgmr.msra.gmra.mrb[164].mxu1 %vm2483_vm6, %v7276_v10 }
 0x46f   : > { %5375 = vmatpush3.bf16.msra.mxu1 %v3371_v8  ;;  %5354 = vmatprep.mubr.msk.bf16.mxu1 %vm2483_vm6, %v7289_v20 }
 0x470   : > { %5678 = vmatprep.subr.msk.bf16.mxu1 %vm2520_vm5, %v2380_v2 }
 0x476   : > { %5355 = vmatmul.mubr.msk.bf16.gmra.mrb[168].mxu1 %vm2483_vm6, %v7302_v37 }
 0x477   : > { %5358 = vmatprep.mubr.msk.bf16.mxu1 %vm2483_vm6, %v7315_v50 }
 0x47e   : > { %5359 = vmatmul.mubr.msk.bf16.gmra.mrb[172].mxu1 %vm2483_vm6, %v7328_v26 }
 0x47f   : > { %5362 = vmatprep.mubr.msk.bf16.mxu1 %vm2483_vm6, %v7341_v49 }
 0x486   : > { %5363 = vmatmul.mubr.msk.bf16.gmra.mrb[176].mxu1 %vm2483_vm6, %v7354_v6 }
 0x487   : > { %5366 = vmatprep.mubr.msk.bf16.mxu1 %vm2483_vm6, %v7367_v60 }
 0x48e   : > { %5367 = vmatmul.mubr.msk.bf16.gmra.mrb[180].mxu1 %vm2483_vm6, %v7380_v42 }
 0x48f   : > { %5370 = vmatprep.mubr.msk.bf16.mxu1 %vm2483_vm6, %v7396_v39 }
 0x496   : > { %5371 = vmatmul.mubr.msk.bf16.gmra.mrb[184].mxu1 %vm2483_vm6, %v3204_v27 }
 0x497   : > { %5376 = vmatprep.mubr.msk.bf16.mxu1 %vm2483_vm6, %v7456_v21 }
 0x49e   : > { %5377 = vmatmul.mubr.msk.bf16.vlgmr.msra.gmra.mrb[164].mxu1 %vm2483_vm6, %v7464_v38 }
 0x49f   : > { %5401 = vmatpush3.bf16.msra.mxu1 %v3529_v43  ;;  %5380 = vmatprep.mubr.msk.bf16.mxu1 %vm2483_vm6, %v7472_v61 }
 0x4a0   : > { %5679 = vmatprep.subr.msk.bf16.mxu1 %vm2520_vm5, %v2381_v57 }
 0x4a6   : > { %5381 = vmatmul.mubr.msk.bf16.gmra.mrb[168].mxu1 %vm2483_vm6, %v7477_v22 }
 0x4a7   : > { %5384 = vmatprep.mubr.msk.bf16.mxu1 %vm2483_vm6, %v7484_v59 }
 0x4ae   : > { %5385 = vmatmul.mubr.msk.bf16.gmra.mrb[172].mxu1 %vm2483_vm6, %v7489_v44 }
 0x4af   : > { %5388 = vmatprep.mubr.msk.bf16.mxu1 %vm2483_vm6, %v7496_v14 }
 0x4b6   : > { %5389 = vmatmul.mubr.msk.bf16.gmra.mrb[176].mxu1 %vm2483_vm6, %v7501_v35 }
 0x4b7   : > { %5392 = vmatprep.mubr.msk.bf16.mxu1 %vm2483_vm6, %v7508_v3 }
 0x4be   : > { %5393 = vmatmul.mubr.msk.bf16.gmra.mrb[180].mxu1 %vm2483_vm6, %v7513_v32 }
 0x4bf   : > { %5396 = vmatprep.mubr.msk.bf16.mxu1 %vm2483_vm6, %v7519_v36 }
 0x4c6   : > { %5397 = vmatmul.mubr.msk.bf16.gmra.mrb[184].mxu1 %vm2483_vm6, %v3366_v55 }
 0x4c7   : > { %5402 = vmatprep.mubr.msk.bf16.mxu1 %vm2483_vm6, %v7245_v47  ;;  %v3858_v47 = vsel %vm2520_vm5, %v2382_v4, 0 }
 0x4ce   : > { %5403 = vmatmul.mubr.msk.bf16.vlgmr.msra.gmra.mrb[164].mxu1 %vm2483_vm6, %v7265_v12  ;;  %v7695_v12 = vld [vmem:[%s7781_s4] ss:$0 sm:$0xff] }
 0x4cf   : > { %5427 = vmatpush3.bf16.msra.mxu1 %v3696_v41  ;;  %5406 = vmatprep.mubr.msk.bf16.mxu1 %vm2483_vm6, %v7280_v28 }
 0x4d0   : > { %5680 = vmatprep.subr.msk.bf16.mxu1 %vm2520_vm5, %v2382_v4 }
 0x4d6   : > { %5407 = vmatmul.mubr.msk.bf16.gmra.mrb[168].mxu1 %vm2483_vm6, %v7293_v62 }
 0x4d7   : > { %5410 = vmatprep.mubr.msk.bf16.mxu1 %vm2483_vm6, %v7306_v7 }
 0x4de   : > { %5411 = vmatmul.mubr.msk.bf16.gmra.mrb[172].mxu1 %vm2483_vm6, %v7319_v31 }
 0x4df   : > { %5414 = vmatprep.mubr.msk.bf16.mxu1 %vm2483_vm6, %v7332_v18 }
 0x4e6   : > { %5415 = vmatmul.mubr.msk.bf16.gmra.mrb[176].mxu1 %vm2483_vm6, %v7345_v48 }
 0x4e7   : > { %5418 = vmatprep.mubr.msk.bf16.mxu1 %vm2483_vm6, %v7358_v9 }
 0x4ee   : > { %5419 = vmatmul.mubr.msk.bf16.gmra.mrb[180].mxu1 %vm2483_vm6, %v7371_v63 }
 0x4ef   : > { %5422 = vmatprep.mubr.msk.bf16.mxu1 %vm2483_vm6, %v7384_v1 }
 0x4f6   : > { %5423 = vmatmul.mubr.msk.bf16.gmra.mrb[184].mxu1 %vm2483_vm6, %v7400_v17 }
 0x4f7   : > { %5428 = vmatprep.mubr.msk.bf16.mxu1 %vm2483_vm6, %v7276_v10 }
 0x4fe   : > { %5429 = vmatmul.mubr.msk.bf16.vlgmr.msra.gmra.mrb[164].mxu1 %vm2483_vm6, %v7289_v20 }
 0x4ff   : > { %5453 = vmatpush3.bf16.msra.mxu1 %v3858_v47  ;;  %5432 = vmatprep.mubr.msk.bf16.mxu1 %vm2483_vm6, %v7302_v37 }
 0x506   : > { %5433 = vmatmul.mubr.msk.bf16.gmra.mrb[168].mxu1 %vm2483_vm6, %v7315_v50 }
 0x507   : > { %5436 = vmatprep.mubr.msk.bf16.mxu1 %vm2483_vm6, %v7328_v26 }
 0x50e   : > { %5437 = vmatmul.mubr.msk.bf16.gmra.mrb[172].mxu1 %vm2483_vm6, %v7341_v49 }
 0x50f   : > { %5440 = vmatprep.mubr.msk.bf16.mxu1 %vm2483_vm6, %v7354_v6 }
 0x516   : > { %5441 = vmatmul.mubr.msk.bf16.gmra.mrb[176].mxu1 %vm2483_vm6, %v7367_v60 }
 0x517   : > { %5444 = vmatprep.mubr.msk.bf16.mxu1 %vm2483_vm6, %v7380_v42 }
 0x51e   : > { %5445 = vmatmul.mubr.msk.bf16.gmra.mrb[180].mxu1 %vm2483_vm6, %v7396_v39 }
 0x51f   : > { %5448 = vmatprep.mubr.msk.bf16.mxu1 %vm2483_vm6, %v3204_v27 }
 0x526   : > { %5449 = vmatmul.mubr.msk.bf16.gmra.mrb[184].mxu1 %vm2483_vm6, %v7428_v53 }
 0x527   : > { %5454 = vmatprep.mubr.msk.bf16.mxu1 %vm2483_vm6, %v7464_v38 }
 0x52e   : > { %5455 = vmatmul.mubr.msk.bf16.vlgmr.msra.gmra.mrb[164].mxu1 %vm2483_vm6, %v7472_v61 }
 0x52f   : > { %5458 = vmatprep.mubr.msk.bf16.mxu1 %vm2483_vm6, %v7477_v22 }
 0x536   : > { %5459 = vmatmul.mubr.msk.bf16.gmra.mrb[168].mxu1 %vm2483_vm6, %v7484_v59 }
 0x537   : > { %5462 = vmatprep.mubr.msk.bf16.mxu1 %vm2483_vm6, %v7489_v44 }
 0x53e   : > { %5463 = vmatmul.mubr.msk.bf16.gmra.mrb[172].mxu1 %vm2483_vm6, %v7496_v14 }
 0x53f   : > { %5466 = vmatprep.mubr.msk.bf16.mxu1 %vm2483_vm6, %v7501_v35 }
 0x546   : > { %5467 = vmatmul.mubr.msk.bf16.gmra.mrb[176].mxu1 %vm2483_vm6, %v7508_v3 }
 0x547   : > { %5470 = vmatprep.mubr.msk.bf16.mxu1 %vm2483_vm6, %v7513_v32 }
 0x54e   : > { %5471 = vmatmul.mubr.msk.bf16.gmra.mrb[180].mxu1 %vm2483_vm6, %v7519_v36 }
 0x54f   : > { %5474 = vmatprep.mubr.msk.bf16.mxu1 %vm2483_vm6, %v3366_v55 }
 0x556   : > { %5475 = vmatmul.mubr.msk.bf16.gmra.mrb[184].mxu1 %vm2483_vm6, %v7425_v58 }
 0x601   : > { %v5456_v10 = vpop.f32.mrb[164].mxu1 }
 0x602   : > { %v4022_v28 = vadd.f32 %v5456_v10, %v7695_v12  ;;  %v3894_v20 = vpop.f32.mrb[165].mxu1 }
 0x603   : > { %v4020_v62 = vadd.f32 %v7695_v12, %v3894_v20  ;;  %v5457_v37 = vpop.f32.mrb[166].mxu1 }
 0x604   : > { %v4046_v7 = vmax.f32 %v4022_v28, 0.0  ;;  %v4023_v50 = vadd.f32 %v5457_v37, %v7695_v12  ;;  %v3897_v31 = vpop.f32.mrb[167].mxu1 }
 0x605   : > { %v4044_v26 = vmax.f32 %v4020_v62, 0.0  ;;  %v4021_v18 = vadd.f32 %v7695_v12, %v3897_v31 }
 0x606   : > { %4070 = vst.msk [vmem:[%s7701_s11 + $0x10] sm:$0xff] %vm2483_vm6, %v4046_v7  ;;  %v4047_v49 = vmax.f32 %v4023_v50, 0.0 }
 0x607   : > { %4068 = vst.msk [vmem:[%s7701_s11] sm:$0xff] %vm2483_vm6, %v4044_v26  ;;  %v4045_v48 = vmax.f32 %v4021_v18, 0.0 }
 0x608   : > { %4071 = vst.msk [vmem:[%s7701_s11 + $0x18] sm:$0xff] %vm2483_vm6, %v4047_v49 }
 0x609   : > { %4069 = vst.msk [vmem:[%s7701_s11 + $0x8] sm:$0xff] %vm2483_vm6, %v4045_v48  ;;  %v5460_v6 = vpop.f32.mrb[168].mxu1 }
 0x60a   : > { %v4026_v9 = vadd.f32 %v5460_v6, %v7695_v12  ;;  %v3910_v60 = vpop.f32.mrb[169].mxu1 }
 0x60b   : > { %v4024_v63 = vadd.f32 %v7695_v12, %v3910_v60  ;;  %v5461_v42 = vpop.f32.mrb[170].mxu1 }
 0x60c   : > { %v4050_v1 = vmax.f32 %v4026_v9, 0.0  ;;  %v4027_v39 = vadd.f32 %v5461_v42, %v7695_v12  ;;  %v3913_v17 = vpop.f32.mrb[171].mxu1 }
 0x60d   : > { %v4048_v29 = vmax.f32 %v4024_v63, 0.0  ;;  %v4025_v58 = vadd.f32 %v7695_v12, %v3913_v17 }
 0x60e   : > { %4074 = vst.msk [vmem:[%s7701_s11 + $0x30] sm:$0xff] %vm2483_vm6, %v4050_v1  ;;  %v4051_v53 = vmax.f32 %v4027_v39, 0.0 }
 0x60f   : > { %4072 = vst.msk [vmem:[%s7701_s11 + $0x20] sm:$0xff] %vm2483_vm6, %v4048_v29  ;;  %v4049_v56 = vmax.f32 %v4025_v58, 0.0 }
 0x610   : > { %4075 = vst.msk [vmem:[%s7701_s11 + $0x38] sm:$0xff] %vm2483_vm6, %v4051_v53 }
 0x611   : > { %4073 = vst.msk [vmem:[%s7701_s11 + $0x28] sm:$0xff] %vm2483_vm6, %v4049_v56  ;;  %v5464_v45 = vpop.f32.mrb[172].mxu1 }
 0x612   : > { %v4030_v34 = vadd.f32 %v5464_v45, %v7695_v12  ;;  %v3926_v24 = vpop.f32.mrb[173].mxu1 }
 0x613   : > { %v4028_v13 = vadd.f32 %v7695_v12, %v3926_v24  ;;  %v5465_v5 = vpop.f32.mrb[174].mxu1 }
 0x614   : > { %v4054_v21 = vmax.f32 %v4030_v34, 0.0  ;;  %v4031_v54 = vadd.f32 %v5465_v5, %v7695_v12  ;;  %v3929_v38 = vpop.f32.mrb[175].mxu1 }
 0x615   : > { %v4052_v40 = vmax.f32 %v4028_v13, 0.0  ;;  %v4029_v51 = vadd.f32 %v7695_v12, %v3929_v38 }
 0x616   : > { %4078 = vst.msk [vmem:[%s7701_s11 + $0x50] sm:$0xff] %vm2483_vm6, %v4054_v21  ;;  %v4055_v61 = vmax.f32 %v4031_v54, 0.0 }
 0x617   : > { %4076 = vst.msk [vmem:[%s7701_s11 + $0x40] sm:$0xff] %vm2483_vm6, %v4052_v40  ;;  %v4053_v22 = vmax.f32 %v4029_v51, 0.0 }
 0x618   : > { %4079 = vst.msk [vmem:[%s7701_s11 + $0x58] sm:$0xff] %vm2483_vm6, %v4055_v61 }
 0x619   : > { %4077 = vst.msk [vmem:[%s7701_s11 + $0x48] sm:$0xff] %vm2483_vm6, %v4053_v22  ;;  %v5468_v0 = vpop.f32.mrb[176].mxu1 }
 0x61a   : > { %v4034_v19 = vadd.f32 %v5468_v0, %v7695_v12  ;;  %v3942_v59 = vpop.f32.mrb[177].mxu1 }
 0x61b   : > { %v4032_v44 = vadd.f32 %v7695_v12, %v3942_v59  ;;  %v5469_v33 = vpop.f32.mrb[178].mxu1 }
 0x61c   : > { %v4058_v30 = vmax.f32 %v4034_v19, 0.0  ;;  %v4035_v14 = vadd.f32 %v5469_v33, %v7695_v12  ;;  %v3945_v35 = vpop.f32.mrb[179].mxu1 }
 0x61d   : > { %v4056_v52 = vmax.f32 %v4032_v44, 0.0  ;;  %v4033_v23 = vadd.f32 %v7695_v12, %v3945_v35 }
 0x61e   : > { %4082 = vst.msk [vmem:[%s7701_s11 + $0x70] sm:$0xff] %vm2483_vm6, %v4058_v30  ;;  %v4059_v3 = vmax.f32 %v4035_v14, 0.0 }
 0x61f   : > { %4080 = vst.msk [vmem:[%s7701_s11 + $0x60] sm:$0xff] %vm2483_vm6, %v4056_v52  ;;  %v4057_v32 = vmax.f32 %v4033_v23, 0.0 }
 0x620   : > { %4083 = vst.msk [vmem:[%s7701_s11 + $0x78] sm:$0xff] %vm2483_vm6, %v4059_v3 }
 0x621   : > { %4081 = vst.msk [vmem:[%s7701_s11 + $0x68] sm:$0xff] %vm2483_vm6, %v4057_v32  ;;  %v5472_v11 = vpop.f32.mrb[180].mxu1 }
 0x622   : > { %v4038_v36 = vadd.f32 %v5472_v11, %v7695_v12  ;;  %v3958_v15 = vpop.f32.mrb[181].mxu1 }
 0x623   : > { %v4036_v25 = vadd.f32 %v7695_v12, %v3958_v15  ;;  %v5473_v8 = vpop.f32.mrb[182].mxu1 }
 0x624   : > { %v4062_v2 = vmax.f32 %v4038_v36, 0.0  ;;  %v4039_v46 = vadd.f32 %v5473_v8, %v7695_v12  ;;  %v3961_v16 = vpop.f32.mrb[183].mxu1 }
 0x625   : > { %v4060_v27 = vmax.f32 %v4036_v25, 0.0  ;;  %v4037_v43 = vadd.f32 %v7695_v12, %v3961_v16 }
 0x626   : > { %4086 = vst.msk [vmem:[%s7701_s11 + $0x90] sm:$0xff] %vm2483_vm6, %v4062_v2  ;;  %v4063_v57 = vmax.f32 %v4039_v46, 0.0 }
 0x627   : > { %4084 = vst.msk [vmem:[%s7701_s11 + $0x80] sm:$0xff] %vm2483_vm6, %v4060_v27  ;;  %v4061_v55 = vmax.f32 %v4037_v43, 0.0 }
 0x628   : > { %4087 = vst.msk [vmem:[%s7701_s11 + $0x98] sm:$0xff] %vm2483_vm6, %v4063_v57 }
 0x629   : > { %4085 = vst.msk [vmem:[%s7701_s11 + $0x88] sm:$0xff] %vm2483_vm6, %v4061_v55  ;;  %v5476_v41 = vpop.f32.mrb[184].mxu1 }
 0x62a   : > { %v4042_v4 = vadd.f32 %v5476_v41, %v7695_v12  ;;  %v3974_v47 = vpop.f32.mrb[185].mxu1 }
 0x62b   : > { %v4040_v10 = vadd.f32 %v7695_v12, %v3974_v47  ;;  %v5477_v28 = vpop.f32.mrb[186].mxu1 }
 0x62c   : > { %v4066_v20 = vmax.f32 %v4042_v4, 0.0  ;;  %v4043_v62 = vadd.f32 %v5477_v28, %v7695_v12  ;;  %v3977_v37 = vpop.f32.mrb[187].mxu1 }
 0x62d   : > { %v4064_v7 = vmax.f32 %v4040_v10, 0.0  ;;  %v4041_v50 = vadd.f32 %v7695_v12, %v3977_v37 }
 0x62e   : > { %4090 = vst.msk [vmem:[%s7701_s11 + $0xb0] sm:$0xff] %vm2483_vm6, %v4066_v20  ;;  %v4067_v31 = vmax.f32 %v4043_v62, 0.0 }
 0x62f   : > { %4088 = vst.msk [vmem:[%s7701_s11 + $0xa0] sm:$0xff] %vm2483_vm6, %v4064_v7  ;;  %v4065_v26 = vmax.f32 %v4041_v50, 0.0 }
 0x630   : > { %4091 = vst.msk [vmem:[%s7701_s11 + $0xb8] sm:$0xff] %vm2483_vm6, %v4067_v31 }
 0x631   : > { %4089 = vst.msk [vmem:[%s7701_s11 + $0xa8] sm:$0xff] %vm2483_vm6, %v4065_v26 }
 0x632 PF: > { %s15_s18 = sadd.s32 1, %s5735_s18  }
 0x633   : > { %p12_p4 = scmp.ge.s32.totalorder %s15_s18, 4  }
 0x635   :  { %14 = sbr.rel (!%p12_p4) target bundleno = 1 (0x1), region = 70 }

</bundles_post_ra>
